<compile_context>
chip_gen: v7x
topology: tpu7x:2x2x1
jax: 0.10.0
libtpu: 0.0.40
codegen_flags: <defaults>
</compile_context>

<pallas_src>
import functools

import jax
import jax.numpy as jnp
from jax import lax
from jax.experimental import pallas as pl
from jax.experimental.pallas import tpu as pltpu

# TODO(synk): the real encoder is a pretrained dilated ResNet50 (feat_dim=2048);
# a single /8 patch-conv stand-in with the same downsampling contract is used.
FEAT_DIM = 128          # lane-dense feature dim (real model: 2048)
PATCH = 8               # /8 downsampling
K_PAD = 256             # PATCH*PATCH*3 = 192, zero-padded to a lane-dense 256
_GN_EPS = 1e-5

_PARALLEL_B = pltpu.CompilerParams(dimension_semantics=("parallel",))


# ---------------------------------------------------------------------------
# 1. Encoder stand-in: 8x8/stride-8 patch conv + ReLU as one big matmul.
# ---------------------------------------------------------------------------
def _extract_patches(imgs_nchw):
    B, Cc, H, W = imgs_nchw.shape
    h, w = H // PATCH, W // PATCH
    x = jnp.transpose(imgs_nchw, (0, 2, 3, 1))                       # NHWC
    x = x.reshape(B, h, PATCH, w, PATCH, Cc)
    x = jnp.transpose(x, (0, 1, 3, 2, 4, 5)).reshape(B * h * w, PATCH * PATCH * Cc)
    x = jnp.pad(x, ((0, 0), (0, K_PAD - PATCH * PATCH * Cc)))        # lane-dense K
    return x, h, w


def _enc_kernel(x_ref, w_ref, o_ref):
    # TODO(synk): at real scale (feat_dim=2048) cast operands to bf16 on
    # v6e/v7x (keep f32 accumulation) and row-tile with vmem_limit_bytes set.
    o_ref[...] = jnp.maximum(
        jnp.dot(x_ref[...], w_ref[...], preferred_element_type=jnp.float32), 0.0)


def encode(imgs_nchw, enc_w):
    # One pallas_call with no grid: all images' patches are batched into a
    # single (B*h*w, K_PAD) @ (K_PAD, 128) matmul (no per-image grid steps).
    B = imgs_nchw.shape[0]
    x, h, w = _extract_patches(imgs_nchw)
    out = pl.pallas_call(
        _enc_kernel,
        out_shape=jax.ShapeDtypeStruct((x.shape[0], FEAT_DIM), jnp.float32),
    )(x, enc_w)
    return out.reshape(B, h, w, FEAT_DIM)


# ---------------------------------------------------------------------------
# 2. Prototypes (masked average pooling + per-class mean) -- plain jnp.
# ---------------------------------------------------------------------------
def compute_prototypes(s_feat, s_masks, s_labels, selected_classes):
    S, h, w, C = s_feat.shape
    Hm, Wm = s_masks.shape[1:]
    ih = (jnp.arange(h) * Hm) // h                 # nearest-neighbour downsample
    iw = (jnp.arange(w) * Wm) // w
    m_small = s_masks[:, ih][:, :, iw]
    # equals (m == 255) for canonical {0, 255} masks, robust to float fuzz
    m_bin = (m_small >= 254.5).astype(jnp.float32).reshape(S, h * w)
    cls = jnp.asarray(selected_classes, dtype=s_labels.dtype)
    ind = (s_labels[None, :] == cls[:, None]).astype(jnp.float32)          # (n_way, S)
    wcls = ind / jnp.maximum(jnp.sum(ind, axis=1, keepdims=True), 1.0)     # class mean
    per = (jnp.sum(s_feat.reshape(S, h * w, C) * m_bin[:, :, None], axis=1)
           / (jnp.sum(m_bin, axis=1, keepdims=True) + 1e-7))               # (S, C)
    return jnp.dot(wcls, per)                                              # (n_way, C)


# ---------------------------------------------------------------------------
# 3. Decoder: ConvTranspose2d(4, stride=2, pad=1) (+GroupNorm+ReLU) per stage.
#    out[2i+a, 2j+b, :] = sum_{dh,dw} x[i+dh, j+dw, :] @ W[:, :, a+1-2dh, b+1-2dw]
# ---------------------------------------------------------------------------
def _prep_convt_weights(w_pt):
    """PyTorch ConvTranspose2d weight (Cin, Cout, 4, 4) -> (9, Cin, 4*Cout)."""
    Cin, Cout = w_pt.shape[:2]
    blocks = []
    for dh in (-1, 0, 1):
        for dw in (-1, 0, 1):
            wb = jnp.zeros((Cin, 4 * Cout), w_pt.dtype)
            for a in (0, 1):
                ky = a + 1 - 2 * dh
                if not 0 <= ky <= 3:
                    continue
                for b in (0, 1):
                    kx = b + 1 - 2 * dw
                    if not 0 <= kx <= 3:
                        continue
                    ph = 2 * a + b
                    wb = wb.at[:, ph * Cout:(ph + 1) * Cout].set(w_pt[:, :, ky, kx])
            blocks.append(wb)
    return jnp.stack(blocks, axis=0)


def _prep_groupnorm(gamma, beta, Cout, groups, rows):
    """Group-projection matrix + phase-tiled affine for the (HW, 4*Cout) layout."""
    L = 4 * Cout
    lane_c = jnp.arange(L) % Cout
    lane_g = lane_c // (Cout // groups)
    same = (lane_g[:, None] == lane_g[None, :]).astype(jnp.float32)    # (L, L)
    n_per_group = float(rows * 4 * (Cout // groups))   # == (2H*2W) * Cout/groups
    return same / n_per_group, gamma[lane_c][None, :], beta[lane_c][None, :]


def _depth_to_space(y, Cout):
    """(B, H, W, 4*Cout) phase-on-lane layout -> (B, 2H, 2W, Cout)."""
    B, H, W, _ = y.shape
    y = y.reshape(B, H, W, 2, 2, Cout)
    return jnp.transpose(y, (0, 1, 3, 2, 4, 5)).reshape(B, 2 * H, 2 * W, Cout)


def _convt_accumulate(xp, w_ref, H, W, Cin, Cout):
    # xp: zero-padded input (H+2, W+2, Cin); 9 shifted-window matmuls into a
    # single lane-dense (H*W, 4*Cout) accumulator.
    acc = jnp.zeros((H * W, 4 * Cout), jnp.float32)
    s = 0
    for dh in (-1, 0, 1):
        for dw in (-1, 0, 1):
            xs = xp[1 + dh:1 + dh + H, 1 + dw:1 + dw + W, :].reshape(H * W, Cin)
            acc = acc + jnp.dot(xs, w_ref[s], preferred_element_type=jnp.float32)
            s += 1
    return acc


def _gn_relu_epilogue(acc, gproj_ref, gamma_ref, beta_ref):
    # GroupNorm via group-projection matmuls (no lane slicing/concat),
    # two-pass E[(x - mu)^2] variance, then per-channel affine + ReLU.
    colsum = jnp.sum(acc, axis=0, keepdims=True)                          # (1, L)
    mean_l = jnp.dot(colsum, gproj_ref[...], preferred_element_type=jnp.float32)
    xc = acc - mean_l
    var_l = jnp.dot(jnp.sum(xc * xc, axis=0, keepdims=True), gproj_ref[...],
                    preferred_element_type=jnp.float32)
    y = xc * lax.rsqrt(var_l + _GN_EPS)
    y = y * gamma_ref[...] + beta_ref[...]
    return jnp.maximum(y, 0.0)


def _sim_dec1_kernel(qpad_ref, protoT_ref, p2_ref, mask_ref, w_ref,
                     gproj_ref, gamma_ref, beta_ref, o_ref, *, h, w, C, P, Cout):
    # Fused: euclidean similarity -> ConvTranspose2d -> GroupNorm -> ReLU.
    Hp, Wp = h + 2, w + 2
    q = qpad_ref[0].reshape(Hp * Wp, C)                 # spatially pre-padded q
    q2 = jnp.sum(q * q, axis=1, keepdims=True)
    qp = jnp.dot(q, protoT_ref[...], preferred_element_type=jnp.float32)
    sim = -(q2 + p2_ref[...] - 2.0 * qp)                # (Hp*Wp, P)
    # zero the border so `xp` is exactly the zero-padded conv-transpose input
    xp = sim.reshape(Hp, Wp, P) * mask_ref[...]
    acc = _convt_accumulate(xp, w_ref, h, w, P, Cout)
    y = _gn_relu_epilogue(acc, gproj_ref, gamma_ref, beta_ref)
    o_ref[0] = y.reshape(h, w, 4 * Cout)


def _dec_stage_kernel(xpad_ref, w_ref, *rest, H, W, Cin, Cout, with_gn):
    if with_gn:
        gproj_ref, gamma_ref, beta_ref, o_ref = rest
    else:
        (o_ref,) = rest
    acc = _convt_accumulate(xpad_ref[0], w_ref, H, W, Cin, Cout)
    y = _gn_relu_epilogue(acc, gproj_ref, gamma_ref, beta_ref) if with_gn else acc
    o_ref[0] = y.reshape(H, W, 4 * Cout)


def sim_dec1(q_feat, proto, w_pt, gamma, beta, groups):
    B, h, w, C = q_feat.shape
    P, Cout = w_pt.shape[0], w_pt.shape[1]
    L = 4 * Cout
    qpad = jnp.pad(q_feat, ((0, 0), (1, 1), (1, 1), (0, 0)))
    protoT = jnp.transpose(proto)                                  # (C, P)
    p2 = jnp.sum(proto * proto, axis=1)[None, :]                   # hoisted |p|^2
    mask = jnp.zeros((h + 2, w + 2, 1), jnp.float32).at[1:h + 1, 1:w + 1, :].set(1.0)
    wbig = _prep_convt_weights(w_pt)                               # (9, P, L)
    gproj, gamma4, beta4 = _prep_groupnorm(gamma, beta, Cout, groups, h * w)
    kern = functools.partial(_sim_dec1_kernel, h=h, w=w, C=C, P=P, Cout=Cout)
    return pl.pallas_call(
        kern,
        grid=(B,),
        in_specs=[pl.BlockSpec((1, h + 2, w + 2, C), lambda b: (b, 0, 0, 0)),
                  pl.BlockSpec((C, P), lambda b: (0, 0)),
                  pl.BlockSpec((1, P), lambda b: (0, 0)),
                  pl.BlockSpec((h + 2, w + 2, 1), lambda b: (0, 0, 0)),
                  pl.BlockSpec((9, P, L), lambda b: (0, 0, 0)),
                  pl.BlockSpec((L, L), lambda b: (0, 0)),
                  pl.BlockSpec((1, L), lambda b: (0, 0)),
                  pl.BlockSpec((1, L), lambda b: (0, 0))],
        out_specs=pl.BlockSpec((1, h, w, L), lambda b: (b, 0, 0, 0)),
        out_shape=jax.ShapeDtypeStruct((B, h, w, L), jnp.float32),
        compiler_params=_PARALLEL_B,
    )(qpad, protoT, p2, mask, wbig, gproj, gamma4, beta4)


def dec_stage(x, w_pt, gamma=None, beta=None, groups=None):
    B, H, W, Cin = x.shape
    Cout = w_pt.shape[1]
    L = 4 * Cout
    xpad = jnp.pad(x, ((0, 0), (1, 1), (1, 1), (0, 0)))
    wbig = _prep_convt_weights(w_pt)
    with_gn = gamma is not None
    kern = functools.partial(_dec_stage_kernel, H=H, W=W, Cin=Cin, Cout=Cout,
                             with_gn=with_gn)
    in_specs = [pl.BlockSpec((1, H + 2, W + 2, Cin), lambda b: (b, 0, 0, 0)),
                pl.BlockSpec((9, Cin, L), lambda b: (0, 0, 0))]
    args = [xpad, wbig]
    if with_gn:
        gproj, gamma4, beta4 = _prep_groupnorm(gamma, beta, Cout, groups, H * W)
        in_specs += [pl.BlockSpec((L, L), lambda b: (0, 0)),
                     pl.BlockSpec((1, L), lambda b: (0, 0)),
                     pl.BlockSpec((1, L), lambda b: (0, 0))]
        args += [gproj, gamma4, beta4]
    return pl.pallas_call(
        kern,
        grid=(B,),
        in_specs=in_specs,
        out_specs=pl.BlockSpec((1, H, W, L), lambda b: (b, 0, 0, 0)),
        out_shape=jax.ShapeDtypeStruct((B, H, W, L), jnp.float32),
        compiler_params=_PARALLEL_B,
    )(*args)


# ---------------------------------------------------------------------------
# ProtoNet parameters + forward
# ---------------------------------------------------------------------------
def init_params(key, n_way):
    P = n_way + 1
    ks = jax.random.split(key, 5)
    return {
        "enc_w": 0.05 * jax.random.normal(ks[0], (K_PAD, FEAT_DIM), jnp.float32),
        "gl_bg_proto": 0.02 * jax.random.normal(ks[1], (1, FEAT_DIM), jnp.float32),
        "dec1_w": 0.05 * jax.random.normal(ks[2], (P, 64, 4, 4), jnp.float32),
        "gn1_g": jnp.ones((64,), jnp.float32), "gn1_b": jnp.zeros((64,), jnp.float32),
        "dec2_w": 0.05 * jax.random.normal(ks[3], (64, 32, 4, 4), jnp.float32),
        "gn2_g": jnp.ones((32,), jnp.float32), "gn2_b": jnp.zeros((32,), jnp.float32),
        "dec3_w": 0.05 * jax.random.normal(ks[4], (32, P, 4, 4), jnp.float32),
    }


def protonet_forward(params, s_imgs, s_masks, s_labels, q_imgs, selected_classes):
    S = s_imgs.shape[0]
    feats = encode(jnp.concatenate([s_imgs, q_imgs], axis=0), params["enc_w"])
    s_feat, q_feat = feats[:S], feats[S:]
    fg_proto = compute_prototypes(s_feat, s_masks, s_labels, selected_classes)
    proto = jnp.concatenate([fg_proto, params["gl_bg_proto"]], axis=0)   # (n_way+1, C)

    x = sim_dec1(q_feat, proto, params["dec1_w"],
                 params["gn1_g"], params["gn1_b"], groups=4)    # sim fused into dec1
    x = _depth_to_space(x, params["dec1_w"].shape[1])           # (B, 2h, 2w, 64)
    x = dec_stage(x, params["dec2_w"], params["gn2_g"], params["gn2_b"], groups=2)
    x = _depth_to_space(x, params["dec2_w"].shape[1])           # (B, 4h, 4w, 32)
    x = dec_stage(x, params["dec3_w"])                          # logits, no GN
    x = _depth_to_space(x, params["dec3_w"].shape[1])           # (B, 8h, 8w, P)
    return jnp.transpose(x, (0, 3, 1, 2))                       # NCHW logits


# ---------------------------------------------------------------------------
# Pure-jnp reference of the same forward (validates the Pallas kernels,
# in particular the conv-transpose tap mapping and the fused GroupNorm).
# ---------------------------------------------------------------------------
_HI = jax.lax.Precision.HIGHEST


def _ref_conv_transpose(x, w_pt):
    B, H, W, Cin = x.shape
    Cout = w_pt.shape[1]
    out = jnp.zeros((B, 2 * H + 2, 2 * W + 2, Cout), jnp.float32)
    for ky in range(4):
        for kx in range(4):
            c = jnp.einsum("bhwc,cd->bhwd", x, w_pt[:, :, ky, kx], precision=_HI)
            out = out.at[:, ky:ky + 2 * H:2, kx:kx + 2 * W:2, :].add(c)
    return out[:, 1:1 + 2 * H, 1:1 + 2 * W, :]


def _ref_group_norm(x, gamma, beta, groups, relu):
    B, H, W, C = x.shape
    xg = x.reshape(B, H * W, groups, C // groups)
    mu = jnp.mean(xg, axis=(1, 3), keepdims=True)
    var = jnp.mean((xg - mu) ** 2, axis=(1, 3), keepdims=True)
    y = ((xg - mu) / jnp.sqrt(var + _GN_EPS)).reshape(B, H, W, C) * gamma + beta
    return jnp.maximum(y, 0.0) if relu else y


def reference_forward(params, s_imgs, s_masks, s_labels, q_imgs, selected_classes):
    S = s_imgs.shape[0]
    B = s_imgs.shape[0] + q_imgs.shape[0]
    xpat, h, w = _extract_patches(jnp.concatenate([s_imgs, q_imgs], axis=0))
    feats = jnp.maximum(jnp.dot(xpat, params["enc_w"], precision=_HI), 0.0)
    feats = feats.reshape(B, h, w, FEAT_DIM)
    s_feat, q_feat = feats[:S], feats[S:]
    fg_proto = compute_prototypes(s_feat, s_masks, s_labels, selected_classes)
    proto = jnp.concatenate([fg_proto, params["gl_bg_proto"]], axis=0)
    q2 = jnp.sum(q_feat * q_feat, axis=-1, keepdims=True)
    p2 = jnp.sum(proto * proto, axis=1)
    qp = jnp.einsum("bhwc,pc->bhwp", q_feat, proto, precision=_HI)
    sim = -(q2 + p2[None, None, None, :] - 2.0 * qp)
    x = _ref_conv_transpose(sim, params["dec1_w"])
    x = _ref_group_norm(x, params["gn1_g"], params["gn1_b"], 4, relu=True)
    x = _ref_conv_transpose(x, params["dec2_w"])
    x = _ref_group_norm(x, params["gn2_g"], params["gn2_b"], 2, relu=True)
    x = _ref_conv_transpose(x, params["dec3_w"])
    return jnp.transpose(x, (0, 3, 1, 2))


if __name__ == "__main__":
    key = jax.random.PRNGKey(0)
    n_way, S, Bq, IMG = 3, 4, 2, 32
    k1, k2, k3, k4 = jax.random.split(key, 4)

    # support set: (image, mask, label); query set: images only.
    s_imgs = jax.random.normal(k1, (S, 3, IMG, IMG), jnp.float32)            # NCHW
    s_masks = jnp.where(jax.random.uniform(k2, (S, IMG, IMG)) > 0.5,
                        255.0, 0.0).astype(jnp.float32)
    s_labels = jnp.array([5, 7, 9, 5], dtype=jnp.int32)
    selected_classes = jnp.array([5, 7, 9], dtype=jnp.int32)
    q_imgs = jax.random.normal(k3, (Bq, 3, IMG, IMG), jnp.float32)           # NCHW
    params = init_params(k4, n_way)

    fwd = jax.jit(protonet_forward)
    logits = jax.block_until_ready(
        fwd(params, s_imgs, s_masks, s_labels, q_imgs, selected_classes))
    assert logits.shape == (Bq, n_way + 1, IMG, IMG), logits.shape
    assert bool(jnp.all(jnp.isfinite(logits)))

    ref = reference_forward(params, s_imgs, s_masks, s_labels, q_imgs, selected_classes)
    err = float(jnp.max(jnp.abs(logits - ref)))
    scale = float(jnp.max(jnp.abs(ref)))
    assert err <= 5e-2 * max(scale, 1.0), (
        f"Pallas vs jnp reference mismatch: max abs err {err} (scale {scale})")
    print("KERNEL_OK")
</pallas_src>

<mosaic_0001>
module attributes {stable_mosaic.version = 11 : i64} {
  func.func @_enc_kernel(%arg0: memref<96x256xf32, #tpu.memory_space<vmem>>, %arg1: memref<256x128xf32, #tpu.memory_space<vmem>>, %arg2: memref<96x128xf32, #tpu.memory_space<vmem>>) attributes {dimension_semantics = [], scalar_prefetch = 0 : i64, scratch_operands = 0 : i64, tpu.core_type = #tpu.core_type<tc>} {
    %c0 = arith.constant 0 : index
    %c0_0 = arith.constant 0 : index
    %0 = vector.load %arg0[%c0, %c0_0] : memref<96x256xf32, #tpu.memory_space<vmem>>, vector<96x256xf32>
    %c0_1 = arith.constant 0 : index
    %c0_2 = arith.constant 0 : index
    %1 = vector.load %arg1[%c0_1, %c0_2] : memref<256x128xf32, #tpu.memory_space<vmem>>, vector<256x128xf32>
    %cst = arith.constant dense<0.000000e+00> : vector<96x128xf32>
    %2 = tpu.matmul %0, %1, %cst {dimension_numbers = #tpu.dot_dimension_numbers<[1], [0], [0], [1], [0, 0, 1, 1], [], []>} : vector<96x256xf32>, vector<256x128xf32>, vector<96x128xf32> -> vector<96x128xf32>
    %cst_3 = arith.constant 0.000000e+00 : f32
    %3 = vector.broadcast %cst_3 : f32 to vector<96x128xf32>
    %4 = arith.maximumf %2, %3 : vector<96x128xf32>
    %c0_4 = arith.constant 0 : index
    %c0_5 = arith.constant 0 : index
    %5 = vector.load %arg2[%c0_4, %c0_5] : memref<96x128xf32, #tpu.memory_space<vmem>>, vector<96x128xf32>
    tpu.vector_store %arg2[%c0_4, %c0_5], %4 {strides = array<i32>} : memref<96x128xf32, #tpu.memory_space<vmem>>, vector<96x128xf32>,
    return
  }
}

module attributes {stable_mosaic.version = 11 : i64} {
  func.func @_sim_dec1_kernel(%arg0: i32, %arg1: memref<1x6x6x128xf32, #tpu.memory_space<vmem>>, %arg2: memref<128x4xf32, #tpu.memory_space<vmem>>, %arg3: memref<1x4xf32, #tpu.memory_space<vmem>>, %arg4: memref<6x6x1xf32, #tpu.memory_space<vmem>>, %arg5: memref<9x4x256xf32, #tpu.memory_space<vmem>>, %arg6: memref<256x256xf32, #tpu.memory_space<vmem>>, %arg7: memref<1x256xf32, #tpu.memory_space<vmem>>, %arg8: memref<1x256xf32, #tpu.memory_space<vmem>>, %arg9: memref<1x4x4x256xf32, #tpu.memory_space<vmem>>) attributes {dimension_semantics = [#tpu.dimension_semantics<parallel>], iteration_bounds = array<i64: 2>, scalar_prefetch = 0 : i64, scratch_operands = 0 : i64, tpu.core_type = #tpu.core_type<tc>, window_params = [{transform_indices = @transform_0, window_bounds = array<i64: 1, 6, 6, 128>}, {pipeline_mode = #tpu.pipeline_mode<synchronous>, transform_indices = @transform_1, window_bounds = array<i64: 128, 4>}, {pipeline_mode = #tpu.pipeline_mode<synchronous>, transform_indices = @transform_2, window_bounds = array<i64: 1, 4>}, {pipeline_mode = #tpu.pipeline_mode<synchronous>, transform_indices = @transform_3, window_bounds = array<i64: 6, 6, 1>}, {pipeline_mode = #tpu.pipeline_mode<synchronous>, transform_indices = @transform_4, window_bounds = array<i64: 9, 4, 256>}, {pipeline_mode = #tpu.pipeline_mode<synchronous>, transform_indices = @transform_5, window_bounds = array<i64: 256, 256>}, {pipeline_mode = #tpu.pipeline_mode<synchronous>, transform_indices = @transform_6, window_bounds = array<i64: 1, 256>}, {pipeline_mode = #tpu.pipeline_mode<synchronous>, transform_indices = @transform_7, window_bounds = array<i64: 1, 256>}, {transform_indices = @transform_8, window_bounds = array<i64: 1, 4, 4, 256>}]} {
    %c0 = arith.constant 0 : index
    %c0_0 = arith.constant 0 : index
    %c0_1 = arith.constant 0 : index
    %c0_2 = arith.constant 0 : index
    %0 = vector.load %arg1[%c0, %c0_0, %c0_1, %c0_2] : memref<1x6x6x128xf32, #tpu.memory_space<vmem>>, vector<1x6x6x128xf32>
    %1 = vector.shape_cast %0 : vector<1x6x6x128xf32> to vector<6x6x128xf32>
    %2 = vector.shape_cast %1 : vector<6x6x128xf32> to vector<36x128xf32>
    %3 = arith.mulf %2, %2 : vector<36x128xf32>
    %cst = arith.constant dense<0.000000e+00> : vector<36xf32>
    %4 = vector.multi_reduction <add>, %3, %cst [1] : vector<36x128xf32> to vector<36xf32>
    %5 = vector.shape_cast %4 : vector<36xf32> to vector<36x1xf32>
    %c0_3 = arith.constant 0 : index
    %c0_4 = arith.constant 0 : index
    %6 = vector.load %arg2[%c0_3, %c0_4] : memref<128x4xf32, #tpu.memory_space<vmem>>, vector<128x4xf32>
    %cst_5 = arith.constant dense<0.000000e+00> : vector<36x4xf32>
    %7 = tpu.matmul %2, %6, %cst_5 {dimension_numbers = #tpu.dot_dimension_numbers<[1], [0], [0], [1], [0, 0, 1, 1], [], []>} : vector<36x128xf32>, vector<128x4xf32>, vector<36x4xf32> -> vector<36x4xf32>
    %c0_6 = arith.constant 0 : index
    %c0_7 = arith.constant 0 : index
    %8 = vector.load %arg3[%c0_6, %c0_7] : memref<1x4xf32, #tpu.memory_space<vmem>>, vector<1x4xf32>
    %9 = vector.broadcast %5 : vector<36x1xf32> to vector<36x4xf32>
    %10 = vector.broadcast %8 : vector<1x4xf32> to vector<36x4xf32>
    %11 = arith.addf %9, %10 : vector<36x4xf32>
    %cst_8 = arith.constant 2.000000e+00 : f32
    %12 = vector.broadcast %cst_8 : f32 to vector<36x4xf32>
    %13 = arith.mulf %12, %7 : vector<36x4xf32>
    %14 = arith.subf %11, %13 : vector<36x4xf32>
    %cst_9 = arith.constant 0.000000e+00 : f32
    %15 = vector.broadcast %cst_9 : f32 to vector<36x4xf32>
    %16 = arith.subf %15, %14 : vector<36x4xf32>
    %17 = vector.shape_cast %16 : vector<36x4xf32> to vector<6x6x4xf32>
    %c0_10 = arith.constant 0 : index
    %c0_11 = arith.constant 0 : index
    %c0_12 = arith.constant 0 : index
    %18 = vector.load %arg4[%c0_10, %c0_11, %c0_12] : memref<6x6x1xf32, #tpu.memory_space<vmem>>, vector<6x6x1xf32>
    %19 = vector.broadcast %18 : vector<6x6x1xf32> to vector<6x6x4xf32>
    %20 = arith.mulf %17, %19 : vector<6x6x4xf32>
    %cst_13 = arith.constant 0.000000e+00 : f32
    %21 = vector.broadcast %cst_13 : f32 to vector<16x256xf32>
    %22 = vector.extract_strided_slice %20 {offsets = [0, 0, 0], sizes = [4, 4, 4], strides = [1, 1, 1]} : vector<6x6x4xf32> to vector<4x4x4xf32>
    %23 = vector.shape_cast %22 : vector<4x4x4xf32> to vector<16x4xf32>
    %c0_14 = arith.constant 0 : index
    %c0_15 = arith.constant 0 : index
    %c0_16 = arith.constant 0 : index
    %24 = vector.load %arg5[%c0_14, %c0_15, %c0_16] : memref<9x4x256xf32, #tpu.memory_space<vmem>>, vector<1x4x256xf32>
    %25 = vector.shape_cast %24 : vector<1x4x256xf32> to vector<4x256xf32>
    %cst_17 = arith.constant dense<0.000000e+00> : vector<16x256xf32>
    %26 = tpu.matmul %23, %25, %cst_17 {dimension_numbers = #tpu.dot_dimension_numbers<[1], [0], [0], [1], [0, 0, 1, 1], [], []>} : vector<16x4xf32>, vector<4x256xf32>, vector<16x256xf32> -> vector<16x256xf32>
    %27 = arith.addf %21, %26 : vector<16x256xf32>
    %28 = vector.extract_strided_slice %20 {offsets = [0, 1, 0], sizes = [4, 4, 4], strides = [1, 1, 1]} : vector<6x6x4xf32> to vector<4x4x4xf32>
    %29 = vector.shape_cast %28 : vector<4x4x4xf32> to vector<16x4xf32>
    %c1 = arith.constant 1 : index
    %c0_18 = arith.constant 0 : index
    %c0_19 = arith.constant 0 : index
    %30 = vector.load %arg5[%c1, %c0_18, %c0_19] : memref<9x4x256xf32, #tpu.memory_space<vmem>>, vector<1x4x256xf32>
    %31 = vector.shape_cast %30 : vector<1x4x256xf32> to vector<4x256xf32>
    %cst_20 = arith.constant dense<0.000000e+00> : vector<16x256xf32>
    %32 = tpu.matmul %29, %31, %cst_20 {dimension_numbers = #tpu.dot_dimension_numbers<[1], [0], [0], [1], [0, 0, 1, 1], [], []>} : vector<16x4xf32>, vector<4x256xf32>, vector<16x256xf32> -> vector<16x256xf32>
    %33 = arith.addf %27, %32 : vector<16x256xf32>
    %34 = vector.extract_strided_slice %20 {offsets = [0, 2, 0], sizes = [4, 4, 4], strides = [1, 1, 1]} : vector<6x6x4xf32> to vector<4x4x4xf32>
    %35 = vector.shape_cast %34 : vector<4x4x4xf32> to vector<16x4xf32>
    %c2 = arith.constant 2 : index
    %c0_21 = arith.constant 0 : index
    %c0_22 = arith.constant 0 : index
    %36 = vector.load %arg5[%c2, %c0_21, %c0_22] : memref<9x4x256xf32, #tpu.memory_space<vmem>>, vector<1x4x256xf32>
    %37 = vector.shape_cast %36 : vector<1x4x256xf32> to vector<4x256xf32>
    %cst_23 = arith.constant dense<0.000000e+00> : vector<16x256xf32>
    %38 = tpu.matmul %35, %37, %cst_23 {dimension_numbers = #tpu.dot_dimension_numbers<[1], [0], [0], [1], [0, 0, 1, 1], [], []>} : vector<16x4xf32>, vector<4x256xf32>, vector<16x256xf32> -> vector<16x256xf32>
    %39 = arith.addf %33, %38 : vector<16x256xf32>
    %40 = vector.extract_strided_slice %20 {offsets = [1, 0, 0], sizes = [4, 4, 4], strides = [1, 1, 1]} : vector<6x6x4xf32> to vector<4x4x4xf32>
    %41 = vector.shape_cast %40 : vector<4x4x4xf32> to vector<16x4xf32>
    %c3 = arith.constant 3 : index
    %c0_24 = arith.constant 0 : index
    %c0_25 = arith.constant 0 : index
    %42 = vector.load %arg5[%c3, %c0_24, %c0_25] : memref<9x4x256xf32, #tpu.memory_space<vmem>>, vector<1x4x256xf32>
    %43 = vector.shape_cast %42 : vector<1x4x256xf32> to vector<4x256xf32>
    %cst_26 = arith.constant dense<0.000000e+00> : vector<16x256xf32>
    %44 = tpu.matmul %41, %43, %cst_26 {dimension_numbers = #tpu.dot_dimension_numbers<[1], [0], [0], [1], [0, 0, 1, 1], [], []>} : vector<16x4xf32>, vector<4x256xf32>, vector<16x256xf32> -> vector<16x256xf32>
    %45 = arith.addf %39, %44 : vector<16x256xf32>
    %46 = vector.extract_strided_slice %20 {offsets = [1, 1, 0], sizes = [4, 4, 4], strides = [1, 1, 1]} : vector<6x6x4xf32> to vector<4x4x4xf32>
    %47 = vector.shape_cast %46 : vector<4x4x4xf32> to vector<16x4xf32>
    %c4 = arith.constant 4 : index
    %c0_27 = arith.constant 0 : index
    %c0_28 = arith.constant 0 : index
    %48 = vector.load %arg5[%c4, %c0_27, %c0_28] : memref<9x4x256xf32, #tpu.memory_space<vmem>>, vector<1x4x256xf32>
    %49 = vector.shape_cast %48 : vector<1x4x256xf32> to vector<4x256xf32>
    %cst_29 = arith.constant dense<0.000000e+00> : vector<16x256xf32>
    %50 = tpu.matmul %47, %49, %cst_29 {dimension_numbers = #tpu.dot_dimension_numbers<[1], [0], [0], [1], [0, 0, 1, 1], [], []>} : vector<16x4xf32>, vector<4x256xf32>, vector<16x256xf32> -> vector<16x256xf32>
    %51 = arith.addf %45, %50 : vector<16x256xf32>
    %52 = vector.extract_strided_slice %20 {offsets = [1, 2, 0], sizes = [4, 4, 4], strides = [1, 1, 1]} : vector<6x6x4xf32> to vector<4x4x4xf32>
    %53 = vector.shape_cast %52 : vector<4x4x4xf32> to vector<16x4xf32>
    %c5 = arith.constant 5 : index
    %c0_30 = arith.constant 0 : index
    %c0_31 = arith.constant 0 : index
    %54 = vector.load %arg5[%c5, %c0_30, %c0_31] : memref<9x4x256xf32, #tpu.memory_space<vmem>>, vector<1x4x256xf32>
    %55 = vector.shape_cast %54 : vector<1x4x256xf32> to vector<4x256xf32>
    %cst_32 = arith.constant dense<0.000000e+00> : vector<16x256xf32>
    %56 = tpu.matmul %53, %55, %cst_32 {dimension_numbers = #tpu.dot_dimension_numbers<[1], [0], [0], [1], [0, 0, 1, 1], [], []>} : vector<16x4xf32>, vector<4x256xf32>, vector<16x256xf32> -> vector<16x256xf32>
    %57 = arith.addf %51, %56 : vector<16x256xf32>
    %58 = vector.extract_strided_slice %20 {offsets = [2, 0, 0], sizes = [4, 4, 4], strides = [1, 1, 1]} : vector<6x6x4xf32> to vector<4x4x4xf32>
    %59 = vector.shape_cast %58 : vector<4x4x4xf32> to vector<16x4xf32>
    %c6 = arith.constant 6 : index
    %c0_33 = arith.constant 0 : index
    %c0_34 = arith.constant 0 : index
    %60 = vector.load %arg5[%c6, %c0_33, %c0_34] : memref<9x4x256xf32, #tpu.memory_space<vmem>>, vector<1x4x256xf32>
    %61 = vector.shape_cast %60 : vector<1x4x256xf32> to vector<4x256xf32>
    %cst_35 = arith.constant dense<0.000000e+00> : vector<16x256xf32>
    %62 = tpu.matmul %59, %61, %cst_35 {dimension_numbers = #tpu.dot_dimension_numbers<[1], [0], [0], [1], [0, 0, 1, 1], [], []>} : vector<16x4xf32>, vector<4x256xf32>, vector<16x256xf32> -> vector<16x256xf32>
    %63 = arith.addf %57, %62 : vector<16x256xf32>
    %64 = vector.extract_strided_slice %20 {offsets = [2, 1, 0], sizes = [4, 4, 4], strides = [1, 1, 1]} : vector<6x6x4xf32> to vector<4x4x4xf32>
    %65 = vector.shape_cast %64 : vector<4x4x4xf32> to vector<16x4xf32>
    %c7 = arith.constant 7 : index
    %c0_36 = arith.constant 0 : index
    %c0_37 = arith.constant 0 : index
    %66 = vector.load %arg5[%c7, %c0_36, %c0_37] : memref<9x4x256xf32, #tpu.memory_space<vmem>>, vector<1x4x256xf32>
    %67 = vector.shape_cast %66 : vector<1x4x256xf32> to vector<4x256xf32>
    %cst_38 = arith.constant dense<0.000000e+00> : vector<16x256xf32>
    %68 = tpu.matmul %65, %67, %cst_38 {dimension_numbers = #tpu.dot_dimension_numbers<[1], [0], [0], [1], [0, 0, 1, 1], [], []>} : vector<16x4xf32>, vector<4x256xf32>, vector<16x256xf32> -> vector<16x256xf32>
    %69 = arith.addf %63, %68 : vector<16x256xf32>
    %70 = vector.extract_strided_slice %20 {offsets = [2, 2, 0], sizes = [4, 4, 4], strides = [1, 1, 1]} : vector<6x6x4xf32> to vector<4x4x4xf32>
    %71 = vector.shape_cast %70 : vector<4x4x4xf32> to vector<16x4xf32>
    %c8 = arith.constant 8 : index
    %c0_39 = arith.constant 0 : index
    %c0_40 = arith.constant 0 : index
    %72 = vector.load %arg5[%c8, %c0_39, %c0_40] : memref<9x4x256xf32, #tpu.memory_space<vmem>>, vector<1x4x256xf32>
    %73 = vector.shape_cast %72 : vector<1x4x256xf32> to vector<4x256xf32>
    %cst_41 = arith.constant dense<0.000000e+00> : vector<16x256xf32>
    %74 = tpu.matmul %71, %73, %cst_41 {dimension_numbers = #tpu.dot_dimension_numbers<[1], [0], [0], [1], [0, 0, 1, 1], [], []>} : vector<16x4xf32>, vector<4x256xf32>, vector<16x256xf32> -> vector<16x256xf32>
    %75 = arith.addf %69, %74 : vector<16x256xf32>
    %cst_42 = arith.constant dense<0.000000e+00> : vector<256xf32>
    %76 = vector.multi_reduction <add>, %75, %cst_42 [0] : vector<16x256xf32> to vector<256xf32>
    %77 = vector.shape_cast %76 : vector<256xf32> to vector<1x256xf32>
    %c0_43 = arith.constant 0 : index
    %c0_44 = arith.constant 0 : index
    %78 = vector.load %arg6[%c0_43, %c0_44] : memref<256x256xf32, #tpu.memory_space<vmem>>, vector<256x256xf32>
    %cst_45 = arith.constant dense<0.000000e+00> : vector<1x256xf32>
    %79 = tpu.matmul %77, %78, %cst_45 {dimension_numbers = #tpu.dot_dimension_numbers<[1], [0], [0], [1], [0, 0, 1, 1], [], []>} : vector<1x256xf32>, vector<256x256xf32>, vector<1x256xf32> -> vector<1x256xf32>
    %80 = vector.broadcast %79 : vector<1x256xf32> to vector<16x256xf32>
    %81 = arith.subf %75, %80 : vector<16x256xf32>
    %82 = arith.mulf %81, %81 : vector<16x256xf32>
    %cst_46 = arith.constant dense<0.000000e+00> : vector<256xf32>
    %83 = vector.multi_reduction <add>, %82, %cst_46 [0] : vector<16x256xf32> to vector<256xf32>
    %84 = vector.shape_cast %83 : vector<256xf32> to vector<1x256xf32>
    %c0_47 = arith.constant 0 : index
    %c0_48 = arith.constant 0 : index
    %85 = vector.load %arg6[%c0_47, %c0_48] : memref<256x256xf32, #tpu.memory_space<vmem>>, vector<256x256xf32>
    %cst_49 = arith.constant dense<0.000000e+00> : vector<1x256xf32>
    %86 = tpu.matmul %84, %85, %cst_49 {dimension_numbers = #tpu.dot_dimension_numbers<[1], [0], [0], [1], [0, 0, 1, 1], [], []>} : vector<1x256xf32>, vector<256x256xf32>, vector<1x256xf32> -> vector<1x256xf32>
    %cst_50 = arith.constant 9.99999974E-6 : f32
    %87 = vector.broadcast %cst_50 : f32 to vector<1x256xf32>
    %88 = arith.addf %86, %87 : vector<1x256xf32>
    %89 = math.rsqrt %88 : vector<1x256xf32>
    %90 = vector.broadcast %89 : vector<1x256xf32> to vector<16x256xf32>
    %91 = arith.mulf %81, %90 : vector<16x256xf32>
    %c0_51 = arith.constant 0 : index
    %c0_52 = arith.constant 0 : index
    %92 = vector.load %arg7[%c0_51, %c0_52] : memref<1x256xf32, #tpu.memory_space<vmem>>, vector<1x256xf32>
    %93 = vector.broadcast %92 : vector<1x256xf32> to vector<16x256xf32>
    %94 = arith.mulf %91, %93 : vector<16x256xf32>
    %c0_53 = arith.constant 0 : index
    %c0_54 = arith.constant 0 : index
    %95 = vector.load %arg8[%c0_53, %c0_54] : memref<1x256xf32, #tpu.memory_space<vmem>>, vector<1x256xf32>
    %96 = vector.broadcast %95 : vector<1x256xf32> to vector<16x256xf32>
    %97 = arith.addf %94, %96 : vector<16x256xf32>
    %cst_55 = arith.constant 0.000000e+00 : f32
    %98 = vector.broadcast %cst_55 : f32 to vector<16x256xf32>
    %99 = arith.maximumf %97, %98 : vector<16x256xf32>
    %100 = vector.shape_cast %99 : vector<16x256xf32> to vector<4x4x256xf32>
    %c0_56 = arith.constant 0 : index
    %c0_57 = arith.constant 0 : index
    %c0_58 = arith.constant 0 : index
    %c0_59 = arith.constant 0 : index
    %101 = vector.load %arg9[%c0_56, %c0_57, %c0_58, %c0_59] : memref<1x4x4x256xf32, #tpu.memory_space<vmem>>, vector<1x4x4x256xf32>
    %102 = vector.shape_cast %101 : vector<1x4x4x256xf32> to vector<4x4x256xf32>
    %103 = vector.shape_cast %100 : vector<4x4x256xf32> to vector<1x4x4x256xf32>
    tpu.vector_store %arg9[%c0_56, %c0_57, %c0_58, %c0_59], %103 {strides = array<i32>} : memref<1x4x4x256xf32, #tpu.memory_space<vmem>>, vector<1x4x4x256xf32>,
    return
  }
  func.func @transform_0(%arg0: i32) -> (i32, i32, i32, i32) {
    %c0_i32 = arith.constant 0 : i32
    %c0_i32_0 = arith.constant 0 : i32
    %c0_i32_1 = arith.constant 0 : i32
    %c0_i32_2 = arith.constant 0 : i32
    return %arg0, %c0_i32, %c0_i32_0, %c0_i32_1 : i32, i32, i32, i32
  }
  func.func @transform_1(%arg0: i32) -> (i32, i32) {
    %c0_i32 = arith.constant 0 : i32
    %c0_i32_0 = arith.constant 0 : i32
    %c0_i32_1 = arith.constant 0 : i32
    return %c0_i32, %c0_i32_0 : i32, i32
  }
  func.func @transform_2(%arg0: i32) -> (i32, i32) {
    %c0_i32 = arith.constant 0 : i32
    %c0_i32_0 = arith.constant 0 : i32
    %c0_i32_1 = arith.constant 0 : i32
    return %c0_i32, %c0_i32_0 : i32, i32
  }
  func.func @transform_3(%arg0: i32) -> (i32, i32, i32) {
    %c0_i32 = arith.constant 0 : i32
    %c0_i32_0 = arith.constant 0 : i32
    %c0_i32_1 = arith.constant 0 : i32
    %c0_i32_2 = arith.constant 0 : i32
    return %c0_i32, %c0_i32_0, %c0_i32_1 : i32, i32, i32
  }
  func.func @transform_4(%arg0: i32) -> (i32, i32, i32) {
    %c0_i32 = arith.constant 0 : i32
    %c0_i32_0 = arith.constant 0 : i32
    %c0_i32_1 = arith.constant 0 : i32
    %c0_i32_2 = arith.constant 0 : i32
    return %c0_i32, %c0_i32_0, %c0_i32_1 : i32, i32, i32
  }
  func.func @transform_5(%arg0: i32) -> (i32, i32) {
    %c0_i32 = arith.constant 0 : i32
    %c0_i32_0 = arith.constant 0 : i32
    %c0_i32_1 = arith.constant 0 : i32
    return %c0_i32, %c0_i32_0 : i32, i32
  }
  func.func @transform_6(%arg0: i32) -> (i32, i32) {
    %c0_i32 = arith.constant 0 : i32
    %c0_i32_0 = arith.constant 0 : i32
    %c0_i32_1 = arith.constant 0 : i32
    return %c0_i32, %c0_i32_0 : i32, i32
  }
  func.func @transform_7(%arg0: i32) -> (i32, i32) {
    %c0_i32 = arith.constant 0 : i32
    %c0_i32_0 = arith.constant 0 : i32
    %c0_i32_1 = arith.constant 0 : i32
    return %c0_i32, %c0_i32_0 : i32, i32
  }
  func.func @transform_8(%arg0: i32) -> (i32, i32, i32, i32) {
    %c0_i32 = arith.constant 0 : i32
    %c0_i32_0 = arith.constant 0 : i32
    %c0_i32_1 = arith.constant 0 : i32
    %c0_i32_2 = arith.constant 0 : i32
    return %arg0, %c0_i32, %c0_i32_0, %c0_i32_1 : i32, i32, i32, i32
  }
}

module attributes {stable_mosaic.version = 11 : i64} {
  func.func @_dec_stage_kernel(%arg0: i32, %arg1: memref<1x10x10x64xf32, #tpu.memory_space<vmem>>, %arg2: memref<9x64x128xf32, #tpu.memory_space<vmem>>, %arg3: memref<128x128xf32, #tpu.memory_space<vmem>>, %arg4: memref<1x128xf32, #tpu.memory_space<vmem>>, %arg5: memref<1x128xf32, #tpu.memory_space<vmem>>, %arg6: memref<1x8x8x128xf32, #tpu.memory_space<vmem>>) attributes {dimension_semantics = [#tpu.dimension_semantics<parallel>], iteration_bounds = array<i64: 2>, scalar_prefetch = 0 : i64, scratch_operands = 0 : i64, tpu.core_type = #tpu.core_type<tc>, window_params = [{transform_indices = @transform_0, window_bounds = array<i64: 1, 10, 10, 64>}, {pipeline_mode = #tpu.pipeline_mode<synchronous>, transform_indices = @transform_1, window_bounds = array<i64: 9, 64, 128>}, {pipeline_mode = #tpu.pipeline_mode<synchronous>, transform_indices = @transform_2, window_bounds = array<i64: 128, 128>}, {pipeline_mode = #tpu.pipeline_mode<synchronous>, transform_indices = @transform_3, window_bounds = array<i64: 1, 128>}, {pipeline_mode = #tpu.pipeline_mode<synchronous>, transform_indices = @transform_4, window_bounds = array<i64: 1, 128>}, {transform_indices = @transform_5, window_bounds = array<i64: 1, 8, 8, 128>}]} {
    %c0 = arith.constant 0 : index
    %c0_0 = arith.constant 0 : index
    %c0_1 = arith.constant 0 : index
    %c0_2 = arith.constant 0 : index
    %0 = vector.load %arg1[%c0, %c0_0, %c0_1, %c0_2] : memref<1x10x10x64xf32, #tpu.memory_space<vmem>>, vector<1x10x10x64xf32>
    %1 = vector.shape_cast %0 : vector<1x10x10x64xf32> to vector<10x10x64xf32>
    %cst = arith.constant 0.000000e+00 : f32
    %2 = vector.broadcast %cst : f32 to vector<64x128xf32>
    %3 = vector.extract_strided_slice %1 {offsets = [0, 0, 0], sizes = [8, 8, 64], strides = [1, 1, 1]} : vector<10x10x64xf32> to vector<8x8x64xf32>
    %4 = vector.shape_cast %3 : vector<8x8x64xf32> to vector<64x64xf32>
    %c0_3 = arith.constant 0 : index
    %c0_4 = arith.constant 0 : index
    %c0_5 = arith.constant 0 : index
    %5 = vector.load %arg2[%c0_3, %c0_4, %c0_5] : memref<9x64x128xf32, #tpu.memory_space<vmem>>, vector<1x64x128xf32>
    %6 = vector.shape_cast %5 : vector<1x64x128xf32> to vector<64x128xf32>
    %cst_6 = arith.constant dense<0.000000e+00> : vector<64x128xf32>
    %7 = tpu.matmul %4, %6, %cst_6 {dimension_numbers = #tpu.dot_dimension_numbers<[1], [0], [0], [1], [0, 0, 1, 1], [], []>} : vector<64x64xf32>, vector<64x128xf32>, vector<64x128xf32> -> vector<64x128xf32>
    %8 = arith.addf %2, %7 : vector<64x128xf32>
    %9 = vector.extract_strided_slice %1 {offsets = [0, 1, 0], sizes = [8, 8, 64], strides = [1, 1, 1]} : vector<10x10x64xf32> to vector<8x8x64xf32>
    %10 = vector.shape_cast %9 : vector<8x8x64xf32> to vector<64x64xf32>
    %c1 = arith.constant 1 : index
    %c0_7 = arith.constant 0 : index
    %c0_8 = arith.constant 0 : index
    %11 = vector.load %arg2[%c1, %c0_7, %c0_8] : memref<9x64x128xf32, #tpu.memory_space<vmem>>, vector<1x64x128xf32>
    %12 = vector.shape_cast %11 : vector<1x64x128xf32> to vector<64x128xf32>
    %cst_9 = arith.constant dense<0.000000e+00> : vector<64x128xf32>
    %13 = tpu.matmul %10, %12, %cst_9 {dimension_numbers = #tpu.dot_dimension_numbers<[1], [0], [0], [1], [0, 0, 1, 1], [], []>} : vector<64x64xf32>, vector<64x128xf32>, vector<64x128xf32> -> vector<64x128xf32>
    %14 = arith.addf %8, %13 : vector<64x128xf32>
    %15 = vector.extract_strided_slice %1 {offsets = [0, 2, 0], sizes = [8, 8, 64], strides = [1, 1, 1]} : vector<10x10x64xf32> to vector<8x8x64xf32>
    %16 = vector.shape_cast %15 : vector<8x8x64xf32> to vector<64x64xf32>
    %c2 = arith.constant 2 : index
    %c0_10 = arith.constant 0 : index
    %c0_11 = arith.constant 0 : index
    %17 = vector.load %arg2[%c2, %c0_10, %c0_11] : memref<9x64x128xf32, #tpu.memory_space<vmem>>, vector<1x64x128xf32>
    %18 = vector.shape_cast %17 : vector<1x64x128xf32> to vector<64x128xf32>
    %cst_12 = arith.constant dense<0.000000e+00> : vector<64x128xf32>
    %19 = tpu.matmul %16, %18, %cst_12 {dimension_numbers = #tpu.dot_dimension_numbers<[1], [0], [0], [1], [0, 0, 1, 1], [], []>} : vector<64x64xf32>, vector<64x128xf32>, vector<64x128xf32> -> vector<64x128xf32>
    %20 = arith.addf %14, %19 : vector<64x128xf32>
    %21 = vector.extract_strided_slice %1 {offsets = [1, 0, 0], sizes = [8, 8, 64], strides = [1, 1, 1]} : vector<10x10x64xf32> to vector<8x8x64xf32>
    %22 = vector.shape_cast %21 : vector<8x8x64xf32> to vector<64x64xf32>
    %c3 = arith.constant 3 : index
    %c0_13 = arith.constant 0 : index
    %c0_14 = arith.constant 0 : index
    %23 = vector.load %arg2[%c3, %c0_13, %c0_14] : memref<9x64x128xf32, #tpu.memory_space<vmem>>, vector<1x64x128xf32>
    %24 = vector.shape_cast %23 : vector<1x64x128xf32> to vector<64x128xf32>
    %cst_15 = arith.constant dense<0.000000e+00> : vector<64x128xf32>
    %25 = tpu.matmul %22, %24, %cst_15 {dimension_numbers = #tpu.dot_dimension_numbers<[1], [0], [0], [1], [0, 0, 1, 1], [], []>} : vector<64x64xf32>, vector<64x128xf32>, vector<64x128xf32> -> vector<64x128xf32>
    %26 = arith.addf %20, %25 : vector<64x128xf32>
    %27 = vector.extract_strided_slice %1 {offsets = [1, 1, 0], sizes = [8, 8, 64], strides = [1, 1, 1]} : vector<10x10x64xf32> to vector<8x8x64xf32>
    %28 = vector.shape_cast %27 : vector<8x8x64xf32> to vector<64x64xf32>
    %c4 = arith.constant 4 : index
    %c0_16 = arith.constant 0 : index
    %c0_17 = arith.constant 0 : index
    %29 = vector.load %arg2[%c4, %c0_16, %c0_17] : memref<9x64x128xf32, #tpu.memory_space<vmem>>, vector<1x64x128xf32>
    %30 = vector.shape_cast %29 : vector<1x64x128xf32> to vector<64x128xf32>
    %cst_18 = arith.constant dense<0.000000e+00> : vector<64x128xf32>
    %31 = tpu.matmul %28, %30, %cst_18 {dimension_numbers = #tpu.dot_dimension_numbers<[1], [0], [0], [1], [0, 0, 1, 1], [], []>} : vector<64x64xf32>, vector<64x128xf32>, vector<64x128xf32> -> vector<64x128xf32>
    %32 = arith.addf %26, %31 : vector<64x128xf32>
    %33 = vector.extract_strided_slice %1 {offsets = [1, 2, 0], sizes = [8, 8, 64], strides = [1, 1, 1]} : vector<10x10x64xf32> to vector<8x8x64xf32>
    %34 = vector.shape_cast %33 : vector<8x8x64xf32> to vector<64x64xf32>
    %c5 = arith.constant 5 : index
    %c0_19 = arith.constant 0 : index
    %c0_20 = arith.constant 0 : index
    %35 = vector.load %arg2[%c5, %c0_19, %c0_20] : memref<9x64x128xf32, #tpu.memory_space<vmem>>, vector<1x64x128xf32>
    %36 = vector.shape_cast %35 : vector<1x64x128xf32> to vector<64x128xf32>
    %cst_21 = arith.constant dense<0.000000e+00> : vector<64x128xf32>
    %37 = tpu.matmul %34, %36, %cst_21 {dimension_numbers = #tpu.dot_dimension_numbers<[1], [0], [0], [1], [0, 0, 1, 1], [], []>} : vector<64x64xf32>, vector<64x128xf32>, vector<64x128xf32> -> vector<64x128xf32>
    %38 = arith.addf %32, %37 : vector<64x128xf32>
    %39 = vector.extract_strided_slice %1 {offsets = [2, 0, 0], sizes = [8, 8, 64], strides = [1, 1, 1]} : vector<10x10x64xf32> to vector<8x8x64xf32>
    %40 = vector.shape_cast %39 : vector<8x8x64xf32> to vector<64x64xf32>
    %c6 = arith.constant 6 : index
    %c0_22 = arith.constant 0 : index
    %c0_23 = arith.constant 0 : index
    %41 = vector.load %arg2[%c6, %c0_22, %c0_23] : memref<9x64x128xf32, #tpu.memory_space<vmem>>, vector<1x64x128xf32>
    %42 = vector.shape_cast %41 : vector<1x64x128xf32> to vector<64x128xf32>
    %cst_24 = arith.constant dense<0.000000e+00> : vector<64x128xf32>
    %43 = tpu.matmul %40, %42, %cst_24 {dimension_numbers = #tpu.dot_dimension_numbers<[1], [0], [0], [1], [0, 0, 1, 1], [], []>} : vector<64x64xf32>, vector<64x128xf32>, vector<64x128xf32> -> vector<64x128xf32>
    %44 = arith.addf %38, %43 : vector<64x128xf32>
    %45 = vector.extract_strided_slice %1 {offsets = [2, 1, 0], sizes = [8, 8, 64], strides = [1, 1, 1]} : vector<10x10x64xf32> to vector<8x8x64xf32>
    %46 = vector.shape_cast %45 : vector<8x8x64xf32> to vector<64x64xf32>
    %c7 = arith.constant 7 : index
    %c0_25 = arith.constant 0 : index
    %c0_26 = arith.constant 0 : index
    %47 = vector.load %arg2[%c7, %c0_25, %c0_26] : memref<9x64x128xf32, #tpu.memory_space<vmem>>, vector<1x64x128xf32>
    %48 = vector.shape_cast %47 : vector<1x64x128xf32> to vector<64x128xf32>
    %cst_27 = arith.constant dense<0.000000e+00> : vector<64x128xf32>
    %49 = tpu.matmul %46, %48, %cst_27 {dimension_numbers = #tpu.dot_dimension_numbers<[1], [0], [0], [1], [0, 0, 1, 1], [], []>} : vector<64x64xf32>, vector<64x128xf32>, vector<64x128xf32> -> vector<64x128xf32>
    %50 = arith.addf %44, %49 : vector<64x128xf32>
    %51 = vector.extract_strided_slice %1 {offsets = [2, 2, 0], sizes = [8, 8, 64], strides = [1, 1, 1]} : vector<10x10x64xf32> to vector<8x8x64xf32>
    %52 = vector.shape_cast %51 : vector<8x8x64xf32> to vector<64x64xf32>
    %c8 = arith.constant 8 : index
    %c0_28 = arith.constant 0 : index
    %c0_29 = arith.constant 0 : index
    %53 = vector.load %arg2[%c8, %c0_28, %c0_29] : memref<9x64x128xf32, #tpu.memory_space<vmem>>, vector<1x64x128xf32>
    %54 = vector.shape_cast %53 : vector<1x64x128xf32> to vector<64x128xf32>
    %cst_30 = arith.constant dense<0.000000e+00> : vector<64x128xf32>
    %55 = tpu.matmul %52, %54, %cst_30 {dimension_numbers = #tpu.dot_dimension_numbers<[1], [0], [0], [1], [0, 0, 1, 1], [], []>} : vector<64x64xf32>, vector<64x128xf32>, vector<64x128xf32> -> vector<64x128xf32>
    %56 = arith.addf %50, %55 : vector<64x128xf32>
    %cst_31 = arith.constant dense<0.000000e+00> : vector<128xf32>
    %57 = vector.multi_reduction <add>, %56, %cst_31 [0] : vector<64x128xf32> to vector<128xf32>
    %58 = vector.shape_cast %57 : vector<128xf32> to vector<1x128xf32>
    %c0_32 = arith.constant 0 : index
    %c0_33 = arith.constant 0 : index
    %59 = vector.load %arg3[%c0_32, %c0_33] : memref<128x128xf32, #tpu.memory_space<vmem>>, vector<128x128xf32>
    %cst_34 = arith.constant dense<0.000000e+00> : vector<1x128xf32>
    %60 = tpu.matmul %58, %59, %cst_34 {dimension_numbers = #tpu.dot_dimension_numbers<[1], [0], [0], [1], [0, 0, 1, 1], [], []>} : vector<1x128xf32>, vector<128x128xf32>, vector<1x128xf32> -> vector<1x128xf32>
    %61 = vector.broadcast %60 : vector<1x128xf32> to vector<64x128xf32>
    %62 = arith.subf %56, %61 : vector<64x128xf32>
    %63 = arith.mulf %62, %62 : vector<64x128xf32>
    %cst_35 = arith.constant dense<0.000000e+00> : vector<128xf32>
    %64 = vector.multi_reduction <add>, %63, %cst_35 [0] : vector<64x128xf32> to vector<128xf32>
    %65 = vector.shape_cast %64 : vector<128xf32> to vector<1x128xf32>
    %c0_36 = arith.constant 0 : index
    %c0_37 = arith.constant 0 : index
    %66 = vector.load %arg3[%c0_36, %c0_37] : memref<128x128xf32, #tpu.memory_space<vmem>>, vector<128x128xf32>
    %cst_38 = arith.constant dense<0.000000e+00> : vector<1x128xf32>
    %67 = tpu.matmul %65, %66, %cst_38 {dimension_numbers = #tpu.dot_dimension_numbers<[1], [0], [0], [1], [0, 0, 1, 1], [], []>} : vector<1x128xf32>, vector<128x128xf32>, vector<1x128xf32> -> vector<1x128xf32>
    %cst_39 = arith.constant 9.99999974E-6 : f32
    %68 = vector.broadcast %cst_39 : f32 to vector<1x128xf32>
    %69 = arith.addf %67, %68 : vector<1x128xf32>
    %70 = math.rsqrt %69 : vector<1x128xf32>
    %71 = vector.broadcast %70 : vector<1x128xf32> to vector<64x128xf32>
    %72 = arith.mulf %62, %71 : vector<64x128xf32>
    %c0_40 = arith.constant 0 : index
    %c0_41 = arith.constant 0 : index
    %73 = vector.load %arg4[%c0_40, %c0_41] : memref<1x128xf32, #tpu.memory_space<vmem>>, vector<1x128xf32>
    %74 = vector.broadcast %73 : vector<1x128xf32> to vector<64x128xf32>
    %75 = arith.mulf %72, %74 : vector<64x128xf32>
    %c0_42 = arith.constant 0 : index
    %c0_43 = arith.constant 0 : index
    %76 = vector.load %arg5[%c0_42, %c0_43] : memref<1x128xf32, #tpu.memory_space<vmem>>, vector<1x128xf32>
    %77 = vector.broadcast %76 : vector<1x128xf32> to vector<64x128xf32>
    %78 = arith.addf %75, %77 : vector<64x128xf32>
    %cst_44 = arith.constant 0.000000e+00 : f32
    %79 = vector.broadcast %cst_44 : f32 to vector<64x128xf32>
    %80 = arith.maximumf %78, %79 : vector<64x128xf32>
    %81 = vector.shape_cast %80 : vector<64x128xf32> to vector<8x8x128xf32>
    %c0_45 = arith.constant 0 : index
    %c0_46 = arith.constant 0 : index
    %c0_47 = arith.constant 0 : index
    %c0_48 = arith.constant 0 : index
    %82 = vector.load %arg6[%c0_45, %c0_46, %c0_47, %c0_48] : memref<1x8x8x128xf32, #tpu.memory_space<vmem>>, vector<1x8x8x128xf32>
    %83 = vector.shape_cast %82 : vector<1x8x8x128xf32> to vector<8x8x128xf32>
    %84 = vector.shape_cast %81 : vector<8x8x128xf32> to vector<1x8x8x128xf32>
    tpu.vector_store %arg6[%c0_45, %c0_46, %c0_47, %c0_48], %84 {strides = array<i32>} : memref<1x8x8x128xf32, #tpu.memory_space<vmem>>, vector<1x8x8x128xf32>,
    return
  }
  func.func @transform_0(%arg0: i32) -> (i32, i32, i32, i32) {
    %c0_i32 = arith.constant 0 : i32
    %c0_i32_0 = arith.constant 0 : i32
    %c0_i32_1 = arith.constant 0 : i32
    %c0_i32_2 = arith.constant 0 : i32
    return %arg0, %c0_i32, %c0_i32_0, %c0_i32_1 : i32, i32, i32, i32
  }
  func.func @transform_1(%arg0: i32) -> (i32, i32, i32) {
    %c0_i32 = arith.constant 0 : i32
    %c0_i32_0 = arith.constant 0 : i32
    %c0_i32_1 = arith.constant 0 : i32
    %c0_i32_2 = arith.constant 0 : i32
    return %c0_i32, %c0_i32_0, %c0_i32_1 : i32, i32, i32
  }
  func.func @transform_2(%arg0: i32) -> (i32, i32) {
    %c0_i32 = arith.constant 0 : i32
    %c0_i32_0 = arith.constant 0 : i32
    %c0_i32_1 = arith.constant 0 : i32
    return %c0_i32, %c0_i32_0 : i32, i32
  }
  func.func @transform_3(%arg0: i32) -> (i32, i32) {
    %c0_i32 = arith.constant 0 : i32
    %c0_i32_0 = arith.constant 0 : i32
    %c0_i32_1 = arith.constant 0 : i32
    return %c0_i32, %c0_i32_0 : i32, i32
  }
  func.func @transform_4(%arg0: i32) -> (i32, i32) {
    %c0_i32 = arith.constant 0 : i32
    %c0_i32_0 = arith.constant 0 : i32
    %c0_i32_1 = arith.constant 0 : i32
    return %c0_i32, %c0_i32_0 : i32, i32
  }
  func.func @transform_5(%arg0: i32) -> (i32, i32, i32, i32) {
    %c0_i32 = arith.constant 0 : i32
    %c0_i32_0 = arith.constant 0 : i32
    %c0_i32_1 = arith.constant 0 : i32
    %c0_i32_2 = arith.constant 0 : i32
    return %arg0, %c0_i32, %c0_i32_0, %c0_i32_1 : i32, i32, i32, i32
  }
}

module attributes {stable_mosaic.version = 11 : i64} {
  func.func @_dec_stage_kernel(%arg0: i32, %arg1: memref<1x18x18x32xf32, #tpu.memory_space<vmem>>, %arg2: memref<9x32x16xf32, #tpu.memory_space<vmem>>, %arg3: memref<1x16x16x16xf32, #tpu.memory_space<vmem>>) attributes {dimension_semantics = [#tpu.dimension_semantics<parallel>], iteration_bounds = array<i64: 2>, scalar_prefetch = 0 : i64, scratch_operands = 0 : i64, tpu.core_type = #tpu.core_type<tc>, window_params = [{transform_indices = @transform_0, window_bounds = array<i64: 1, 18, 18, 32>}, {pipeline_mode = #tpu.pipeline_mode<synchronous>, transform_indices = @transform_1, window_bounds = array<i64: 9, 32, 16>}, {transform_indices = @transform_2, window_bounds = array<i64: 1, 16, 16, 16>}]} {
    %c0 = arith.constant 0 : index
    %c0_0 = arith.constant 0 : index
    %c0_1 = arith.constant 0 : index
    %c0_2 = arith.constant 0 : index
    %0 = vector.load %arg1[%c0, %c0_0, %c0_1, %c0_2] : memref<1x18x18x32xf32, #tpu.memory_space<vmem>>, vector<1x18x18x32xf32>
    %1 = vector.shape_cast %0 : vector<1x18x18x32xf32> to vector<18x18x32xf32>
    %cst = arith.constant 0.000000e+00 : f32
    %2 = vector.broadcast %cst : f32 to vector<256x16xf32>
    %3 = vector.extract_strided_slice %1 {offsets = [0, 0, 0], sizes = [16, 16, 32], strides = [1, 1, 1]} : vector<18x18x32xf32> to vector<16x16x32xf32>
    %4 = vector.shape_cast %3 : vector<16x16x32xf32> to vector<256x32xf32>
    %c0_3 = arith.constant 0 : index
    %c0_4 = arith.constant 0 : index
    %c0_5 = arith.constant 0 : index
    %5 = vector.load %arg2[%c0_3, %c0_4, %c0_5] : memref<9x32x16xf32, #tpu.memory_space<vmem>>, vector<1x32x16xf32>
    %6 = vector.shape_cast %5 : vector<1x32x16xf32> to vector<32x16xf32>
    %cst_6 = arith.constant dense<0.000000e+00> : vector<256x16xf32>
    %7 = tpu.matmul %4, %6, %cst_6 {dimension_numbers = #tpu.dot_dimension_numbers<[1], [0], [0], [1], [0, 0, 1, 1], [], []>} : vector<256x32xf32>, vector<32x16xf32>, vector<256x16xf32> -> vector<256x16xf32>
    %8 = arith.addf %2, %7 : vector<256x16xf32>
    %9 = vector.extract_strided_slice %1 {offsets = [0, 1, 0], sizes = [16, 16, 32], strides = [1, 1, 1]} : vector<18x18x32xf32> to vector<16x16x32xf32>
    %10 = vector.shape_cast %9 : vector<16x16x32xf32> to vector<256x32xf32>
    %c1 = arith.constant 1 : index
    %c0_7 = arith.constant 0 : index
    %c0_8 = arith.constant 0 : index
    %11 = vector.load %arg2[%c1, %c0_7, %c0_8] : memref<9x32x16xf32, #tpu.memory_space<vmem>>, vector<1x32x16xf32>
    %12 = vector.shape_cast %11 : vector<1x32x16xf32> to vector<32x16xf32>
    %cst_9 = arith.constant dense<0.000000e+00> : vector<256x16xf32>
    %13 = tpu.matmul %10, %12, %cst_9 {dimension_numbers = #tpu.dot_dimension_numbers<[1], [0], [0], [1], [0, 0, 1, 1], [], []>} : vector<256x32xf32>, vector<32x16xf32>, vector<256x16xf32> -> vector<256x16xf32>
    %14 = arith.addf %8, %13 : vector<256x16xf32>
    %15 = vector.extract_strided_slice %1 {offsets = [0, 2, 0], sizes = [16, 16, 32], strides = [1, 1, 1]} : vector<18x18x32xf32> to vector<16x16x32xf32>
    %16 = vector.shape_cast %15 : vector<16x16x32xf32> to vector<256x32xf32>
    %c2 = arith.constant 2 : index
    %c0_10 = arith.constant 0 : index
    %c0_11 = arith.constant 0 : index
    %17 = vector.load %arg2[%c2, %c0_10, %c0_11] : memref<9x32x16xf32, #tpu.memory_space<vmem>>, vector<1x32x16xf32>
    %18 = vector.shape_cast %17 : vector<1x32x16xf32> to vector<32x16xf32>
    %cst_12 = arith.constant dense<0.000000e+00> : vector<256x16xf32>
    %19 = tpu.matmul %16, %18, %cst_12 {dimension_numbers = #tpu.dot_dimension_numbers<[1], [0], [0], [1], [0, 0, 1, 1], [], []>} : vector<256x32xf32>, vector<32x16xf32>, vector<256x16xf32> -> vector<256x16xf32>
    %20 = arith.addf %14, %19 : vector<256x16xf32>
    %21 = vector.extract_strided_slice %1 {offsets = [1, 0, 0], sizes = [16, 16, 32], strides = [1, 1, 1]} : vector<18x18x32xf32> to vector<16x16x32xf32>
    %22 = vector.shape_cast %21 : vector<16x16x32xf32> to vector<256x32xf32>
    %c3 = arith.constant 3 : index
    %c0_13 = arith.constant 0 : index
    %c0_14 = arith.constant 0 : index
    %23 = vector.load %arg2[%c3, %c0_13, %c0_14] : memref<9x32x16xf32, #tpu.memory_space<vmem>>, vector<1x32x16xf32>
    %24 = vector.shape_cast %23 : vector<1x32x16xf32> to vector<32x16xf32>
    %cst_15 = arith.constant dense<0.000000e+00> : vector<256x16xf32>
    %25 = tpu.matmul %22, %24, %cst_15 {dimension_numbers = #tpu.dot_dimension_numbers<[1], [0], [0], [1], [0, 0, 1, 1], [], []>} : vector<256x32xf32>, vector<32x16xf32>, vector<256x16xf32> -> vector<256x16xf32>
    %26 = arith.addf %20, %25 : vector<256x16xf32>
    %27 = vector.extract_strided_slice %1 {offsets = [1, 1, 0], sizes = [16, 16, 32], strides = [1, 1, 1]} : vector<18x18x32xf32> to vector<16x16x32xf32>
    %28 = vector.shape_cast %27 : vector<16x16x32xf32> to vector<256x32xf32>
    %c4 = arith.constant 4 : index
    %c0_16 = arith.constant 0 : index
    %c0_17 = arith.constant 0 : index
    %29 = vector.load %arg2[%c4, %c0_16, %c0_17] : memref<9x32x16xf32, #tpu.memory_space<vmem>>, vector<1x32x16xf32>
    %30 = vector.shape_cast %29 : vector<1x32x16xf32> to vector<32x16xf32>
    %cst_18 = arith.constant dense<0.000000e+00> : vector<256x16xf32>
    %31 = tpu.matmul %28, %30, %cst_18 {dimension_numbers = #tpu.dot_dimension_numbers<[1], [0], [0], [1], [0, 0, 1, 1], [], []>} : vector<256x32xf32>, vector<32x16xf32>, vector<256x16xf32> -> vector<256x16xf32>
    %32 = arith.addf %26, %31 : vector<256x16xf32>
    %33 = vector.extract_strided_slice %1 {offsets = [1, 2, 0], sizes = [16, 16, 32], strides = [1, 1, 1]} : vector<18x18x32xf32> to vector<16x16x32xf32>
    %34 = vector.shape_cast %33 : vector<16x16x32xf32> to vector<256x32xf32>
    %c5 = arith.constant 5 : index
    %c0_19 = arith.constant 0 : index
    %c0_20 = arith.constant 0 : index
    %35 = vector.load %arg2[%c5, %c0_19, %c0_20] : memref<9x32x16xf32, #tpu.memory_space<vmem>>, vector<1x32x16xf32>
    %36 = vector.shape_cast %35 : vector<1x32x16xf32> to vector<32x16xf32>
    %cst_21 = arith.constant dense<0.000000e+00> : vector<256x16xf32>
    %37 = tpu.matmul %34, %36, %cst_21 {dimension_numbers = #tpu.dot_dimension_numbers<[1], [0], [0], [1], [0, 0, 1, 1], [], []>} : vector<256x32xf32>, vector<32x16xf32>, vector<256x16xf32> -> vector<256x16xf32>
    %38 = arith.addf %32, %37 : vector<256x16xf32>
    %39 = vector.extract_strided_slice %1 {offsets = [2, 0, 0], sizes = [16, 16, 32], strides = [1, 1, 1]} : vector<18x18x32xf32> to vector<16x16x32xf32>
    %40 = vector.shape_cast %39 : vector<16x16x32xf32> to vector<256x32xf32>
    %c6 = arith.constant 6 : index
    %c0_22 = arith.constant 0 : index
    %c0_23 = arith.constant 0 : index
    %41 = vector.load %arg2[%c6, %c0_22, %c0_23] : memref<9x32x16xf32, #tpu.memory_space<vmem>>, vector<1x32x16xf32>
    %42 = vector.shape_cast %41 : vector<1x32x16xf32> to vector<32x16xf32>
    %cst_24 = arith.constant dense<0.000000e+00> : vector<256x16xf32>
    %43 = tpu.matmul %40, %42, %cst_24 {dimension_numbers = #tpu.dot_dimension_numbers<[1], [0], [0], [1], [0, 0, 1, 1], [], []>} : vector<256x32xf32>, vector<32x16xf32>, vector<256x16xf32> -> vector<256x16xf32>
    %44 = arith.addf %38, %43 : vector<256x16xf32>
    %45 = vector.extract_strided_slice %1 {offsets = [2, 1, 0], sizes = [16, 16, 32], strides = [1, 1, 1]} : vector<18x18x32xf32> to vector<16x16x32xf32>
    %46 = vector.shape_cast %45 : vector<16x16x32xf32> to vector<256x32xf32>
    %c7 = arith.constant 7 : index
    %c0_25 = arith.constant 0 : index
    %c0_26 = arith.constant 0 : index
    %47 = vector.load %arg2[%c7, %c0_25, %c0_26] : memref<9x32x16xf32, #tpu.memory_space<vmem>>, vector<1x32x16xf32>
    %48 = vector.shape_cast %47 : vector<1x32x16xf32> to vector<32x16xf32>
    %cst_27 = arith.constant dense<0.000000e+00> : vector<256x16xf32>
    %49 = tpu.matmul %46, %48, %cst_27 {dimension_numbers = #tpu.dot_dimension_numbers<[1], [0], [0], [1], [0, 0, 1, 1], [], []>} : vector<256x32xf32>, vector<32x16xf32>, vector<256x16xf32> -> vector<256x16xf32>
    %50 = arith.addf %44, %49 : vector<256x16xf32>
    %51 = vector.extract_strided_slice %1 {offsets = [2, 2, 0], sizes = [16, 16, 32], strides = [1, 1, 1]} : vector<18x18x32xf32> to vector<16x16x32xf32>
    %52 = vector.shape_cast %51 : vector<16x16x32xf32> to vector<256x32xf32>
    %c8 = arith.constant 8 : index
    %c0_28 = arith.constant 0 : index
    %c0_29 = arith.constant 0 : index
    %53 = vector.load %arg2[%c8, %c0_28, %c0_29] : memref<9x32x16xf32, #tpu.memory_space<vmem>>, vector<1x32x16xf32>
    %54 = vector.shape_cast %53 : vector<1x32x16xf32> to vector<32x16xf32>
    %cst_30 = arith.constant dense<0.000000e+00> : vector<256x16xf32>
    %55 = tpu.matmul %52, %54, %cst_30 {dimension_numbers = #tpu.dot_dimension_numbers<[1], [0], [0], [1], [0, 0, 1, 1], [], []>} : vector<256x32xf32>, vector<32x16xf32>, vector<256x16xf32> -> vector<256x16xf32>
    %56 = arith.addf %50, %55 : vector<256x16xf32>
    %57 = vector.shape_cast %56 : vector<256x16xf32> to vector<16x16x16xf32>
    %c0_31 = arith.constant 0 : index
    %c0_32 = arith.constant 0 : index
    %c0_33 = arith.constant 0 : index
    %c0_34 = arith.constant 0 : index
    %58 = vector.load %arg3[%c0_31, %c0_32, %c0_33, %c0_34] : memref<1x16x16x16xf32, #tpu.memory_space<vmem>>, vector<1x16x16x16xf32>
    %59 = vector.shape_cast %58 : vector<1x16x16x16xf32> to vector<16x16x16xf32>
    %60 = vector.shape_cast %57 : vector<16x16x16xf32> to vector<1x16x16x16xf32>
    tpu.vector_store %arg3[%c0_31, %c0_32, %c0_33, %c0_34], %60 {strides = array<i32>} : memref<1x16x16x16xf32, #tpu.memory_space<vmem>>, vector<1x16x16x16xf32>,
    return
  }
  func.func @transform_0(%arg0: i32) -> (i32, i32, i32, i32) {
    %c0_i32 = arith.constant 0 : i32
    %c0_i32_0 = arith.constant 0 : i32
    %c0_i32_1 = arith.constant 0 : i32
    %c0_i32_2 = arith.constant 0 : i32
    return %arg0, %c0_i32, %c0_i32_0, %c0_i32_1 : i32, i32, i32, i32
  }
  func.func @transform_1(%arg0: i32) -> (i32, i32, i32) {
    %c0_i32 = arith.constant 0 : i32
    %c0_i32_0 = arith.constant 0 : i32
    %c0_i32_1 = arith.constant 0 : i32
    %c0_i32_2 = arith.constant 0 : i32
    return %c0_i32, %c0_i32_0, %c0_i32_1 : i32, i32, i32
  }
  func.func @transform_2(%arg0: i32) -> (i32, i32, i32, i32) {
    %c0_i32 = arith.constant 0 : i32
    %c0_i32_0 = arith.constant 0 : i32
    %c0_i32_1 = arith.constant 0 : i32
    %c0_i32_2 = arith.constant 0 : i32
    return %arg0, %c0_i32, %c0_i32_0, %c0_i32_1 : i32, i32, i32, i32
  }
}

</mosaic_0001>

<bundles_post_ra>
// kernel: protonet_forward.4
= control target key start
LH: loop header
LB: loop body
LE: loop exit
PB: predicated region body
PF: predicated region fallthrough
CT: control target
= control target key end

     0   :  { %s555_s1 = inlined_call_operand.vmem [shape: f32[256,128], index: 1, kind: input, shape index: {}]   ;;  %s556_s0 = inlined_call_operand.vmem [shape: f32[96,256], index: 0, kind: input, shape index: {}]   ;;  %s557_s2 = inlined_call_operand.vmem [shape: f32[96,128], index: 2, kind: output, shape index: {}]  }
   0x1   :  { %v51_v0 = vld [vmem:[%s555_s1 + $0x80] sm:$0xff]  ;;  %v52_v1 = vld [vmem:[%s555_s1 + $0x88] sm:$0xff]  ;;  %v53_v5 = vld [vmem:[%s555_s1 + $0x90] sm:$0xff] }
   0x2   :  { %v35_v2 = vld [vmem:[%s555_s1] sm:$0xff]  ;;  %v288_v3 = vpack.c.bf16 %v52_v1, %v51_v0  ;;  %v36_v4 = vld [vmem:[%s555_s1 + $0x8] sm:$0xff]  ;;  %v54_v6 = vld [vmem:[%s555_s1 + $0x98] sm:$0xff] }
   0x3   :  { %v290_v7 = vpack.c.bf16 %v36_v4, %v35_v2  ;;  %v292_v8 = vpack.c.bf16 %v54_v6, %v53_v5  ;;  %v37_v9 = vld [vmem:[%s555_s1 + $0x10] sm:$0xff]  ;;  %v38_v10 = vld [vmem:[%s555_s1 + $0x18] sm:$0xff]  ;;  %v55_v11 = vld [vmem:[%s555_s1 + $0xa0] sm:$0xff] }
   0x4   :  { %289 = vmatprep.subr.bf16.mxu0 %v288_v3  ;;  %320 = vmatprep.subr.bf16.mxu1 %v288_v3  ;;  %v56_v12 = vld [vmem:[%s555_s1 + $0xa8] sm:$0xff]  ;;  %v294_v13 = vpack.c.bf16 %v38_v10, %v37_v9  ;;  %v39_v15 = vld [vmem:[%s555_s1 + $0x20] sm:$0xff]  ;;  %v57_v17 = vld [vmem:[%s555_s1 + $0xb0] sm:$0xff] }
   0x5   :  { %291 = vmatpush3.bf16.msra.mxu0 %v290_v7  ;;  %328 = vmatpush3.bf16.msra.mxu1 %v290_v7  ;;  %v296_v14 = vpack.c.bf16 %v56_v12, %v55_v11  ;;  %v40_v16 = vld [vmem:[%s555_s1 + $0x28] sm:$0xff]  ;;  %v58_v18 = vld [vmem:[%s555_s1 + $0xb8] sm:$0xff]  ;;  %v41_v21 = vld [vmem:[%s555_s1 + $0x30] sm:$0xff] }
   0x6   :  { %293 = vmatprep.subr.bf16.mxu0 %v292_v8  ;;  %321 = vmatprep.subr.bf16.mxu1 %v292_v8  ;;  %v298_v19 = vpack.c.bf16 %v40_v16, %v39_v15  ;;  %v300_v20 = vpack.c.bf16 %v58_v18, %v57_v17  ;;  %v42_v22 = vld [vmem:[%s555_s1 + $0x38] sm:$0xff]  ;;  %v59_v23 = vld [vmem:[%s555_s1 + $0xc0] sm:$0xff]  ;;  %v60_v24 = vld [vmem:[%s555_s1 + $0xc8] sm:$0xff] }
   0x7   :  { %v12_v25 = vld [vmem:[%s556_s0 + $0x8] sm:$0xff]  ;;  %v302_v27 = vpack.c.bf16 %v42_v22, %v41_v21  ;;  %v304_v28 = vpack.c.bf16 %v60_v24, %v59_v23  ;;  %v43_v29 = vld [vmem:[%s555_s1 + $0x40] sm:$0xff]  ;;  %v61_v31 = vld [vmem:[%s555_s1 + $0xd0] sm:$0xff] }
   0x8   :  { %131 = vmatprep.mubr.f32.mxu0 %v12_v25  ;;  %v24_v26 = vld [vmem:[%s556_s0 + $0x68] sm:$0xff]  ;;  %v62_v32 = vld [vmem:[%s555_s1 + $0xd8] sm:$0xff]  ;;  %v45_v35 = vld [vmem:[%s555_s1 + $0x50] sm:$0xff] }
   0x9   :  { %295 = vmatpush3.bf16.msra.mxu0 %v294_v13  ;;  %329 = vmatpush3.bf16.msra.mxu1 %v294_v13  ;;  %v44_v30 = vld [vmem:[%s555_s1 + $0x48] sm:$0xff]  ;;  %v308_v34 = vpack.c.bf16 %v62_v32, %v61_v31  ;;  %v46_v36 = vld [vmem:[%s555_s1 + $0x58] sm:$0xff]  ;;  %v63_v37 = vld [vmem:[%s555_s1 + $0xe0] sm:$0xff] }
   0xa   :  { %297 = vmatprep.subr.bf16.mxu0 %v296_v14  ;;  %322 = vmatprep.subr.bf16.mxu1 %v296_v14  ;;  %v306_v33 = vpack.c.bf16 %v44_v30, %v43_v29  ;;  %v64_v38 = vld [vmem:[%s555_s1 + $0xe8] sm:$0xff]  ;;  %v310_v39 = vpack.c.bf16 %v46_v36, %v45_v35  ;;  %v47_v41 = vld [vmem:[%s555_s1 + $0x60] sm:$0xff]  ;;  %v65_v43 = vld [vmem:[%s555_s1 + $0xf0] sm:$0xff] }
   0xb   :  { %161 = vmatprep.mubr.f32.mxu1 %v24_v26  ;;  %v312_v40 = vpack.c.bf16 %v64_v38, %v63_v37  ;;  %v48_v42 = vld [vmem:[%s555_s1 + $0x68] sm:$0xff]  ;;  %v66_v44 = vld [vmem:[%s555_s1 + $0xf8] sm:$0xff]  ;;  %v49_v47 = vld [vmem:[%s555_s1 + $0x70] sm:$0xff] }
   0xc   :  { %v314_v45 = vpack.c.bf16 %v48_v42, %v47_v41  ;;  %v316_v46 = vpack.c.bf16 %v66_v44, %v65_v43  ;;  %v50_v48 = vld [vmem:[%s555_s1 + $0x78] sm:$0xff]  ;;  %v11_v50 = vld [vmem:[%s556_s0] sm:$0xff]  ;;  %v13_v54 = vld [vmem:[%s556_s0 + $0x10] sm:$0xff] }
   0xd   :  { %299 = vmatpush3.bf16.msra.mxu0 %v298_v19  ;;  %330 = vmatpush3.bf16.msra.mxu1 %v298_v19  ;;  %v318_v49 = vpack.c.bf16 %v50_v48, %v49_v47  ;;  %v23_v51 = vld [vmem:[%s556_s0 + $0x60] sm:$0xff]  ;;  %v14_v52 = vld [vmem:[%s556_s0 + $0x18] sm:$0xff]  ;;  %v25_v55 = vld [vmem:[%s556_s0 + $0x70] sm:$0xff] }
   0xe   :  { %301 = vmatprep.subr.bf16.mxu0 %v300_v20  ;;  %323 = vmatprep.subr.bf16.mxu1 %v300_v20  ;;  %v26_v53 = vld [vmem:[%s556_s0 + $0x78] sm:$0xff]  ;;  %v16_v56 = vld [vmem:[%s556_s0 + $0x28] sm:$0xff]  ;;  %v15_v58 = vld [vmem:[%s556_s0 + $0x20] sm:$0xff] }
   0xf   :  { %v28_v57 = vld [vmem:[%s556_s0 + $0x88] sm:$0xff]  ;;  %v27_v59 = vld [vmem:[%s556_s0 + $0x80] sm:$0xff]  ;;  %v18_v60 = vld [vmem:[%s556_s0 + $0x38] sm:$0xff] }
  0x10   :  { %v30_v61 = vld [vmem:[%s556_s0 + $0x98] sm:$0xff]  ;;  %v17_v62 = vld [vmem:[%s556_s0 + $0x30] sm:$0xff]  ;;  %v20_v0 = vld [vmem:[%s556_s0 + $0x48] sm:$0xff] }
  0x11   :  { %303 = vmatpush3.bf16.msra.mxu0 %v302_v27  ;;  %331 = vmatpush3.bf16.msra.mxu1 %v302_v27  ;;  %v29_v63 = vld [vmem:[%s556_s0 + $0x90] sm:$0xff]  ;;  %v32_v1 = vld [vmem:[%s556_s0 + $0xa8] sm:$0xff]  ;;  %v19_v2 = vld [vmem:[%s556_s0 + $0x40] sm:$0xff] }
  0x12   :  { %305 = vmatprep.subr.bf16.mxu0 %v304_v28  ;;  %324 = vmatprep.subr.bf16.mxu1 %v304_v28  ;;  %v31_v3 = vld [vmem:[%s556_s0 + $0xa0] sm:$0xff]  ;;  %v22_v4 = vld [vmem:[%s556_s0 + $0x58] sm:$0xff]  ;;  %v21_v6 = vld [vmem:[%s556_s0 + $0x50] sm:$0xff] }
  0x13   :  { %v34_v5 = vld [vmem:[%s556_s0 + $0xb8] sm:$0xff]  ;;  %v33_v7 = vld [vmem:[%s556_s0 + $0xb0] sm:$0xff] }
  0x15   :  { %307 = vmatpush3.bf16.msra.mxu0 %v306_v33  ;;  %332 = vmatpush3.bf16.msra.mxu1 %v306_v33 }
  0x16   :  { %309 = vmatprep.subr.bf16.mxu0 %v308_v34  ;;  %325 = vmatprep.subr.bf16.mxu1 %v308_v34 }
  0x19   :  { %311 = vmatpush3.bf16.msra.mxu0 %v310_v39  ;;  %333 = vmatpush3.bf16.msra.mxu1 %v310_v39 }
  0x1a   :  { %313 = vmatprep.subr.bf16.mxu0 %v312_v40  ;;  %326 = vmatprep.subr.bf16.mxu1 %v312_v40 }
  0x1d   :  { %315 = vmatpush3.bf16.msra.mxu0 %v314_v45  ;;  %334 = vmatpush3.bf16.msra.mxu1 %v314_v45 }
  0x1e   :  { %317 = vmatprep.subr.bf16.mxu0 %v316_v46  ;;  %327 = vmatprep.subr.bf16.mxu1 %v316_v46 }
  0x21   :  { %319 = vmatpush3.bf16.msra.mxu0 %v318_v49  ;;  %335 = vmatpush3.bf16.msra.mxu1 %v318_v49 }
  0x24   :  { %132 = vmatmul.mubr.f32.vlgmr.msra.gmra.mrb[0].mxu0 %v11_v50  ;;  %162 = vmatmul.mubr.f32.vlgmr.msra.gmra.mrb[0].mxu1 %v23_v51 }
  0x25   :  { %136 = vmatprep.mubr.f32.mxu0 %v14_v52  ;;  %166 = vmatprep.mubr.f32.mxu1 %v26_v53 }
  0x28   :  { %137 = vmatmul.mubr.f32.gmra.mrb[2].mxu0 %v13_v54  ;;  %167 = vmatmul.mubr.f32.gmra.mrb[2].mxu1 %v25_v55 }
  0x29   :  { %141 = vmatprep.mubr.f32.mxu0 %v16_v56  ;;  %171 = vmatprep.mubr.f32.mxu1 %v28_v57 }
  0x2c   :  { %142 = vmatmul.mubr.f32.gmra.mrb[4].mxu0 %v15_v58  ;;  %172 = vmatmul.mubr.f32.gmra.mrb[4].mxu1 %v27_v59 }
  0x2d   :  { %146 = vmatprep.mubr.f32.mxu0 %v18_v60  ;;  %176 = vmatprep.mubr.f32.mxu1 %v30_v61 }
  0x30   :  { %147 = vmatmul.mubr.f32.gmra.mrb[6].mxu0 %v17_v62  ;;  %177 = vmatmul.mubr.f32.gmra.mrb[6].mxu1 %v29_v63 }
  0x31   :  { %151 = vmatprep.mubr.f32.mxu0 %v20_v0  ;;  %181 = vmatprep.mubr.f32.mxu1 %v32_v1 }
  0x34   :  { %152 = vmatmul.mubr.f32.gmra.mrb[8].mxu0 %v19_v2  ;;  %182 = vmatmul.mubr.f32.gmra.mrb[8].mxu1 %v31_v3 }
  0x35   :  { %156 = vmatprep.mubr.f32.mxu0 %v22_v4  ;;  %186 = vmatprep.mubr.f32.mxu1 %v34_v5 }
  0x38   :  { %157 = vmatmul.mubr.f32.gmra.mrb[10].mxu0 %v21_v6  ;;  %187 = vmatmul.mubr.f32.gmra.mrb[10].mxu1 %v33_v7 }
  0xf7   :  { %v252_v8 = vpop.f32.mrb[0].mxu0  ;;  %v270_v9 = vpop.f32.mrb[0].mxu1 }
  0xf8   :  { %v253_v10 = vpop.f32.mrb[1].mxu0  ;;  %v271_v11 = vpop.f32.mrb[1].mxu1 }
  0xf9   :  { %v254_v12 = vadd.f32 %v253_v10, %v252_v8  ;;  %v272_v13 = vadd.f32 %v271_v11, %v270_v9 }
  0xfb   :  { %v192_v14 = vmax.f32 %v254_v12, 0.0  ;;  %v198_v15 = vmax.f32 %v272_v13, 0.0  ;;  %v255_v16 = vpop.f32.mrb[2].mxu0  ;;  %v273_v17 = vpop.f32.mrb[2].mxu1 }
  0xfc   :  { %v256_v18 = vpop.f32.mrb[3].mxu0  ;;  %v274_v19 = vpop.f32.mrb[3].mxu1 }
  0xfd   :  { %204 = vst [vmem:[%s557_s2] sm:$0xff] %v192_v14  ;;  %210 = vst [vmem:[%s557_s2 + $0x30] sm:$0xff] %v198_v15  ;;  %v257_v20 = vadd.f32 %v256_v18, %v255_v16  ;;  %v275_v21 = vadd.f32 %v274_v19, %v273_v17 }
  0xff   :  { %v193_v22 = vmax.f32 %v257_v20, 0.0  ;;  %v199_v23 = vmax.f32 %v275_v21, 0.0  ;;  %v258_v24 = vpop.f32.mrb[4].mxu0  ;;  %v276_v25 = vpop.f32.mrb[4].mxu1 }
 0x100   :  { %v259_v26 = vpop.f32.mrb[5].mxu0  ;;  %v277_v27 = vpop.f32.mrb[5].mxu1 }
 0x101   :  { %205 = vst [vmem:[%s557_s2 + $0x8] sm:$0xff] %v193_v22  ;;  %211 = vst [vmem:[%s557_s2 + $0x38] sm:$0xff] %v199_v23  ;;  %v260_v28 = vadd.f32 %v259_v26, %v258_v24  ;;  %v278_v29 = vadd.f32 %v277_v27, %v276_v25 }
 0x103   :  { %v194_v30 = vmax.f32 %v260_v28, 0.0  ;;  %v200_v31 = vmax.f32 %v278_v29, 0.0  ;;  %v261_v32 = vpop.f32.mrb[6].mxu0  ;;  %v279_v33 = vpop.f32.mrb[6].mxu1 }
 0x104   :  { %v262_v34 = vpop.f32.mrb[7].mxu0  ;;  %v280_v35 = vpop.f32.mrb[7].mxu1 }
 0x105   :  { %206 = vst [vmem:[%s557_s2 + $0x10] sm:$0xff] %v194_v30  ;;  %212 = vst [vmem:[%s557_s2 + $0x40] sm:$0xff] %v200_v31  ;;  %v263_v36 = vadd.f32 %v262_v34, %v261_v32  ;;  %v281_v37 = vadd.f32 %v280_v35, %v279_v33 }
 0x107   :  { %v195_v38 = vmax.f32 %v263_v36, 0.0  ;;  %v201_v39 = vmax.f32 %v281_v37, 0.0  ;;  %v264_v40 = vpop.f32.mrb[8].mxu0  ;;  %v282_v41 = vpop.f32.mrb[8].mxu1 }
 0x108   :  { %v265_v42 = vpop.f32.mrb[9].mxu0  ;;  %v283_v43 = vpop.f32.mrb[9].mxu1 }
 0x109   :  { %207 = vst [vmem:[%s557_s2 + $0x18] sm:$0xff] %v195_v38  ;;  %213 = vst [vmem:[%s557_s2 + $0x48] sm:$0xff] %v201_v39  ;;  %v266_v44 = vadd.f32 %v265_v42, %v264_v40  ;;  %v284_v45 = vadd.f32 %v283_v43, %v282_v41 }
 0x10b   :  { %v196_v46 = vmax.f32 %v266_v44, 0.0  ;;  %v202_v47 = vmax.f32 %v284_v45, 0.0  ;;  %v267_v48 = vpop.f32.mrb[10].mxu0  ;;  %v285_v49 = vpop.f32.mrb[10].mxu1 }
 0x10c   :  { %v268_v50 = vpop.f32.mrb[11].mxu0  ;;  %v286_v51 = vpop.f32.mrb[11].mxu1 }
 0x10d   :  { %208 = vst [vmem:[%s557_s2 + $0x20] sm:$0xff] %v196_v46  ;;  %214 = vst [vmem:[%s557_s2 + $0x50] sm:$0xff] %v202_v47  ;;  %v269_v52 = vadd.f32 %v268_v50, %v267_v48  ;;  %v287_v53 = vadd.f32 %v286_v51, %v285_v49 }
 0x10f   :  { %v197_v54 = vmax.f32 %v269_v52, 0.0  ;;  %v203_v55 = vmax.f32 %v287_v53, 0.0 }
 0x111   :  { %209 = vst [vmem:[%s557_s2 + $0x28] sm:$0xff] %v197_v54  ;;  %215 = vst [vmem:[%s557_s2 + $0x58] sm:$0xff] %v203_v55 }

// kernel: protonet_forward.5
= control target key start
LH: loop header
LB: loop body
LE: loop exit
PB: predicated region body
PF: predicated region fallthrough
CT: control target
= control target key end

     0   :  { %s2899_s27 = smov 0   ;;  %s3602_s0 = inlined_call_operand.vmem [shape: f32[2,6,6,128], index: 0, kind: input, shape index: {}]   ;;  %s3603_s1 = inlined_call_operand.vmem [shape: f32[128,4], index: 1, kind: input, shape index: {}]   ;;  %s3604_s2 = inlined_call_operand.vmem [shape: f32[1,4], index: 2, kind: input, shape index: {}]   ;;  %s3605_s3 = inlined_call_operand.vmem [shape: f32[6,6,1], index: 3, kind: input, shape index: {}]   ;;  %s3606_s4 = inlined_call_operand.vmem [shape: f32[9,4,256], index: 4, kind: input, shape index: {}]   ;;  %s3607_s5 = inlined_call_operand.vmem [shape: f32[256,256], index: 5, kind: input, shape index: {}]   ;;  %s3608_s6 = inlined_call_operand.vmem [shape: f32[1,256], index: 6, kind: input, shape index: {}]   ;;  %s3609_s7 = inlined_call_operand.vmem [shape: f32[1,256], index: 7, kind: input, shape index: {}]   ;;  %s3610_s8 = inlined_call_operand.vmem [shape: f32[2,4,4,256], index: 8, kind: output, shape index: {}]  }
   0x1 LB: > { %s2486_s28 = sadd.s32 4294967295, %s2844_s27   ;;  %p2490_p0 = scmp.ge.s32.totalorder %s2844_s27, 1  ;;  %s2844_s27 = sphi %s2899_s27, %s18_s27  }
   0x2   : > { %p262_p1 = scmp.lt.s32.totalorder %s2844_s27, 3 }
   0x4   : > { %p263_p2 = pnand %p2490_p0, %p262_p1 }
   0x5   : > { %v874_v0 = vld [vmem:[%s3605_s3] sm:$0x3f] (!%p263_p2)  ;;  %v562_v2 = vld [vmem:[%s3603_s1 + $0x8] sm:$0xff] (!%p263_p2)  ;;  %v322_v3 = vlaneseq (!%p263_p2)  ;;  %v2846_v4 = vmov (!%p263_p2), 0   ;;  %v2847_v5 = vmov (!%p263_p2), 0.0|0.0   ;;  %v563_v7 = vld [vmem:[%s3603_s1 + $0x10] sm:$0xff] (!%p263_p2) }
   0x6   : > { %266 = sbr.rel (%p263_p2) target bundleno = 1046 (0x416), region = 52  ;;  %v561_v1 = vld [vmem:[%s3603_s1] sm:$0xff] (!%p263_p2)  ;;  %2817 = vset.pattern.permute.xlu1 (!%p263_p2), %v2846_v4  ;;  %2616 = vmatprep.subr.bf16.mxu0 (!%p263_p2), %v2847_v5  ;;  %v564_v8 = vld [vmem:[%s3603_s1 + $0x18] sm:$0xff] (!%p263_p2)  ;;  %p296_p3 = scmp.lt.s32.totalorder (!%p263_p2), %s2486_s28, 1  ;;  %vm2848_vm0 = vmmov (!%p263_p2), 0   ;;  %v2849_v9 = vmov (!%p263_p2), 0.0  }
   0x7   : > { %v2617_v6 = vpack.c.bf16 (!%p263_p2), %v562_v2, %v561_v1  ;;  %882 = vperm.xlu1 (!%p263_p2), %2817, %v874_v0   ;;  %2601 = vmatprep.mubr.msk.f32.mxu0 (!%p263_p2), %vm2848_vm0, %v2849_v9  ;;  %v2620_v10 = vpack.c.bf16 (!%p263_p2), %v564_v8, %v563_v7  ;;  %v2850_v11 = vmov (!%p263_p2), 1983009808   ;;  %v2927_v13 = vshrl.u32 (!%p263_p2), %v322_v3, 7  ;;  %v565_v14 = vld [vmem:[%s3603_s1 + $0x20] sm:$0xff] (!%p263_p2)  ;;  %v566_v15 = vld [vmem:[%s3603_s1 + $0x28] sm:$0xff] (!%p263_p2)  ;;  %v567_v19 = vld [vmem:[%s3603_s1 + $0x30] sm:$0xff] (!%p263_p2) }
   0x8   : > { %v320_v12 = vunpack.c.l.s4 (!%p263_p2), %v2850_v11  ;;  %2818 = vset.pattern.permute.xlu0 (!%p263_p2), %v2846_v4  ;;  %1346 = vmatprep.mubr.f32.mxu1 (!%p263_p2), %v2849_v9  ;;  %v2623_v17 = vpack.c.bf16 (!%p263_p2), %v566_v15, %v565_v14  ;;  %v568_v20 = vld [vmem:[%s3603_s1 + $0x38] sm:$0xff] (!%p263_p2)  ;;  %v569_v27 = vld [vmem:[%s3603_s1 + $0x40] sm:$0xff] (!%p263_p2)  ;;  %v570_v28 = vld [vmem:[%s3603_s1 + $0x48] sm:$0xff] (!%p263_p2)  ;;  %vm557_vm1 = vcmask (!%p263_p2), 1043456   ;;  %vm1079_vm2 = vcmask (!%p263_p2), 1040384  }
   0x9   : > { %2618 = vmatpush3.bf16.msra.mxu0 (!%p263_p2), %v2617_v6  ;;  %v2626_v24 = vpack.c.bf16 (!%p263_p2), %v568_v20, %v567_v19  ;;  %v2629_v34 = vpack.c.bf16 (!%p263_p2), %v570_v28, %v569_v27  ;;  %v571_v38 = vld [vmem:[%s3603_s1 + $0x50] sm:$0xff] (!%p263_p2)  ;;  %v572_v39 = vld [vmem:[%s3603_s1 + $0x58] sm:$0xff] (!%p263_p2)  ;;  %v573_v42 = vld [vmem:[%s3603_s1 + $0x60] sm:$0xff] (!%p263_p2)  ;;  %vm1080_vm3 = vcmask (!%p263_p2), 1042434   ;;  %vm1082_vm4 = vcmask (!%p263_p2), 1044484  }
   0xa   : > { %2619 = vmatprep.subr.bf16.mxu0 (!%p263_p2), %v2847_v5  ;;  %v321_v16 = vunpack.c.0.s8 (!%p263_p2), %v320_v12  ;;  %v574_v43 = vld [vmem:[%s3603_s1 + $0x68] sm:$0xff] (!%p263_p2)  ;;  %v2632_v48 = vpack.c.bf16 (!%p263_p2), %v572_v39, %v571_v38  ;;  %v575_v6 = vld [vmem:[%s3603_s1 + $0x70] sm:$0xff] (!%p263_p2)  ;;  %v576_v7 = vld [vmem:[%s3603_s1 + $0x78] sm:$0xff] (!%p263_p2)  ;;  %vm1084_vm5 = vcmask (!%p263_p2), 1046534   ;;  %vm1152_vm9 = vcmask (!%p263_p2), 31744  }
   0xb   : > { %v2635_v52 = vpack.c.bf16 (!%p263_p2), %v574_v43, %v573_v42  ;;  %vm1081_vm6 = vmor (!%p263_p2), %vm1079_vm2, %vm1080_vm3 }
   0xc   : > { %v2944_v18 = vsub.s32 (!%p263_p2), %v321_v16, %v2927_v13  ;;  %vm1083_vm7 = vmor (!%p263_p2), %vm1081_vm6, %vm1082_vm4 }
   0xd   : > { %s3614_s28 = smov (!%p296_p3, %s2486_s28), 1  ;;  %2621 = vmatpush3.bf16.msra.mxu0 %v2620_v10  ;;  %vm3171_vm8 = vmor %vm1083_vm7, %vm1084_vm5 }
   0xe   : > { %s2800_s21 = smul.u32 48, %s3614_s28  ;;  %2622 = vmatprep.subr.bf16.mxu0 %v2847_v5  ;;  %s2547_s29 = sshll.u32 %s3614_s28, 5 }
   0xf   : > { %s305_s10 = scalar_lea.vmem %s3610_s8, %s2547_s29 }
  0x10   : > { %s2941_s24 = scalar_lea.vmem %s3602_s0, %s2800_s21 }
  0x11   : > { %v306_v21 = vld [vmem:[%s2941_s24] sm:$0x3f]  ;;  %v308_v22 = vld [vmem:[%s2941_s24 + $0x10] sm:$0x3f]  ;;  %v309_v23 = vld [vmem:[%s2941_s24 + $0x18] sm:$0x3f]  ;;  %2624 = vmatpush3.bf16.msra.mxu0 %v2623_v17 }
  0x12   : > { %v318_v25 = vcombine.high %v306_v21, %v306_v21  ;;  %v325_v26 = vrot.slane %v306_v21, %v2944_v18  ;;  %2625 = vmatprep.subr.bf16.mxu0 %v2847_v5  ;;  %v307_v29 = vld [vmem:[%s2941_s24 + $0x8] sm:$0x3f]  ;;  %v350_v30 = vcombine.high %v308_v22, %v308_v22  ;;  %v366_v31 = vcombine.high %v309_v23, %v309_v23  ;;  %v310_v61 = vld [vmem:[%s2941_s24 + $0x20] sm:$0x3f] }
  0x13   : > { %v2966_v32 = vrot.slane %v309_v23, %v2944_v18  ;;  %v334_v33 = vcombine.high %v307_v29, %v307_v29  ;;  %v341_v37 = vrot.slane %v307_v29, %v2944_v18  ;;  %v357_v41 = vrot.slane %v308_v22, %v2944_v18 }
  0x14   : > { %v332_v35 = vrot.slane %v318_v25, %v2944_v18  ;;  %v333_v36 = vcombine.high %v325_v26, %v325_v26  ;;  %v2978_v40 = vrot.slane %v350_v30, %v2944_v18  ;;  %v2988_v44 = vrot.slane %v366_v31, %v2944_v18  ;;  %v311_v25 = vld [vmem:[%s2941_s24 + $0x28] sm:$0x3f] }
  0x15   : > { %2627 = vmatpush3.bf16.msra.mxu0 %v2626_v24  ;;  %v2992_v45 = vcombine.high %v2966_v32, %v2966_v32  ;;  %v348_v46 = vrot.slane %v334_v33, %v2944_v18  ;;  %v349_v47 = vcombine.high %v341_v37, %v341_v37  ;;  %v432_v51 = vmul.f32 %v325_v26, %v325_v26 }
  0x16   : > { %2628 = vmatprep.subr.bf16.mxu0 %v2847_v5  ;;  %v577_v49 = vcombine.low %v325_v26, %v333_v36  ;;  %v578_v50 = vcombine.low %v332_v35, %v341_v37  ;;  %v440_v53 = vmul.f32 %v2978_v40, %v2978_v40  ;;  %v441_v54 = vmul.f32 %v2966_v32, %v2966_v32 }
  0x17   : > { %v365_v55 = vcombine.high %v357_v41, %v357_v41  ;;  %v442_v56 = vmul.f32 %v2992_v45, %v2992_v45  ;;  %v443_v57 = vmul.f32 %v2988_v44, %v2988_v44  ;;  %v433_v58 = vmul.f32 %v333_v36, %v333_v36 }
  0x18   : > { %v434_v59 = vmul.f32 %v332_v35, %v332_v35  ;;  %v594_v60 = vcombine.low %v349_v47, %v348_v46  ;;  %v435_v62 = vmul.f32 %v341_v37, %v341_v37  ;;  %v436_v63 = vmul.f32 %v349_v47, %v349_v47 }
  0x19   : > { %2630 = vmatpush3.bf16.msra.mxu0 %v2629_v34  ;;  %v437_v0 = vmul.f32 %v348_v46, %v348_v46  ;;  %v585_v1 = vrot.slane %v577_v49, %v2944_v18  ;;  %v592_v2 = vrot.slane %v578_v50, %v2944_v18  ;;  %v468_v3 = vcombine.low %v432_v51, %v433_v58 }
  0x1a   : > { %2631 = vmatprep.subr.bf16.mxu0 %v2847_v5  ;;  %v438_v4 = vmul.f32 %v357_v41, %v357_v41  ;;  %v502_v8 = vcombine.low %v440_v53, %v441_v54  ;;  %v469_v10 = vcombine.low %v434_v59, %v435_v62  ;;  %v439_v11 = vmul.f32 %v365_v55, %v365_v55  ;;  %v875_v53 = vld [vmem:[%s3605_s3 + $0x8] sm:$0x3f]  ;;  %v877_v54 = vld [vmem:[%s3605_s3 + $0x18] sm:$0x3f] }
  0x1b   : > { %v485_v12 = vcombine.low %v436_v63, %v437_v0  ;;  %v503_v14 = vcombine.low %v442_v56, %v443_v57  ;;  %v595_v15 = vcombine.low %v357_v41, %v365_v55  ;;  %v382_v16 = vcombine.high %v310_v61, %v310_v61  ;;  %v878_v55 = vld [vmem:[%s3605_s3 + $0x20] sm:$0x3f] }
  0x1c   : > { %v476_v17 = vrot.slane %v468_v3, %v2944_v18  ;;  %v389_v19 = vrot.slane %v310_v61, %v2944_v18  ;;  %v483_v20 = vrot.slane %v469_v10, %v2944_v18  ;;  %v486_v21 = vcombine.low %v438_v4, %v439_v11  ;;  %v2499_v11 = vld [vmem:[%s3606_s4 + $0x8] sm:$0xff] }
  0x1d   : > { %2633 = vmatpush3.bf16.msra.mxu0 %v2632_v48  ;;  %v493_v22 = vrot.slane %v485_v12, %v2944_v18  ;;  %v2638_v23 = vpack.c.bf16 %v576_v7, %v575_v6  ;;  %v611_v24 = vcombine.low %v2978_v40, %v2966_v32  ;;  %v602_v26 = vrot.slane %v594_v60, %v2944_v18  ;;  %v879_v7 = vld [vmem:[%s3605_s3 + $0x28] sm:$0x3f] }
  0x1e   : > { %2634 = vmatprep.subr.bf16.mxu0 %v2847_v5  ;;  %v612_v27 = vcombine.low %v2992_v45, %v2988_v44  ;;  %v484_v28 = vcombine.low %v476_v17, %v483_v20  ;;  %v500_v29 = vrot.slane %v486_v21, %v2944_v18  ;;  %v593_v30 = vcombine.low %v585_v1, %v592_v2 }
  0x1f   : > { %v510_v31 = vrot.slane %v502_v8, %v2944_v18  ;;  %v517_v33 = vrot.slane %v503_v14, %v2944_v18  ;;  %v609_v34 = vrot.slane %v595_v15, %v2944_v18  ;;  %v396_v32 = vrot.slane %v382_v16, %v2944_v18  ;;  %v1066_v8 = vld [vmem:[%s3606_s4] sm:$0xff]  ;;  %v3078_v14 = vld [vmem:[%s3606_s4 + $0x10] sm:$0xff] }
  0x20   : > { %v397_v35 = vcombine.high %v389_v19, %v389_v19  ;;  %549 = vadd.xlane.f32.xlu0 %v484_v28  ;;  %v501_v36 = vcombine.low %v493_v22, %v500_v29  ;;  %v619_v38 = vrot.slane %v611_v24, %v2944_v18  ;;  %v626_v39 = vrot.slane %v612_v27, %v2944_v18 }
  0x21   : > { %2636 = vmatpush3.bf16.msra.mxu0 %v2635_v52  ;;  %v610_v37 = vcombine.low %v602_v26, %v609_v34  ;;  %v398_v40 = vcombine.high %v311_v25, %v311_v25  ;;  %v518_v41 = vcombine.low %v510_v31, %v517_v33  ;;  %v876_v52 = vld [vmem:[%s3605_s3 + $0x10] sm:$0x3f]  ;;  %v444_v58 = vmul.f32 %v389_v19, %v389_v19 }
  0x22   : > { %2637 = vmatprep.subr.bf16.mxu0 %v2847_v5  ;;  %v405_v5 = vrot.slane %v311_v25, %v2944_v18  ;;  %v628_v42 = vcombine.low %v389_v19, %v397_v35  ;;  %v627_v44 = vcombine.low %v619_v38, %v626_v39  ;;  %v445_v59 = vmul.f32 %v397_v35, %v397_v35  ;;  %v3108_v38 = vld [vmem:[%s3606_s4 + $0x18] sm:$0xff]  ;;  %v3113_v39 = vld [vmem:[%s3606_s4 + $0x20] sm:$0xff] }
  0x23   : > { %v412_v48 = vrot.slane %v398_v40, %v2944_v18  ;;  %v446_v60 = vmul.f32 %v396_v32, %v396_v32  ;;  %v1273_v10 = vcombine.high %v1066_v8, %v1066_v8  ;;  %v1151_v12 = vcombine.high %v2499_v11, %v2499_v11 }
  0x24   : > { %v629_v43 = vcombine.low %v396_v32, %v405_v5  ;;  %551 = vadd.xlane.f32.xlu0 %v501_v36  ;;  %v413_v45 = vcombine.high %v405_v5, %v405_v5  ;;  %v636_v46 = vrot.slane %v628_v42, %v2944_v18  ;;  %v447_v61 = vmul.f32 %v405_v5, %v405_v5  ;;  %v2494_v5 = vld [vmem:[%s3604_s2] ss:$0 sm:$0xff] }
  0x25   : > { %2639 = vmatpush3.bf16.msra.mxu0 %v2638_v23  ;;  %v449_v57 = vmul.f32 %v412_v48, %v412_v48  ;;  %v519_v63 = vcombine.low %v444_v58, %v445_v59  ;;  %2504 = vmatprep.subr.msk.mxu1 %vm557_vm1, %v1273_v10  ;;  %v1396_v15 = vcombine.high %v3078_v14, %v3078_v14  ;;  %v2851_v21 = vmov 269488144  }
  0x26   : > { %v643_v47 = vrot.slane %v629_v43, %v2944_v18  ;;  %v645_v50 = vcombine.low %v413_v45, %v412_v48  ;;  %v448_v56 = vmul.f32 %v413_v45, %v413_v45  ;;  %v520_v0 = vcombine.low %v446_v60, %v447_v61  ;;  %2505 = vmatpush1.msk.msra.mxu1 %vm557_vm1, %v1066_v8 }
  0x27   : > { %v527_v2 = vrot.slane %v519_v63, %v2944_v18  ;;  %2500 = vmatprep.subr.msk.mxu0 %vm557_vm1, %v1151_v12  ;;  %2509 = vmatprep.subr.msk.mxu1 %vm557_vm1, %v1396_v15  ;;  %v905_v22 = vunpack.c.l.s4 %v2851_v21  ;;  %v2852_v23 = vmov 842150450   ;;  %v2853_v25 = vmov 1414812756  }
  0x28   : > { %2602 = vmatmul.mubr.f32.vlgmr.msra.gmra.mrb[0].mxu0 %v593_v30  ;;  %v644_v49 = vcombine.low %v636_v46, %v643_v47  ;;  %v652_v51 = vrot.slane %v645_v50, %v2944_v18  ;;  %v536_v62 = vcombine.low %v448_v56, %v449_v57  ;;  %v534_v3 = vrot.slane %v520_v0, %v2944_v18 }
  0x29   : > { %2604 = vmatprep.mubr.msk.f32.mxu0 %vm2848_vm0, %v2849_v9  ;;  %2501 = vmatpush1.msk.msra.mxu0 %vm557_vm1, %v2499_v11  ;;  %v912_v24 = vunpack.c.l.s4 %v2852_v23  ;;  %v919_v26 = vunpack.c.l.s4 %v2853_v25  ;;  %v906_v28 = vunpack.c.0.s8 %v905_v22  ;;  %v1501_v48 = vcombine.high %v3108_v38, %v3108_v38 }
  0x2a   : > { %v543_v1 = vrot.slane %v536_v62, %v2944_v18  ;;  %v535_v6 = vcombine.low %v527_v2, %v534_v3 }
  0x2b   : > { %553 = vadd.xlane.f32.xlu1 %v518_v41  ;;  %v913_v29 = vunpack.c.0.s8 %v912_v24  ;;  %v920_v30 = vunpack.c.0.s8 %v919_v26  ;;  %v3092_v34 = vsub.s32 %v906_v28, %v2927_v13 }
  0x2c   : > { %2605 = vmatmul.mubr.f32.gmra.mrb[2].mxu0 %v610_v37  ;;  %v558_v4 = vsel %vm557_vm1, %v543_v1, 0.0 }
  0x2d   : > { %2607 = vmatprep.mubr.msk.f32.mxu0 %vm2848_vm0, %v2849_v9  ;;  %v3095_v32 = vsub.s32 %v913_v29, %v2927_v13  ;;  %v3098_v35 = vsub.s32 %v920_v30, %v2927_v13 }
  0x30   : > { %2608 = vmatmul.mubr.f32.gmra.mrb[4].mxu0 %v627_v44 }
  0x31   : > { %2610 = vmatprep.mubr.msk.f32.mxu0 %vm2848_vm0, %v2849_v9 }
  0x34   : > { %2611 = vmatmul.mubr.f32.gmra.mrb[6].mxu0 %v644_v49  ;;  %v1612_v49 = vcombine.high %v3113_v39, %v3113_v39 }
  0x35   : > { %2613 = vmatprep.mubr.msk.f32.mxu0 %vm2848_vm0, %v2849_v9 }
  0x38   : > { %2614 = vmatmul.mubr.f32.gmra.mrb[8].mxu0 %v652_v51 }
  0x39   : > { %1225 = vmatprep.mubr.f32.mxu0 %v2849_v9 }
  0x3a   : > { %886 = vperm.xlu0 %2818, %v875_v53  }
  0x3c   : > { %890 = vperm.xlu1 %2817, %v876_v52  }
  0x3e   : > { %898 = vperm.xlu0 %2818, %v878_v55  }
  0x40   : > { %894 = vperm.xlu1 %2817, %v877_v54  }
  0x5d   : > { %559 = vadd.xlane.f32.xlu0 %v558_v4 }
  0x64   : > { %555 = vadd.xlane.f32.xlu1 %v535_v6 }
  0x75   : > { %902 = vperm.xlu1 %2817, %v879_v7  }
  0x86   : > { %v3083_v16 = vpop.permute.xlu1 %882 }
  0x87   : > { %v910_v44 = vrot.slane %v3083_v16, %v3092_v34  ;;  %v917_v45 = vrot.slane %v3083_v16, %v3095_v32  ;;  %v924_v46 = vrot.slane %v3083_v16, %v3098_v35 }
  0xad   : > { %v550_v17 = vpop.xlane.xlu0 %549 }
  0xae   : > { %v755_v40 = vadd.f32 %v2494_v5, %v550_v17 }
  0xb1   : > { %v552_v20 = vpop.xlane.xlu0 %551 }
  0xb2   : > { %v756_v53 = vadd.f32 %v2494_v5, %v552_v20 }
  0xb8   : > { %v554_v19 = vpop.xlane.xlu1 %553 }
  0xb9   : > { %v3087_v31 = vpop.permute.xlu0 %886  ;;  %v757_v50 = vadd.f32 %v2494_v5, %v554_v19 }
  0xba   : > { %v931_v56 = vrot.slane %v3087_v31, %v3092_v34  ;;  %v938_v63 = vrot.slane %v3087_v31, %v3095_v32  ;;  %v945_v0 = vrot.slane %v3087_v31, %v3098_v35 }
  0xbc   : > { %v3085_v27 = vpop.permute.xlu1 %890 }
  0xbd   : > { %v3103_v37 = vpop.permute.xlu0 %898  ;;  %v952_v51 = vrot.slane %v3085_v27, %v3092_v34  ;;  %v959_v52 = vrot.slane %v3085_v27, %v3095_v32  ;;  %v966_v55 = vrot.slane %v3085_v27, %v3098_v35 }
  0xbe   : > { %v994_v7 = vrot.slane %v3103_v37, %v3092_v34  ;;  %v1001_v8 = vrot.slane %v3103_v37, %v3095_v32  ;;  %v1008_v10 = vrot.slane %v3103_v37, %v3098_v35 }
  0xc0   : > { %v3089_v33 = vpop.permute.xlu1 %894 }
  0xc1   : > { %v973_v61 = vrot.slane %v3089_v33, %v3092_v34  ;;  %v980_v62 = vrot.slane %v3089_v33, %v3095_v32  ;;  %v987_v1 = vrot.slane %v3089_v33, %v3098_v35 }
  0xea   : > { %v560_v60 = vpop.xlane.xlu0 %559 }
  0xeb   : > { %v3154_v12 = vadd.f32 %v2494_v5, %v560_v60 }
  0xf1   : > { %v556_v41 = vpop.xlane.xlu1 %555 }
  0xf2   : > { %v3160_v21 = vadd.f32 %v2494_v5, %v556_v41 }
  0xf5   : > { %v3145_v2 = vpop.permute.xlu1 %902 }
  0xf6   : > { %v1015_v22 = vrot.slane %v3145_v2, %v3092_v34  ;;  %v1022_v23 = vrot.slane %v3145_v2, %v3095_v32  ;;  %v1029_v25 = vrot.slane %v3145_v2, %v3098_v35 }
  0xfb   : > { %v724_v36 = vpop.f32.mrb[0].mxu0 }
  0xfc   : > { %v760_v42 = vmul.f32 2.0, %v724_v36  ;;  %v2603_v43 = vpop.f32.mrb[1].mxu0 }
  0xfe   : > { %v765_v47 = vsub.f32 %v755_v40, %v760_v42 }
  0xff   : > { %v729_v54 = vpop.f32.mrb[2].mxu0 }
 0x100   : > { %v770_v57 = vsub.f32 0.0, %v765_v47  ;;  %v761_v58 = vmul.f32 2.0, %v729_v54  ;;  %v2606_v59 = vpop.f32.mrb[3].mxu0 }
 0x102   : > { %v780_v3 = vcombine.high %v770_v57, %v770_v57  ;;  %v787_v4 = vrot.slane %v770_v57, %v2944_v18  ;;  %v766_v6 = vsub.f32 %v756_v53, %v761_v58 }
 0x103   : > { %v734_v11 = vpop.f32.mrb[4].mxu0 }
 0x104   : > { %v794_v15 = vrot.slane %v780_v3, %v2944_v18  ;;  %v795_v16 = vcombine.high %v787_v4, %v787_v4  ;;  %v3157_v17 = vmul.f32 %v910_v44, %v787_v4  ;;  %v771_v19 = vsub.f32 0.0, %v766_v6  ;;  %v2609_v20 = vpop.f32.mrb[5].mxu0 }
 0x105   : > { %v762_v24 = vmul.f32 2.0, %v734_v11 }
 0x106   : > { %v796_v26 = vcombine.high %v794_v15, %v794_v15  ;;  %v3168_v28 = vmul.f32 %v917_v45, %v795_v16  ;;  %v1050_v29 = vmul.f32 %v924_v46, %v794_v15  ;;  %v2495_v31 = vrot.slane %v3157_v17, 9 }
 0x107   : > { %v797_v5 = vcombine.high %v771_v19, %v771_v19  ;;  %v804_v36 = vrot.slane %v771_v19, %v2944_v18  ;;  %v767_v40 = vsub.f32 %v757_v50, %v762_v24  ;;  %v739_v41 = vpop.f32.mrb[6].mxu0 }
 0x108   : > { %v3177_v42 = vmul.f32 %v931_v56, %v796_v26  ;;  %v1088_v43 = vrot.slane %v3168_v28, 7  ;;  %v1091_v44 = vrot.slane %v1050_v29, 7  ;;  %v1238_v45 = vcombine.low %v3157_v17, %v3168_v28  ;;  %v2612_v46 = vpop.f32.mrb[7].mxu0 }
 0x109   : > { %v1361_v47 = vcombine.low %v3168_v28, %v1050_v29  ;;  %v811_v53 = vrot.slane %v797_v5, %v2944_v18  ;;  %v812_v54 = vcombine.high %v804_v36, %v804_v36  ;;  %v1052_v57 = vmul.f32 %v938_v63, %v804_v36 }
 0x10a   : > { %v1089_v58 = vsel %vm3171_vm8, %v2495_v31, %v1088_v43  ;;  %v1090_v50 = vrot.slane %v1088_v43, 2  ;;  %v2496_v56 = vrot.slane %v3177_v42, 9  ;;  %v772_v59 = vsub.f32 0.0, %v767_v40 }
 0x10b   : > { %v3188_v60 = vrot.slane %v1361_v47, %v2944_v18  ;;  %v813_v3 = vcombine.high %v811_v53, %v811_v53  ;;  %v1053_v4 = vmul.f32 %v945_v0, %v812_v54  ;;  %v1054_v6 = vmul.f32 %v952_v51, %v811_v53  ;;  %v744_v11 = vpop.f32.mrb[8].mxu0 }
 0x10c   : > { %v1092_v15 = vsel %vm3171_vm8, %v1090_v50, %v1091_v44  ;;  %v1095_v16 = vrot.slane %v1052_v57, 7  ;;  %v814_v17 = vcombine.high %v772_v59, %v772_v59  ;;  %v821_v63 = vrot.slane %v772_v59, %v2944_v18  ;;  %v2615_v19 = vpop.f32.mrb[9].mxu0 }
 0x10d   : > { %v1116_v20 = vcombine.low %v1089_v58, %v1092_v15  ;;  %v3196_v24 = vmul.f32 %v959_v52, %v813_v3  ;;  %v1098_v26 = vrot.slane %v1053_v4, 7  ;;  %v2497_v28 = vrot.slane %v1054_v6, 9 }
 0x10e   : > { %v1096_v51 = vsel %vm3171_vm8, %v2496_v56, %v1095_v16  ;;  %v1097_v0 = vrot.slane %v1095_v16, 2  ;;  %v1362_v29 = vcombine.low %v1052_v57, %v1053_v4  ;;  %v828_v31 = vrot.slane %v814_v17, %v2944_v18 }
 0x10f   : > { %v1124_v5 = vrot.slane %v1116_v20, %v2944_v18  ;;  %v1102_v36 = vrot.slane %v3196_v24, 7  ;;  %v1255_v40 = vcombine.low %v1054_v6, %v3196_v24  ;;  %v829_v43 = vcombine.high %v821_v63, %v821_v63 }
 0x110   : > { %v1099_v52 = vsel %vm3171_vm8, %v1097_v0, %v1098_v26  ;;  %v3207_v44 = vrot.slane %v1362_v29, %v2944_v18  ;;  %v830_v46 = vcombine.high %v828_v31, %v828_v31  ;;  %v1056_v47 = vmul.f32 %v966_v55, %v821_v63 }
 0x111   : > { %v1117_v53 = vcombine.low %v1096_v51, %v1099_v52  ;;  %v1057_v54 = vmul.f32 %v973_v61, %v829_v43  ;;  %v3218_v58 = vmul.f32 %v980_v62, %v828_v31  ;;  %v763_v50 = vmul.f32 2.0, %v739_v41 }
 0x112   : > { %v1377_v56 = vcombine.low %v3188_v60, %v3207_v44  ;;  %v3225_v59 = vmul.f32 %v987_v1, %v830_v46  ;;  %v1105_v27 = vrot.slane %v1056_v47, 7  ;;  %v1378_v55 = vcombine.low %v3196_v24, %v1056_v47 }
 0x113   : > { %v3229_v3 = vrot.slane %v1117_v53, %v2944_v18  ;;  %v2498_v61 = vrot.slane %v1057_v54, 9  ;;  %v1109_v4 = vrot.slane %v3218_v58, 7  ;;  %v1256_v62 = vcombine.low %v1057_v54, %v3218_v58 }
 0x114   : > { %v1112_v41 = vrot.slane %v3225_v59, 7  ;;  %v768_v6 = vsub.f32 %v3160_v21, %v763_v50  ;;  %v764_v15 = vmul.f32 2.0, %v744_v11  ;;  %v1239_v33 = vcombine.low %v3177_v42, %v1052_v57 }
 0x115   : > { %v1111_v1 = vrot.slane %v1109_v4, 2  ;;  %v1246_v16 = vrot.slane %v1238_v45, %v2944_v18  ;;  %v1132_v17 = vcombine.low %v1124_v5, %v3229_v3  ;;  %v3239_v63 = vrot.slane %v1255_v40, %v2944_v18 }
 0x116   : > { %v773_v19 = vsub.f32 0.0, %v768_v6  ;;  %v769_v20 = vsub.f32 %v3154_v12, %v764_v15  ;;  %v3243_v24 = vrot.slane %v1239_v33, %v2944_v18  ;;  %v3246_v26 = vrot.slane %v1256_v62, %v2944_v18 }
 0x117   : > { %2502 = vmatmul.mubr.msk.f32.vlgmr.msra.gmra.mrb[10].mxu0 %vm1152_vm9, %v1132_v17  ;;  %v1103_v21 = vsel %vm3171_vm8, %v2497_v28, %v1102_v36  ;;  %v1104_v42 = vrot.slane %v1102_v36, 2  ;;  %v1110_v45 = vsel %vm3171_vm8, %v2498_v61, %v1109_v4  ;;  %v1113_v57 = vsel %vm3171_vm8, %v1111_v1, %v1112_v41 }
 0x118   : > { %v831_v11 = vcombine.high %v773_v19, %v773_v19  ;;  %v838_v12 = vrot.slane %v773_v19, %v2944_v18  ;;  %v774_v51 = vsub.f32 0.0, %v769_v20  ;;  %v1254_v0 = vcombine.low %v1246_v16, %v3243_v24  ;;  %1231 = vmatprep.mubr.f32.mxu0 %v2849_v9  ;;  %v2524_v20 = vld [vmem:[%s3606_s4 + $0x28] sm:$0xff] }
 0x119   : > { %v3260_v29 = vcombine.low %v3239_v63, %v3246_v26  ;;  %v1490_v28 = vcombine.low %v3243_v24, %v3239_v63  ;;  %v1106_v31 = vsel %vm3171_vm8, %v1104_v42, %v1105_v27  ;;  %v1134_v5 = vcombine.low %v1110_v45, %v1113_v57  ;;  %v2540_v24 = vld [vmem:[%s3606_s4 + $0x40] sm:$0xff] }
 0x11a   : > { %v845_v36 = vrot.slane %v831_v11, %v2944_v18  ;;  %v846_v40 = vcombine.high %v838_v12, %v838_v12  ;;  %v1060_v43 = vmul.f32 %v994_v7, %v838_v12  ;;  %v854_v52 = vrot.slane %v774_v51, %v2944_v18  ;;  %2506 = vmatmul.mubr.msk.f32.vlgmr.msra.gmra.mrb[0].mxu1 %vm1152_vm9, %v1254_v0  ;;  %v2529_v0 = vld [vmem:[%s3606_s4 + $0x30] sm:$0xff] }
 0x11b   : > { %2510 = vmatpush1.msk.msra.mxu1 %vm557_vm1, %v3078_v14  ;;  %1352 = vmatprep.mubr.f32.mxu1 %v2849_v9  ;;  %v1133_v46 = vcombine.low %v1103_v21, %v1106_v31  ;;  %v3276_v47 = vrot.slane %v1134_v5, %v2944_v18  ;;  %v1379_v53 = vcombine.low %v3218_v58, %v3225_v59  ;;  %v2132_v31 = vld [vmem:[%s3607_s5 + $0x18] sm:$0xff]  ;;  %v2129_v5 = vld [vmem:[%s3607_s5] sm:$0xff] }
 0x11c   : > { %v847_v54 = vcombine.high %v845_v36, %v845_v36  ;;  %v1061_v7 = vmul.f32 %v1001_v8, %v846_v40  ;;  %v1062_v50 = vmul.f32 %v1008_v10, %v845_v36  ;;  %v2518_v27 = vrot.slane %v1060_v43, 9  ;;  %2514 = vmatprep.subr.msk.mxu1 %vm557_vm1, %v1501_v48  ;;  %v2131_v40 = vld [vmem:[%s3607_s5 + $0x10] sm:$0xff] }
 0x11d   : > { %v855_v14 = vcombine.high %v854_v52, %v854_v52  ;;  %v1064_v58 = vmul.f32 %v1022_v23, %v854_v52  ;;  %v1141_v59 = vrot.slane %v1133_v46, %v2944_v18  ;;  %v3295_v61 = vrot.slane %v1378_v55, %v2944_v18 }
 0x11e   : > { %v1063_v37 = vmul.f32 %v1015_v22, %v847_v54  ;;  %v1491_v8 = vcombine.low %v1060_v43, %v1061_v7  ;;  %v1594_v10 = vrot.slane %v1061_v7, 7  ;;  %v1597_v4 = vrot.slane %v1062_v50, 7  ;;  %2507 = vmatmul.mubr.msk.f32.gmra.mrb[2].mxu1 %vm1152_vm9, %v3260_v29  ;;  %v2136_v43 = vld [vmem:[%s3607_s5 + $0x38] sm:$0xff]  ;;  %v2138_v54 = vld [vmem:[%s3607_s5 + $0x48] sm:$0xff] }
 0x11f   : > { %v1705_v48 = vcombine.low %v1061_v7, %v1062_v50  ;;  %v1065_v32 = vmul.f32 %v1029_v25, %v855_v14  ;;  %v1910_v23 = vrot.slane %v1064_v58, 7  ;;  %1469 = vmatprep.mubr.f32.mxu1 %v2849_v9  ;;  %v3307_v55 = vcombine.low %v1141_v59, %v3276_v47  ;;  %v2140_v7 = vld [vmem:[%s3607_s5 + $0x58] sm:$0xff]  ;;  %v2137_v14 = vld [vmem:[%s3607_s5 + $0x40] sm:$0xff] }
 0x120   : > { %v1596_v62 = vrot.slane %v1594_v10, 2  ;;  %v2534_v34 = vrot.slane %v1063_v37, 9  ;;  %v1601_v22 = vcombine.low %v3229_v3, %v1141_v59  ;;  %v1393_v41 = vrot.slane %v1379_v53, %v2944_v18  ;;  %v2135_v53 = vld [vmem:[%s3607_s5 + $0x30] sm:$0xff]  ;;  %v2142_v59 = vld [vmem:[%s3607_s5 + $0x68] sm:$0xff] }
 0x121   : > { %v1912_v6 = vrot.slane %v1910_v23, 2  ;;  %v1913_v15 = vrot.slane %v1065_v32, 7  ;;  %v2017_v33 = vcombine.low %v1064_v58, %v1065_v32  ;;  %2503 = vmatmul.mubr.msk.f32.gmra.mrb[12].mxu0 %vm1152_vm9, %v3307_v55  ;;  %v1704_v35 = vcombine.low %v3207_v44, %v3295_v61  ;;  %v2148_v32 = vld [vmem:[%s3607_s5 + $0x98] sm:$0xff] }
 0x122   : > { %2511 = vmatmul.mubr.msk.f32.vlgmr.msra.gmra.mrb[0].mxu1 %vm1152_vm9, %v1377_v56  ;;  %v1394_v2 = vcombine.low %v3295_v61, %v1393_v41  ;;  %v1498_v25 = vrot.slane %v1491_v8, %v2944_v18  ;;  %v1595_v3 = vsel %vm3171_vm8, %v2518_v27, %v1594_v10  ;;  %v1598_v1 = vsel %vm3171_vm8, %v1596_v62, %v1597_v4  ;;  %v2144_v61 = vld [vmem:[%s3607_s5 + $0x78] sm:$0xff]  ;;  %v2141_v10 = vld [vmem:[%s3607_s5 + $0x60] sm:$0xff]  ;;  %v2143_v4 = vld [vmem:[%s3607_s5 + $0x70] sm:$0xff] }
 0x123   : > { %2515 = vmatpush1.msk.msra.mxu1 %vm557_vm1, %v3108_v38  ;;  %1475 = vmatprep.mubr.f32.mxu1 %v2849_v9  ;;  %v1602_v16 = vcombine.low %v1595_v3, %v1598_v1  ;;  %v1712_v60 = vrot.slane %v1705_v48, %v2944_v18  ;;  %v1809_v44 = vcombine.low %v1063_v37, %v1064_v58  ;;  %v2139_v58 = vld [vmem:[%s3607_s5 + $0x50] sm:$0xff]  ;;  %v2146_v48 = vld [vmem:[%s3607_s5 + $0x88] sm:$0xff]  ;;  %v2145_v62 = vld [vmem:[%s3607_s5 + $0x80] sm:$0xff] }
 0x124   : > { %2520 = vmatprep.subr.msk.mxu1 %vm557_vm1, %v1612_v49  ;;  %v1499_v56 = vcombine.low %v3246_v26, %v1498_v25  ;;  %v1911_v17 = vsel %vm3171_vm8, %v2534_v34, %v1910_v23  ;;  %v1914_v19 = vsel %vm3171_vm8, %v1912_v6, %v1913_v15  ;;  %v2024_v38 = vrot.slane %v2017_v33, %v2944_v18  ;;  %v2147_v34 = vld [vmem:[%s3607_s5 + $0x90] sm:$0xff]  ;;  %v2149_v33 = vld [vmem:[%s3607_s5 + $0xa0] sm:$0xff] }
 0x125   : > { %v1609_v21 = vrot.slane %v1602_v16, %v2944_v18  ;;  %v1713_v42 = vcombine.low %v1393_v41, %v1712_v60  ;;  %v1816_v45 = vrot.slane %v1809_v44, %v2944_v18  ;;  %v1917_v49 = vcombine.low %v1911_v17, %v1914_v19  ;;  %v2152_v41 = vld [vmem:[%s3607_s5 + $0xb8] sm:$0xff]  ;;  %v2153_v16 = vld [vmem:[%s3607_s5 + $0xc0] sm:$0xff]  ;;  %v2158_v44 = vld [vmem:[%s3607_s5 + $0xe8] sm:$0xff] }
 0x126   : > { %2512 = vmatmul.mubr.msk.f32.gmra.mrb[2].mxu1 %vm1152_vm9, %v1394_v2  ;;  %v2025_v26 = vcombine.low %v1712_v60, %v2024_v38  ;;  %v1715_v12 = vcombine.high %v2524_v20, %v2524_v20  ;;  %v2642_v52 = vpack.c.bf16 %v2131_v40, %v2129_v5  ;;  %v2648_v27 = vpack.c.bf16 %v2140_v7, %v2138_v54  ;;  %v2155_v60 = vld [vmem:[%s3607_s5 + $0xd0] sm:$0xff]  ;;  %v2157_v38 = vld [vmem:[%s3607_s5 + $0xe0] sm:$0xff]  ;;  %v2176_v40 = vld [vmem:[%s3607_s5 + $0x178] sm:$0xff] }
 0x127   : > { %1574 = vmatprep.mubr.f32.mxu1 %v2849_v9  ;;  %v1610_v30 = vcombine.low %v3276_v47, %v1609_v21  ;;  %v1817_v57 = vcombine.low %v1498_v25, %v1816_v45  ;;  %v1924_v11 = vrot.slane %v1917_v49, %v2944_v18  ;;  %v1819_v18 = vcombine.high %v2529_v0, %v2529_v0  ;;  %v2133_v47 = vld [vmem:[%s3607_s5 + $0x20] sm:$0xff]  ;;  %v2156_v25 = vld [vmem:[%s3607_s5 + $0xd8] sm:$0xff] }
 0x128   : > { %v2646_v50 = vpack.c.bf16 %v2135_v53, %v2133_v47  ;;  %v2650_v37 = vpack.c.bf16 %v2139_v58, %v2137_v14  ;;  %v2652_v8 = vpack.c.bf16 %v2144_v61, %v2142_v59  ;;  %v2654_v23 = vpack.c.bf16 %v2143_v4, %v2141_v10  ;;  %v2178_v47 = vld [vmem:[%s3607_s5 + $0x188] sm:$0xff]  ;;  %v2180_v53 = vld [vmem:[%s3607_s5 + $0x198] sm:$0xff]  ;;  %v2177_v7 = vld [vmem:[%s3607_s5 + $0x180] sm:$0xff] }
 0x129   : > { %v1925_v51 = vcombine.low %v1609_v21, %v1924_v11  ;;  %v2658_v6 = vpack.c.bf16 %v2147_v34, %v2145_v62  ;;  %v2666_v17 = vpack.c.bf16 %v2155_v60, %v2153_v16  ;;  %v2162_v21 = vld [vmem:[%s3607_s5 + $0x108] sm:$0xff]  ;;  %v2168_v11 = vld [vmem:[%s3607_s5 + $0x138] sm:$0xff]  ;;  %v2688_v54 = vpack.c.bf16 %v2180_v53, %v2178_v47  ;;  %v2181_v61 = vld [vmem:[%s3607_s5 + $0x1a0] sm:$0xff] }
 0x12a   : > { %2516 = vmatmul.mubr.msk.f32.vlgmr.msra.gmra.mrb[0].mxu1 %vm1152_vm9, %v1490_v28  ;;  %v2027_v28 = vcombine.high %v2540_v24, %v2540_v24  ;;  %v2182_v14 = vld [vmem:[%s3607_s5 + $0x1a8] sm:$0xff]  ;;  %v2184_v58 = vld [vmem:[%s3607_s5 + $0x1b8] sm:$0xff] }
 0x12b   : > { %2521 = vmatpush1.msk.msra.mxu1 %vm557_vm1, %v3113_v39  ;;  %1580 = vmatprep.mubr.f32.mxu1 %v2849_v9  ;;  %v2535_v39 = vld [vmem:[%s3606_s4 + $0x38] sm:$0xff]  ;;  %v2692_v59 = vpack.c.bf16 %v2184_v58, %v2182_v14  ;;  %v2186_v10 = vld [vmem:[%s3607_s5 + $0x1c8] sm:$0xff] }
 0x12c   : > { %2525 = vmatprep.subr.msk.mxu1 %vm557_vm1, %v1715_v12  ;;  %v1927_v63 = vcombine.high %v2535_v39, %v2535_v39  ;;  %v2188_v4 = vld [vmem:[%s3607_s5 + $0x1d8] sm:$0xff] }
 0x12d   : > { %v2192_v62 = vld [vmem:[%s3607_s5 + $0x1f8] sm:$0xff] }
 0x12e   : > { %2517 = vmatmul.mubr.msk.f32.gmra.mrb[2].mxu1 %vm1152_vm9, %v1499_v56  ;;  %v2160_v56 = vld [vmem:[%s3607_s5 + $0xf8] sm:$0xff] }
 0x12f   : > { %1685 = vmatprep.mubr.f32.mxu1 %v2849_v9  ;;  %v2668_v19 = vpack.c.bf16 %v2160_v56, %v2158_v44 }
 0x132   : > { %2522 = vmatmul.mubr.msk.f32.vlgmr.msra.gmra.mrb[0].mxu1 %vm1152_vm9, %v1601_v22  ;;  %v2150_v22 = vld [vmem:[%s3607_s5 + $0xa8] sm:$0xff] }
 0x133   : > { %2526 = vmatpush1.msk.msra.mxu1 %vm557_vm1, %v2524_v20  ;;  %1691 = vmatprep.mubr.f32.mxu1 %v2849_v9  ;;  %v2660_v15 = vpack.c.bf16 %v2152_v41, %v2150_v22  ;;  %v2159_v20 = vld [vmem:[%s3607_s5 + $0xf0] sm:$0xff]  ;;  %v2189_v41 = vld [vmem:[%s3607_s5 + $0x1e0] sm:$0xff] }
 0x134   : > { %2530 = vmatprep.subr.msk.mxu1 %vm557_vm1, %v1819_v18  ;;  %v2670_v45 = vpack.c.bf16 %v2159_v20, %v2157_v38  ;;  %v2167_v18 = vld [vmem:[%s3607_s5 + $0x130] sm:$0xff] }
 0x136   : > { %2523 = vmatmul.mubr.msk.f32.gmra.mrb[2].mxu1 %vm1152_vm9, %v1610_v30  ;;  %v2163_v30 = vld [vmem:[%s3607_s5 + $0x110] sm:$0xff] }
 0x137   : > { %1788 = vmatprep.mubr.f32.mxu1 %v2849_v9 }
 0x13a   : > { %2527 = vmatmul.mubr.msk.f32.vlgmr.msra.gmra.mrb[0].mxu1 %vm1152_vm9, %v1704_v35  ;;  %v2151_v35 = vld [vmem:[%s3607_s5 + $0xb0] sm:$0xff] }
 0x13b   : > { %2531 = vmatpush1.msk.msra.mxu1 %vm557_vm1, %v2529_v0  ;;  %1794 = vmatprep.mubr.f32.mxu1 %v2849_v9  ;;  %v2662_v3 = vpack.c.bf16 %v2151_v35, %v2149_v33  ;;  %v2165_v0 = vld [vmem:[%s3607_s5 + $0x120] sm:$0xff] }
 0x13c   : > { %2536 = vmatprep.subr.msk.mxu1 %vm557_vm1, %v1927_v63  ;;  %v2172_v63 = vld [vmem:[%s3607_s5 + $0x158] sm:$0xff] }
 0x13e   : > { %2528 = vmatmul.mubr.msk.f32.gmra.mrb[2].mxu1 %vm1152_vm9, %v1713_v42  ;;  %v2164_v42 = vld [vmem:[%s3607_s5 + $0x118] sm:$0xff] }
 0x13f   : > { %1890 = vmatprep.mubr.f32.mxu1 %v2849_v9  ;;  %v2672_v49 = vpack.c.bf16 %v2164_v42, %v2162_v21 }
 0x142   : > { %2532 = vmatmul.mubr.msk.f32.vlgmr.msra.gmra.mrb[0].mxu1 %vm1152_vm9, %v3260_v29  ;;  %v2130_v29 = vld [vmem:[%s3607_s5 + $0x8] sm:$0xff] }
 0x143   : > { %2537 = vmatpush1.msk.msra.mxu1 %vm557_vm1, %v2535_v39  ;;  %1896 = vmatprep.mubr.f32.mxu1 %v2849_v9  ;;  %v2640_v36 = vpack.c.bf16 %v2132_v31, %v2130_v29  ;;  %v2170_v39 = vld [vmem:[%s3607_s5 + $0x148] sm:$0xff]  ;;  %v2169_v29 = vld [vmem:[%s3607_s5 + $0x140] sm:$0xff]  ;;  %v2171_v31 = vld [vmem:[%s3607_s5 + $0x150] sm:$0xff] }
 0x144   : > { %2541 = vmatprep.subr.msk.mxu1 %vm557_vm1, %v2027_v28  ;;  %v2680_v28 = vpack.c.bf16 %v2172_v63, %v2170_v39  ;;  %v2682_v5 = vpack.c.bf16 %v2171_v31, %v2169_v29  ;;  %v2266_v39 = vsub.s32 0, %v2927_v13 }
 0x145   : > { %2641 = vmatprep.subr.bf16.mxu0 %v2640_v36 }
 0x146   : > { %2533 = vmatmul.mubr.msk.f32.gmra.mrb[2].mxu1 %vm1152_vm9, %v1817_v57  ;;  %2643 = vmatpush1.bf16.msra.mxu0 %v2642_v52  ;;  %v2166_v57 = vld [vmem:[%s3607_s5 + $0x128] sm:$0xff] }
 0x147   : > { %1998 = vmatprep.mubr.f32.mxu1 %v2849_v9 }
 0x14a   : > { %2538 = vmatmul.mubr.msk.f32.vlgmr.msra.gmra.mrb[0].mxu1 %vm1152_vm9, %v3307_v55  ;;  %v2656_v55 = vpack.c.bf16 %v2148_v32, %v2146_v48  ;;  %v2185_v48 = vld [vmem:[%s3607_s5 + $0x1c0] sm:$0xff]  ;;  %v2696_v32 = vpack.c.bf16 %v2188_v4, %v2186_v10 }
 0x14b   : > { %2542 = vmatpush1.msk.msra.mxu1 %vm557_vm1, %v2540_v24  ;;  %2004 = vmatprep.mubr.f32.mxu1 %v2849_v9  ;;  %v2678_v24 = vpack.c.bf16 %v2167_v18, %v2165_v0 }
 0x14c   : > { %2705 = vmatprep.subr.bf16.mxu1 %v2640_v36  ;;  %v2174_v36 = vld [vmem:[%s3607_s5 + $0x168] sm:$0xff] }
 0x14e   : > { %2539 = vmatmul.mubr.msk.f32.gmra.mrb[2].mxu1 %vm1152_vm9, %v1925_v51  ;;  %v2676_v51 = vpack.c.bf16 %v2168_v11, %v2166_v57 }
 0x14f   : > { %2098 = vmatprep.mubr.f32.mxu1 %v2849_v9 }
 0x152   : > { %2543 = vmatmul.mubr.msk.f32.vlgmr.msra.gmra.mrb[0].mxu1 %vm1152_vm9, %v1394_v2  ;;  %v2154_v2 = vld [vmem:[%s3607_s5 + $0xc8] sm:$0xff] }
 0x153   : > { %2104 = vmatprep.mubr.f32.mxu1 %v2849_v9  ;;  %v2134_v9 = vld [vmem:[%s3607_s5 + $0x28] sm:$0xff]  ;;  %2707 = vmatpush1.bf16.msra.mxu1 %v2642_v52  ;;  %v2664_v1 = vpack.c.bf16 %v2156_v25, %v2154_v2  ;;  %v2175_v52 = vld [vmem:[%s3607_s5 + $0x170] sm:$0xff] }
 0x154   : > { %v2644_v46 = vpack.c.bf16 %v2136_v43, %v2134_v9  ;;  %v2684_v9 = vpack.c.bf16 %v2176_v40, %v2174_v36  ;;  %v2173_v43 = vld [vmem:[%s3607_s5 + $0x160] sm:$0xff] }
 0x156   : > { %2544 = vmatmul.mubr.msk.f32.gmra.mrb[2].mxu1 %vm1152_vm9, %v2025_v26  ;;  %2645 = vmatprep.subr.bf16.mxu0 %v2644_v46  ;;  %v2161_v26 = vld [vmem:[%s3607_s5 + $0x100] sm:$0xff] }
 0x157   : > { %2709 = vmatprep.subr.bf16.mxu1 %v2644_v46  ;;  %2647 = vmatpush1.bf16.msra.mxu0 %v2646_v50  ;;  %v2674_v12 = vpack.c.bf16 %v2163_v30, %v2161_v26  ;;  %v2686_v46 = vpack.c.bf16 %v2175_v52, %v2173_v43 }
 0x158   : > { %2711 = vmatpush1.bf16.msra.mxu1 %v2646_v50  ;;  %2649 = vmatprep.subr.bf16.mxu0 %v2648_v27  ;;  %v2179_v50 = vld [vmem:[%s3607_s5 + $0x190] sm:$0xff] }
 0x159   : > { %2713 = vmatprep.subr.bf16.mxu1 %v2648_v27  ;;  %v2690_v27 = vpack.c.bf16 %v2179_v50, %v2177_v7 }
 0x15b   : > { %2651 = vmatpush1.bf16.msra.mxu0 %v2650_v37 }
 0x15c   : > { %2715 = vmatpush1.bf16.msra.mxu1 %v2650_v37  ;;  %2653 = vmatprep.subr.bf16.mxu0 %v2652_v8  ;;  %v2183_v37 = vld [vmem:[%s3607_s5 + $0x1b0] sm:$0xff] }
 0x15d   : > { %2717 = vmatprep.subr.bf16.mxu1 %v2652_v8  ;;  %v2694_v8 = vpack.c.bf16 %v2183_v37, %v2181_v61 }
 0x15f   : > { %2655 = vmatpush1.bf16.msra.mxu0 %v2654_v23 }
 0x160   : > { %2719 = vmatpush1.bf16.msra.mxu1 %v2654_v23  ;;  %2657 = vmatprep.subr.bf16.mxu0 %v2656_v55  ;;  %v2187_v23 = vld [vmem:[%s3607_s5 + $0x1d0] sm:$0xff] }
 0x161   : > { %2721 = vmatprep.subr.bf16.mxu1 %v2656_v55  ;;  %v2190_v55 = vld [vmem:[%s3607_s5 + $0x1e8] sm:$0xff]  ;;  %v2698_v34 = vpack.c.bf16 %v2187_v23, %v2185_v48 }
 0x162   : > { %v2700_v22 = vpack.c.bf16 %v2192_v62, %v2190_v55  ;;  %v2379_v62 = vld [vmem:[%s3608_s6] sm:$0x3] }
 0x163   : > { %2659 = vmatpush1.bf16.msra.mxu0 %v2658_v6 }
 0x164   : > { %2723 = vmatpush1.bf16.msra.mxu1 %v2658_v6  ;;  %2661 = vmatprep.subr.bf16.mxu0 %v2660_v15  ;;  %v2191_v6 = vld [vmem:[%s3607_s5 + $0x1f0] sm:$0xff] }
 0x165   : > { %2725 = vmatprep.subr.bf16.mxu1 %v2660_v15  ;;  %v2702_v15 = vpack.c.bf16 %v2191_v6, %v2189_v41  ;;  %v2395_v41 = vld [vmem:[%s3609_s7] sm:$0x3] }
 0x167   : > { %2663 = vmatpush1.bf16.msra.mxu0 %v2662_v3 }
 0x168   : > { %2727 = vmatpush1.bf16.msra.mxu1 %v2662_v3  ;;  %2665 = vmatprep.subr.bf16.mxu0 %v2664_v1 }
 0x169   : > { %2729 = vmatprep.subr.bf16.mxu1 %v2664_v1 }
 0x16b   : > { %2667 = vmatpush1.bf16.msra.mxu0 %v2666_v17 }
 0x16c   : > { %2731 = vmatpush1.bf16.msra.mxu1 %v2666_v17  ;;  %2669 = vmatprep.subr.bf16.mxu0 %v2668_v19 }
 0x16d   : > { %2733 = vmatprep.subr.bf16.mxu1 %v2668_v19 }
 0x16f   : > { %2671 = vmatpush1.bf16.msra.mxu0 %v2670_v45 }
 0x170   : > { %2735 = vmatpush1.bf16.msra.mxu1 %v2670_v45  ;;  %2673 = vmatprep.subr.bf16.mxu0 %v2672_v49 }
 0x171   : > { %2737 = vmatprep.subr.bf16.mxu1 %v2672_v49 }
 0x173   : > { %2675 = vmatpush1.bf16.msra.mxu0 %v2674_v12 }
 0x174   : > { %2739 = vmatpush1.bf16.msra.mxu1 %v2674_v12  ;;  %2677 = vmatprep.subr.bf16.mxu0 %v2676_v51 }
 0x175   : > { %2741 = vmatprep.subr.bf16.mxu1 %v2676_v51 }
 0x177   : > { %2679 = vmatpush1.bf16.msra.mxu0 %v2678_v24 }
 0x178   : > { %2743 = vmatpush1.bf16.msra.mxu1 %v2678_v24  ;;  %2681 = vmatprep.subr.bf16.mxu0 %v2680_v28 }
 0x179   : > { %2745 = vmatprep.subr.bf16.mxu1 %v2680_v28 }
 0x17b   : > { %2683 = vmatpush1.bf16.msra.mxu0 %v2682_v5 }
 0x17c   : > { %2747 = vmatpush1.bf16.msra.mxu1 %v2682_v5  ;;  %2685 = vmatprep.subr.bf16.mxu0 %v2684_v9 }
 0x17d   : > { %2749 = vmatprep.subr.bf16.mxu1 %v2684_v9 }
 0x17f   : > { %2687 = vmatpush1.bf16.msra.mxu0 %v2686_v46 }
 0x180   : > { %2751 = vmatpush1.bf16.msra.mxu1 %v2686_v46  ;;  %2689 = vmatprep.subr.bf16.mxu0 %v2688_v54 }
 0x181   : > { %2753 = vmatprep.subr.bf16.mxu1 %v2688_v54 }
 0x183   : > { %2691 = vmatpush1.bf16.msra.mxu0 %v2690_v27 }
 0x184   : > { %2755 = vmatpush1.bf16.msra.mxu1 %v2690_v27  ;;  %2693 = vmatprep.subr.bf16.mxu0 %v2692_v59 }
 0x185   : > { %2757 = vmatprep.subr.bf16.mxu1 %v2692_v59 }
 0x187   : > { %2695 = vmatpush1.bf16.msra.mxu0 %v2694_v8 }
 0x188   : > { %2759 = vmatpush1.bf16.msra.mxu1 %v2694_v8  ;;  %2697 = vmatprep.subr.bf16.mxu0 %v2696_v32 }
 0x189   : > { %2761 = vmatprep.subr.bf16.mxu1 %v2696_v32 }
 0x18b   : > { %2699 = vmatpush1.bf16.msra.mxu0 %v2698_v34 }
 0x18c   : > { %2763 = vmatpush1.bf16.msra.mxu1 %v2698_v34  ;;  %2701 = vmatprep.subr.bf16.mxu0 %v2700_v22  ;;  %v2387_v34 = vsub.s32 1, %v2927_v13 }
 0x18d   : > { %2765 = vmatprep.subr.bf16.mxu1 %v2700_v22 }
 0x18f   : > { %2703 = vmatpush1.bf16.msra.mxu0 %v2702_v15 }
 0x190   : > { %2767 = vmatpush1.bf16.msra.mxu1 %v2702_v15 }
 0x1ea   : > { %v1227_v33 = vpop.f32.mrb[10].mxu0 }
 0x1eb   : > { %v1229_v35 = vpop.f32.mrb[11].mxu0 }
 0x1f4   : > { %v1233_v2 = vpop.f32.mrb[12].mxu0 }
 0x1f5   : > { %v1235_v25 = vpop.f32.mrb[13].mxu0 }
 0x225   : > { %v2100_v3 = vpop.f32.mrb[0].mxu1 }
 0x226   : > { %v2768_v1 = vadd.f32 %v2100_v3, %v1227_v33  ;;  %v2102_v16 = vpop.f32.mrb[1].mxu1  ;;  %v2384_v33 = vrot.slane %v2379_v62, %v2266_v39 }
 0x227   : > { %v2769_v60 = vadd.f32 %v2102_v16, %v1229_v35 }
 0x229   : > { %v2106_v44 = vpop.f32.mrb[2].mxu1 }
 0x22a   : > { %v2770_v56 = vadd.f32 %v2106_v44, %v1233_v2  ;;  %v2108_v17 = vpop.f32.mrb[3].mxu1  ;;  %v2388_v2 = vrot.slane %v2379_v62, %v2387_v34  ;;  %v2404_v44 = vrot.slane %v2395_v41, %v2387_v34 }
 0x22b   : > { %v2771_v19 = vadd.f32 %v2108_v17, %v1235_v25 }
 0x22c   : > { %v2115_v38 = vadd.f32 %v2770_v56, %v2768_v1 }
 0x22d   : > { %v2122_v20 = vadd.f32 %v2771_v19, %v2769_v60 }
 0x22e   : > { %v2116_v21 = vrot.slane %v2115_v38, 4 }
 0x22f   : > { %v2123_v42 = vrot.slane %v2122_v20, 4 }
 0x230   : > { %v2117_v45 = vadd.f32 %v2116_v21, %v2115_v38 }
 0x231   : > { %v2124_v49 = vadd.f32 %v2123_v42, %v2122_v20 }
 0x232   : > { %v2118_v26 = vrot.slane %v2117_v45, 2 }
 0x233   : > { %v2125_v30 = vrot.slane %v2124_v49, 2 }
 0x234   : > { %v2119_v57 = vadd.f32 %v2118_v26, %v2117_v45 }
 0x235   : > { %v2126_v11 = vadd.f32 %v2125_v30, %v2124_v49 }
 0x236   : > { %v2120_v12 = vrot.slane %v2119_v57, 1 }
 0x237   : > { %v2127_v51 = vrot.slane %v2126_v11, 1 }
 0x238   : > { %v2121_v18 = vadd.f32 %v2120_v12, %v2119_v57 }
 0x239   : > { %v2128_v0 = vadd.f32 %v2127_v51, %v2126_v11 }
 0x23b   : > { %2257 = vmatprep.mubr.f32.mxu0 %v2128_v0 }
 0x23c   : > { %2258 = vmatmul.mubr.f32.vlgmr.msra.gmra.mrb[14].mxu0 %v2121_v18 }
 0x30f   : > { %v2259_v63 = vpop.f32.mrb[14].mxu0 }
 0x310   : > { %v2267_v24 = vrot.slane %v2259_v63, %v2266_v39  ;;  %v2261_v28 = vpop.f32.mrb[15].mxu0 }
 0x311   : > { %v2271_v29 = vrot.slane %v2261_v28, %v2266_v39 }
 0x312   : > { %v2272_v31 = vsub.f32 %v2768_v1, %v2267_v24  ;;  %v2274_v5 = vsub.f32 %v2770_v56, %v2267_v24  ;;  %v2400_v1 = vrot.slane %v2395_v41, %v2266_v39 }
 0x313   : > { %v2273_v36 = vsub.f32 %v2769_v60, %v2271_v29  ;;  %v2275_v40 = vsub.f32 %v2771_v19, %v2271_v29 }
 0x314   : > { %v2276_v9 = vmul.f32 %v2272_v31, %v2272_v31  ;;  %v2278_v43 = vmul.f32 %v2274_v5, %v2274_v5 }
 0x315   : > { %v2277_v52 = vmul.f32 %v2273_v36, %v2273_v36  ;;  %v2279_v46 = vmul.f32 %v2275_v40, %v2275_v40 }
 0x316   : > { %v2280_v47 = vadd.f32 %v2278_v43, %v2276_v9 }
 0x317   : > { %v2287_v53 = vadd.f32 %v2279_v46, %v2277_v52 }
 0x318   : > { %v2281_v54 = vrot.slane %v2280_v47, 4 }
 0x319   : > { %v2288_v7 = vrot.slane %v2287_v53, 4 }
 0x31a   : > { %v2282_v50 = vadd.f32 %v2281_v54, %v2280_v47 }
 0x31b   : > { %v2289_v27 = vadd.f32 %v2288_v7, %v2287_v53 }
 0x31c   : > { %v2283_v14 = vrot.slane %v2282_v50, 2 }
 0x31d   : > { %v2290_v58 = vrot.slane %v2289_v27, 2 }
 0x31e   : > { %v2284_v59 = vadd.f32 %v2283_v14, %v2282_v50 }
 0x31f   : > { %v2291_v61 = vadd.f32 %v2290_v58, %v2289_v27 }
 0x320   : > { %v2285_v37 = vrot.slane %v2284_v59, 1 }
 0x321   : > { %v2292_v8 = vrot.slane %v2291_v61, 1 }
 0x322   : > { %v2286_v4 = vadd.f32 %v2285_v37, %v2284_v59 }
 0x323   : > { %v2293_v10 = vadd.f32 %v2292_v8, %v2291_v61 }
 0x325   : > { %2358 = vmatprep.mubr.f32.mxu1 %v2293_v10 }
 0x326   : > { %2359 = vmatmul.mubr.f32.vlgmr.msra.gmra.mrb[4].mxu1 %v2286_v4 }
 0x3f9   : > { %v2360_v48 = vpop.f32.mrb[4].mxu1 }
 0x3fa   : > { %v2361_v32 = vadd.f32 1e-05, %v2360_v48  ;;  %v2362_v23 = vpop.f32.mrb[5].mxu1 }
 0x3fb   : > { %v2363_v55 = vadd.f32 1e-05, %v2362_v23 }
 0x3fc   : > { %2834 = vrsqrt.f32 %v2361_v32 }
 0x3fd   : > { %2836 = vrsqrt.f32 %v2363_v55 }
 0x406   : > { %v2835_v22 = vpop.eup %2834 }
 0x407   : > { %v2837_v6 = vpop.eup %2836  ;;  %v2370_v15 = vrot.slane %v2835_v22, %v2266_v39 }
 0x408   : > { %v2374_v35 = vrot.slane %v2837_v6, %v2266_v39 }
 0x409   : > { %v2375_v25 = vmul.f32 %v2370_v15, %v2272_v31  ;;  %v2377_v3 = vmul.f32 %v2370_v15, %v2274_v5 }
 0x40a   : > { %v2376_v16 = vmul.f32 %v2374_v35, %v2273_v36  ;;  %v2378_v60 = vmul.f32 %v2374_v35, %v2275_v40 }
 0x40b   : > { %v2391_v56 = vmul.f32 %v2384_v33, %v2375_v25  ;;  %v2393_v17 = vmul.f32 %v2384_v33, %v2377_v3 }
 0x40c   : > { %v2392_v13 = vmul.f32 %v2388_v2, %v2376_v16  ;;  %v2394_v19 = vmul.f32 %v2388_v2, %v2378_v60 }
 0x40d   : > { %v2407_v38 = vadd.f32 %v2400_v1, %v2391_v56  ;;  %v2409_v20 = vadd.f32 %v2400_v1, %v2393_v17 }
 0x40e   : > { %v2408_v21 = vadd.f32 %v2404_v44, %v2392_v13  ;;  %v2410_v42 = vadd.f32 %v2404_v44, %v2394_v19 }
 0x40f   : > { %v2411_v45 = vmax.f32 %v2407_v38, 0.0  ;;  %v2413_v49 = vmax.f32 %v2409_v20, 0.0 }
 0x410   : > { %v2412_v26 = vmax.f32 %v2408_v21, 0.0  ;;  %v2414_v30 = vmax.f32 %v2410_v42, 0.0 }
 0x412   : > { %v2419_v57 = vcombine.low %v2411_v45, %v2412_v26  ;;  %v2420_v11 = vcombine.high %v2411_v45, %v2412_v26  ;;  %v2421_v12 = vcombine.low %v2413_v49, %v2414_v30  ;;  %v2422_v51 = vcombine.high %v2413_v49, %v2414_v30 }
 0x414   : > { %2427 = vst [vmem:[%s305_s10] sm:$0xff] %v2419_v57  ;;  %2428 = vst [vmem:[%s305_s10 + $0x8] sm:$0xff] %v2420_v11 }
 0x415   : > { %2429 = vst [vmem:[%s305_s10 + $0x10] sm:$0xff] %v2421_v12  ;;  %2430 = vst [vmem:[%s305_s10 + $0x18] sm:$0xff] %v2422_v51 }
 0x416 PF: > { %s18_s27 = sadd.s32 1, %s2844_s27  }
 0x417   : > { %p15_p4 = scmp.ge.s32.totalorder %s18_s27, 4  }
 0x419   :  { %17 = sbr.rel (!%p15_p4) target bundleno = 1 (0x1), region = 90 }

// kernel: protonet_forward.6
= control target key start
LH: loop header
LB: loop body
LE: loop exit
PB: predicated region body
PF: predicated region fallthrough
CT: control target
= control target key end

     0   :  { %s2745_s18 = smov 0   ;;  %s3371_s0 = inlined_call_operand.vmem [shape: f32[2,10,10,64], index: 0, kind: input, shape index: {}]   ;;  %s3372_s1 = inlined_call_operand.vmem [shape: f32[9,64,128], index: 1, kind: input, shape index: {}]   ;;  %s3373_s2 = inlined_call_operand.vmem [shape: f32[128,128], index: 2, kind: input, shape index: {}]   ;;  %s3374_s3 = inlined_call_operand.vmem [shape: f32[1,128], index: 3, kind: input, shape index: {}]   ;;  %s3375_s4 = inlined_call_operand.vmem [shape: f32[1,128], index: 4, kind: input, shape index: {}]   ;;  %s3376_s5 = inlined_call_operand.vmem [shape: f32[2,8,8,128], index: 5, kind: output, shape index: {}]  }
   0x1 LB: > { %s1785_s19 = sadd.s32 4294967295, %s2710_s18   ;;  %p1789_p0 = scmp.ge.s32.totalorder %s2710_s18, 1  ;;  %s2710_s18 = sphi %s2745_s18, %s15_s18  }
   0x2   : > { %p187_p1 = scmp.lt.s32.totalorder %s2710_s18, 3 }
   0x4   : > { %p188_p2 = pnand %p1789_p0, %p187_p1 }
   0x5   : > { %v1833_v0 = vld [vmem:[%s3372_s1 + $0xc0] sm:$0xff] (!%p188_p2)  ;;  %v1834_v1 = vld [vmem:[%s3372_s1 + $0xc8] sm:$0xff] (!%p188_p2)  ;;  %v1835_v2 = vld [vmem:[%s3372_s1 + $0xd0] sm:$0xff] (!%p188_p2)  ;;  %p215_p3 = scmp.lt.s32.totalorder (!%p188_p2), %s1785_s19, 1  ;;  %vm303_vm0 = vcmask (!%p188_p2), 523264   ;;  %vm269_vm1 = vcmask (!%p188_p2), 1046528  }
   0x6   : > { %191 = sbr.rel (%p188_p2) target bundleno = 830 (0x33e), region = 40  ;;  %v2482_v3 = vpack.c.bf16 (!%p188_p2), %v1834_v1, %v1833_v0  ;;  %v1836_v4 = vld [vmem:[%s3372_s1 + $0xd8] sm:$0xff] (!%p188_p2)  ;;  %v1837_v6 = vld [vmem:[%s3372_s1 + $0xe0] sm:$0xff] (!%p188_p2)  ;;  %v1838_v7 = vld [vmem:[%s3372_s1 + $0xe8] sm:$0xff] (!%p188_p2)  ;;  %vm546_vm2 = vcmask (!%p188_p2), 1045504   ;;  %vm2713_vm3 = vmmov (!%p188_p2), 0  }
   0x7   : > { %v2486_v5 = vpack.c.bf16 (!%p188_p2), %v1836_v4, %v1835_v2  ;;  %v1793_v8 = vld [vmem:[%s3372_s1 + $0x40] sm:$0xff] (!%p188_p2)  ;;  %v1794_v9 = vld [vmem:[%s3372_s1 + $0x48] sm:$0xff] (!%p188_p2)  ;;  %v1795_v11 = vld [vmem:[%s3372_s1 + $0x50] sm:$0xff] (!%p188_p2)  ;;  %v2490_v13 = vpack.c.bf16 (!%p188_p2), %v1838_v7, %v1837_v6 }
   0x8   : > { %2483 = vmatprep.subr.bf16.mxu0 (!%p188_p2), %v2482_v3  ;;  %v2434_v10 = vpack.c.bf16 (!%p188_p2), %v1794_v9, %v1793_v8  ;;  %v1796_v12 = vld [vmem:[%s3372_s1 + $0x58] sm:$0xff] (!%p188_p2)  ;;  %v1797_v15 = vld [vmem:[%s3372_s1 + $0x60] sm:$0xff] (!%p188_p2)  ;;  %v1798_v16 = vld [vmem:[%s3372_s1 + $0x68] sm:$0xff] (!%p188_p2) }
   0x9   : > { %2485 = vmatpush3.bf16.msra.mxu0 (!%p188_p2), %v2482_v3  ;;  %v2438_v14 = vpack.c.bf16 (!%p188_p2), %v1796_v12, %v1795_v11  ;;  %v1839_v17 = vld [vmem:[%s3372_s1 + $0xf0] sm:$0xff] (!%p188_p2)  ;;  %v1840_v18 = vld [vmem:[%s3372_s1 + $0xf8] sm:$0xff] (!%p188_p2)  ;;  %v2442_v20 = vpack.c.bf16 (!%p188_p2), %v1798_v16, %v1797_v15  ;;  %v1849_v24 = vld [vmem:[%s3372_s1 + $0x100] sm:$0xff] (!%p188_p2) }
   0xa   : > { %2487 = vmatprep.subr.bf16.mxu0 (!%p188_p2), %v2486_v5  ;;  %2435 = vmatprep.subr.bf16.mxu1 (!%p188_p2), %v2434_v10  ;;  %v2494_v21 = vpack.c.bf16 (!%p188_p2), %v1840_v18, %v1839_v17  ;;  %v1799_v22 = vld [vmem:[%s3372_s1 + $0x70] sm:$0xff] (!%p188_p2)  ;;  %v1800_v23 = vld [vmem:[%s3372_s1 + $0x78] sm:$0xff] (!%p188_p2)  ;;  %v1850_v25 = vld [vmem:[%s3372_s1 + $0x108] sm:$0xff] (!%p188_p2) }
   0xb   : > { %2437 = vmatpush3.bf16.msra.mxu1 (!%p188_p2), %v2434_v10  ;;  %v2446_v28 = vpack.c.bf16 (!%p188_p2), %v1800_v23, %v1799_v22  ;;  %v2498_v32 = vpack.c.bf16 (!%p188_p2), %v1850_v25, %v1849_v24  ;;  %v1851_v33 = vld [vmem:[%s3372_s1 + $0x110] sm:$0xff] (!%p188_p2)  ;;  %v1852_v34 = vld [vmem:[%s3372_s1 + $0x118] sm:$0xff] (!%p188_p2)  ;;  %v245_v36 = vld [vmem:[%s3372_s1] sm:$0xff] (!%p188_p2) }
   0xc   : > { %2439 = vmatprep.subr.bf16.mxu1 (!%p188_p2), %v2438_v14  ;;  %v246_v37 = vld [vmem:[%s3372_s1 + $0x8] sm:$0xff] (!%p188_p2)  ;;  %v2502_v43 = vpack.c.bf16 (!%p188_p2), %v1852_v34, %v1851_v33  ;;  %v1853_v46 = vld [vmem:[%s3372_s1 + $0x120] sm:$0xff] (!%p188_p2)  ;;  %v247_v51 = vld [vmem:[%s3372_s1 + $0x10] sm:$0xff] (!%p188_p2) }
   0xd   : > { %s3378_s19 = smov (!%p215_p3, %s1785_s19), 1  ;;  %2489 = vmatpush3.bf16.msra.mxu0 %v2486_v5  ;;  %v2450_v44 = vpack.c.bf16 %v246_v37, %v245_v36  ;;  %v1854_v47 = vld [vmem:[%s3372_s1 + $0x128] sm:$0xff]  ;;  %v248_v52 = vld [vmem:[%s3372_s1 + $0x18] sm:$0xff]  ;;  %v1855_v60 = vld [vmem:[%s3372_s1 + $0x130] sm:$0xff] }
   0xe   : > { %s2690_s11 = smul.u32 160, %s3378_s19  ;;  %2491 = vmatprep.subr.bf16.mxu0 %v2490_v13  ;;  %v2506_v58 = vpack.c.bf16 %v1854_v47, %v1853_v46  ;;  %v1856_v61 = vld [vmem:[%s3372_s1 + $0x138] sm:$0xff]  ;;  %v2454_v62 = vpack.c.bf16 %v248_v52, %v247_v51  ;;  %v249_v2 = vld [vmem:[%s3372_s1 + $0x20] sm:$0xff]  ;;  %v250_v3 = vld [vmem:[%s3372_s1 + $0x28] sm:$0xff] }
   0xf   : > { %2441 = vmatpush3.bf16.msra.mxu1 %v2438_v14  ;;  %v2510_v10 = vpack.c.bf16 %v1856_v61, %v1855_v60  ;;  %v1865_v12 = vld [vmem:[%s3372_s1 + $0x140] sm:$0xff]  ;;  %v2458_v14 = vpack.c.bf16 %v250_v3, %v249_v2  ;;  %v251_v18 = vld [vmem:[%s3372_s1 + $0x30] sm:$0xff]  ;;  %v1818_v37 = vld [vmem:[%s3372_s1 + $0x88] sm:$0xff] }
  0x10   : > { %s2801_s28 = scalar_lea.vmem %s3371_s0, %s2690_s11  ;;  %2443 = vmatprep.subr.bf16.mxu1 %v2442_v20  ;;  %v1817_v36 = vld [vmem:[%s3372_s1 + $0x80] sm:$0xff]  ;;  %v1870_v47 = vld [vmem:[%s3372_s1 + $0x168] sm:$0xff] }
  0x11   : > { %v2804_v19 = vld [vmem:[%s2801_s28 + $0x10] sm:$0xff]  ;;  %v2821_v26 = vld [vmem:[%s2801_s28] sm:$0xff]  ;;  %v2824_v27 = vld [vmem:[%s2801_s28 + $0x8] sm:$0x3]  ;;  %2493 = vmatpush3.bf16.msra.mxu0 %v2490_v13 }
  0x12   : > { %2212 = vmatprep.mubr.msk.f32.mxu0 %vm303_vm0, %v2804_v19  ;;  %v270_v29 = vrot.slane %v2821_v26, 1  ;;  %v271_v30 = vrot.slane %v2824_v27, 1  ;;  %v2829_v31 = vld [vmem:[%s2801_s28 + $0x18] sm:$0x3]  ;;  %2495 = vmatprep.subr.bf16.mxu0 %v2494_v21  ;;  %v273_v38 = vrot.slane %v2804_v19, 1  ;;  %v2848_v40 = vld [vmem:[%s2801_s28 + $0x20] sm:$0xff] }
  0x13   : > { %2445 = vmatpush3.bf16.msra.mxu1 %v2442_v20  ;;  %v274_v39 = vrot.slane %v2829_v31, 1  ;;  %v2851_v41 = vld [vmem:[%s2801_s28 + $0x38] sm:$0x3]  ;;  %v2854_v42 = vld [vmem:[%s2801_s28 + $0x30] sm:$0xff]  ;;  %v2857_v45 = vld [vmem:[%s2801_s28 + $0x28] sm:$0x3] }
  0x14   : > { %v272_v35 = vsel %vm269_vm1, %v270_v29, %v271_v30  ;;  %2447 = vmatprep.subr.bf16.mxu1 %v2446_v28  ;;  %v279_v49 = vrot.slane %v2854_v42, 1  ;;  %v280_v50 = vrot.slane %v2851_v41, 1  ;;  %v276_v53 = vrot.slane %v2848_v40, 1  ;;  %v2882_v54 = vld [vmem:[%s2801_s28 + $0x40] sm:$0xff]  ;;  %v2886_v56 = vld [vmem:[%s2801_s28 + $0x58] sm:$0x3] }
  0x15   : > { %2128 = vmatprep.mubr.msk.f32.mxu1 %vm303_vm0, %v272_v35  ;;  %2497 = vmatpush3.bf16.msra.mxu0 %v2494_v21  ;;  %v2868_v48 = vsel %vm269_vm1, %v273_v38, %v274_v39  ;;  %v277_v55 = vrot.slane %v2857_v45, 1  ;;  %v2889_v57 = vld [vmem:[%s2801_s28 + $0x50] sm:$0xff]  ;;  %v2892_v59 = vld [vmem:[%s2801_s28 + $0x48] sm:$0x3]  ;;  %v286_v1 = vrot.slane %v2886_v56, 1  ;;  %v2918_v4 = vld [vmem:[%s2801_s28 + $0x60] sm:$0xff] }
  0x16   : > { %2499 = vmatprep.subr.bf16.mxu0 %v2498_v32  ;;  %v2905_v63 = vsel %vm269_vm1, %v279_v49, %v280_v50  ;;  %v285_v0 = vrot.slane %v2889_v57, 1  ;;  %v282_v6 = vrot.slane %v2882_v54, 1  ;;  %v283_v7 = vrot.slane %v2892_v59, 1  ;;  %v2926_v8 = vld [vmem:[%s2801_s28 + $0x78] sm:$0x3]  ;;  %v2929_v9 = vld [vmem:[%s2801_s28 + $0x70] sm:$0xff] }
  0x17   : > { %2449 = vmatpush3.bf16.msra.mxu1 %v2446_v28  ;;  %v2921_v5 = vsel %vm269_vm1, %v276_v53, %v277_v55  ;;  %v2934_v11 = vld [vmem:[%s2801_s28 + $0x68] sm:$0x3]  ;;  %v291_v16 = vrot.slane %v2929_v9, 1  ;;  %v292_v17 = vrot.slane %v2926_v8, 1  ;;  %v252_v20 = vld [vmem:[%s3372_s1 + $0x38] sm:$0xff]  ;;  %v2960_v21 = vld [vmem:[%s2801_s28 + $0x80] sm:$0xff] }
  0x18   : > { %2213 = vmatmul.mubr.msk.f32.vlgmr.msra.gmra.mrb[0].mxu0 %vm303_vm0, %v2848_v40  ;;  %2451 = vmatprep.subr.bf16.mxu1 %v2450_v44  ;;  %v1866_v13 = vld [vmem:[%s3372_s1 + $0x148] sm:$0xff]  ;;  %v2947_v15 = vsel %vm269_vm1, %v285_v0, %v286_v1  ;;  %v2963_v22 = vsel %vm269_vm1, %v282_v6, %v283_v7  ;;  %v288_v23 = vrot.slane %v2918_v4, 1  ;;  %v289_v24 = vrot.slane %v2934_v11, 1  ;;  %v2968_v25 = vld [vmem:[%s2801_s28 + $0x90] sm:$0xff]  ;;  %v2982_v34 = vld [vmem:[%s2801_s28 + $0x98] sm:$0x3] }
  0x19   : > { %2501 = vmatpush3.bf16.msra.mxu0 %v2498_v32  ;;  %2215 = vmatprep.mubr.msk.f32.mxu0 %vm303_vm0, %v2854_v42  ;;  %v2514_v28 = vpack.c.bf16 %v1866_v13, %v1865_v12  ;;  %v1215_v29 = vrot.slane %v2968_v25, 1  ;;  %v1867_v30 = vld [vmem:[%s3372_s1 + $0x150] sm:$0xff]  ;;  %v1868_v32 = vld [vmem:[%s3372_s1 + $0x158] sm:$0xff]  ;;  %v2462_v33 = vpack.c.bf16 %v252_v20, %v251_v18  ;;  %v2987_v35 = vsel %vm269_vm1, %v291_v16, %v292_v17  ;;  %v1869_v46 = vld [vmem:[%s3372_s1 + $0x160] sm:$0xff] }
  0x1a   : > { %2503 = vmatprep.subr.bf16.mxu0 %v2502_v43  ;;  %2129 = vmatmul.mubr.msk.f32.vlgmr.msra.gmra.mrb[0].mxu1 %vm303_vm0, %v2868_v48  ;;  %v1216_v38 = vrot.slane %v2982_v34, 1  ;;  %v2999_v39 = vsel %vm269_vm1, %v288_v23, %v289_v24  ;;  %v1819_v49 = vld [vmem:[%s3372_s1 + $0x90] sm:$0xff]  ;;  %v1820_v50 = vld [vmem:[%s3372_s1 + $0x98] sm:$0xff]  ;;  %v2522_v51 = vpack.c.bf16 %v1870_v47, %v1869_v46  ;;  %v3025_v52 = vld [vmem:[%s2801_s28 + $0x88] sm:$0x3]  ;;  %v550_v1 = vrot.slane %v2804_v19, 2 }
  0x1b   : > { %2453 = vmatpush3.bf16.msra.mxu1 %v2450_v44  ;;  %2131 = vmatprep.mubr.msk.f32.mxu1 %vm303_vm0, %v2921_v5  ;;  %v1871_v53 = vld [vmem:[%s3372_s1 + $0x170] sm:$0xff]  ;;  %v1872_v55 = vld [vmem:[%s3372_s1 + $0x178] sm:$0xff]  ;;  %v1821_v60 = vld [vmem:[%s3372_s1 + $0xa0] sm:$0xff]  ;;  %v836_v0 = vrot.slane %v3025_v52, 1  ;;  %v551_v3 = vrot.slane %v2829_v31, 2  ;;  %v553_v12 = vrot.slane %v2848_v40, 2 }
  0x1c   : > { %2216 = vmatmul.mubr.msk.f32.gmra.mrb[2].mxu0 %vm303_vm0, %v2882_v54  ;;  %2455 = vmatprep.subr.bf16.mxu1 %v2454_v62  ;;  %v3004_v44 = vsel %vm269_vm1, %v1215_v29, %v1216_v38  ;;  %v1822_v61 = vld [vmem:[%s3372_s1 + $0xa8] sm:$0xff]  ;;  %v2526_v2 = vpack.c.bf16 %v1872_v55, %v1871_v53  ;;  %v1881_v6 = vld [vmem:[%s3372_s1 + $0x180] sm:$0xff]  ;;  %v1823_v31 = vld [vmem:[%s3372_s1 + $0xb0] sm:$0xff]  ;;  %v556_v18 = vrot.slane %v2854_v42, 2  ;;  %v557_v20 = vrot.slane %v2851_v41, 2  ;;  %s1933_s28 = sshll.u32 %s3378_s19, 6 }
  0x1d   : > { %2505 = vmatpush3.bf16.msra.mxu0 %v2502_v43  ;;  %2218 = vmatprep.mubr.msk.f32.mxu0 %vm303_vm0, %v2889_v57  ;;  %v2518_v43 = vpack.c.bf16 %v1868_v32, %v1867_v30  ;;  %v1882_v7 = vld [vmem:[%s3372_s1 + $0x188] sm:$0xff]  ;;  %v552_v16 = vsel %vm546_vm2, %v550_v1, %v551_v3  ;;  %v548_v23 = vrot.slane %v2824_v27, 2  ;;  %v1883_v24 = vld [vmem:[%s3372_s1 + $0x190] sm:$0xff]  ;;  %v547_v41 = vrot.slane %v2821_v26, 2  ;;  %v1888_v53 = vld [vmem:[%s3372_s1 + $0x1b8] sm:$0xff]  ;;  %s224_s24 = scalar_lea.vmem %s3376_s5, %s1933_s28 }
  0x1e   : > { %2507 = vmatprep.subr.bf16.mxu0 %v2506_v58  ;;  %2132 = vmatmul.mubr.msk.f32.gmra.mrb[2].mxu1 %vm303_vm0, %v2905_v63  ;;  %v2530_v17 = vpack.c.bf16 %v1882_v7, %v1881_v6  ;;  %v559_v29 = vrot.slane %v2882_v54, 2  ;;  %v560_v30 = vrot.slane %v2892_v59, 2  ;;  %v3100_v32 = vsel %vm546_vm2, %v556_v18, %v557_v20  ;;  %v1886_v59 = vld [vmem:[%s3372_s1 + $0x1a8] sm:$0xff]  ;;  %v1899_v1 = vld [vmem:[%s3372_s1 + $0x1d0] sm:$0xff]  ;;  %v1901_v6 = vld [vmem:[%s3372_s1 + $0x1e0] sm:$0xff] }
  0x1f   : > { %2457 = vmatpush3.bf16.msra.mxu1 %v2454_v62  ;;  %2134 = vmatprep.mubr.msk.f32.mxu1 %vm303_vm0, %v2963_v22  ;;  %v835_v62 = vrot.slane %v2960_v21, 1  ;;  %v549_v38 = vsel %vm546_vm2, %v547_v41, %v548_v23  ;;  %v566_v46 = vrot.slane %v2934_v11, 2  ;;  %v963_v55 = vrot.slane %v3025_v52, 2  ;;  %v1902_v7 = vld [vmem:[%s3372_s1 + $0x1e8] sm:$0xff]  ;;  %v1485_v18 = vld [vmem:[%s3373_s2 + $0x18] sm:$0xff]  ;;  %v1486_v23 = vld [vmem:[%s3373_s2 + $0x20] sm:$0xff] }
  0x20   : > { %2219 = vmatmul.mubr.msk.f32.gmra.mrb[4].mxu0 %vm303_vm0, %v2918_v4  ;;  %2459 = vmatprep.subr.bf16.mxu1 %v2458_v14  ;;  %v1489_v41 = vld [vmem:[%s3373_s2 + $0x38] sm:$0xff] }
  0x21   : > { %2509 = vmatpush3.bf16.msra.mxu0 %v2506_v58  ;;  %2221 = vmatprep.mubr.msk.f32.mxu0 %vm303_vm0, %v2929_v9  ;;  %v2470_v58 = vpack.c.bf16 %v1820_v50, %v1819_v49  ;;  %v3073_v13 = vsel %vm269_vm1, %v835_v62, %v836_v0  ;;  %v568_v49 = vrot.slane %v2929_v9, 2  ;;  %v569_v50 = vrot.slane %v2926_v8, 2  ;;  %v1898_v62 = vld [vmem:[%s3372_s1 + $0x1c8] sm:$0xff] }
  0x22   : > { %2511 = vmatprep.subr.bf16.mxu0 %v2510_v10  ;;  %2135 = vmatmul.mubr.msk.f32.gmra.mrb[4].mxu1 %vm303_vm0, %v2947_v15  ;;  %v962_v8 = vrot.slane %v2960_v21, 2 }
  0x23   : > { %2461 = vmatpush3.bf16.msra.mxu1 %v2458_v14  ;;  %2137 = vmatprep.mubr.msk.f32.mxu1 %vm303_vm0, %v2999_v39  ;;  %v554_v14 = vrot.slane %v2857_v45, 2  ;;  %v1884_v45 = vld [vmem:[%s3372_s1 + $0x198] sm:$0xff] }
  0x24   : > { %2222 = vmatmul.mubr.msk.f32.gmra.mrb[6].mxu0 %vm303_vm0, %v2960_v21  ;;  %2463 = vmatprep.subr.bf16.mxu1 %v2462_v33  ;;  %v3166_v52 = vsel %vm546_vm2, %v962_v8, %v963_v55 }
  0x25   : > { %2513 = vmatpush3.bf16.msra.mxu0 %v2510_v10  ;;  %2240 = vmatprep.mubr.msk.f32.mxu0 %vm303_vm0, %v2868_v48  ;;  %v2466_v48 = vpack.c.bf16 %v1818_v37, %v1817_v36  ;;  %v1824_v10 = vld [vmem:[%s3372_s1 + $0xb8] sm:$0xff]  ;;  %v3095_v27 = vsel %vm546_vm2, %v553_v12, %v554_v14  ;;  %v563_v36 = vrot.slane %v2886_v56, 2  ;;  %v1885_v37 = vld [vmem:[%s3372_s1 + $0x1a0] sm:$0xff]  ;;  %v3120_v56 = vsel %vm546_vm2, %v559_v29, %v560_v30  ;;  %v1918_v14 = vld [vmem:[%s3372_s1 + $0x228] sm:$0xff] }
  0x26   : > { %2515 = vmatprep.subr.bf16.mxu0 %v2514_v28  ;;  %2138 = vmatmul.mubr.msk.f32.gmra.mrb[6].mxu1 %vm303_vm0, %v2987_v35  ;;  %v1916_v12 = vld [vmem:[%s3372_s1 + $0x218] sm:$0xff]  ;;  %v1490_v29 = vld [vmem:[%s3373_s2 + $0x40] sm:$0xff]  ;;  %v1491_v30 = vld [vmem:[%s3373_s2 + $0x48] sm:$0xff] }
  0x27   : > { %2465 = vmatpush3.bf16.msra.mxu1 %v2462_v33  ;;  %2156 = vmatprep.mubr.msk.f32.mxu1 %vm303_vm0, %v2821_v26  ;;  %v2534_v33 = vpack.c.bf16 %v1884_v45, %v1883_v24  ;;  %v562_v26 = vrot.slane %v2889_v57, 2  ;;  %v1487_v24 = vld [vmem:[%s3373_s2 + $0x28] sm:$0xff] }
  0x28   : > { %2241 = vmatmul.mubr.msk.f32.vlgmr.msra.gmra.mrb[0].mxu0 %vm303_vm0, %v2921_v5  ;;  %2467 = vmatprep.subr.bf16.mxu1 %v2466_v48  ;;  %v3295_v45 = vpack.c.bf16 %v1487_v24, %v1486_v23 }
  0x29   : > { %2517 = vmatpush3.bf16.msra.mxu0 %v2514_v28  ;;  %2243 = vmatprep.mubr.msk.f32.mxu0 %vm303_vm0, %v2905_v63  ;;  %v2478_v28 = vpack.c.bf16 %v1824_v10, %v1823_v31  ;;  %v3125_v47 = vsel %vm546_vm2, %v562_v26, %v563_v36  ;;  %v1904_v31 = vld [vmem:[%s3372_s1 + $0x1f8] sm:$0xff]  ;;  %v1914_v10 = vld [vmem:[%s3372_s1 + $0x208] sm:$0xff] }
  0x2a   : > { %2519 = vmatprep.subr.bf16.mxu0 %v2518_v43  ;;  %2157 = vmatmul.mubr.msk.f32.vlgmr.msra.gmra.mrb[0].mxu1 %vm303_vm0, %v2804_v19  ;;  %v2474_v19 = vpack.c.bf16 %v1822_v61, %v1821_v60  ;;  %v1897_v61 = vld [vmem:[%s3372_s1 + $0x1c0] sm:$0xff]  ;;  %v1493_v26 = vld [vmem:[%s3373_s2 + $0x58] sm:$0xff] }
  0x2b   : > { %2469 = vmatpush3.bf16.msra.mxu1 %v2466_v48  ;;  %2159 = vmatprep.mubr.msk.f32.mxu1 %vm303_vm0, %v2848_v40  ;;  %v2538_v48 = vpack.c.bf16 %v1886_v59, %v1885_v37  ;;  %v2546_v0 = vpack.c.bf16 %v1898_v62, %v1897_v61  ;;  %v1494_v37 = vld [vmem:[%s3373_s2 + $0x60] sm:$0xff]  ;;  %v1495_v59 = vld [vmem:[%s3373_s2 + $0x68] sm:$0xff] }
  0x2c   : > { %2244 = vmatmul.mubr.msk.f32.gmra.mrb[2].mxu0 %vm303_vm0, %v2963_v22  ;;  %2471 = vmatprep.subr.bf16.mxu1 %v2470_v58 }
  0x2d   : > { %2521 = vmatpush3.bf16.msra.mxu0 %v2518_v43  ;;  %2246 = vmatprep.mubr.msk.f32.mxu0 %vm303_vm0, %v2947_v15  ;;  %v565_v43 = vrot.slane %v2918_v4, 2 }
  0x2e   : > { %2523 = vmatprep.subr.bf16.mxu0 %v2522_v51  ;;  %2160 = vmatmul.mubr.msk.f32.gmra.mrb[2].mxu1 %vm303_vm0, %v2854_v42 }
  0x2f   : > { %2473 = vmatpush3.bf16.msra.mxu1 %v2470_v58  ;;  %2162 = vmatprep.mubr.msk.f32.mxu1 %vm303_vm0, %v2882_v54  ;;  %v3145_v11 = vsel %vm546_vm2, %v565_v43, %v566_v46  ;;  %v3149_v58 = vsel %vm546_vm2, %v568_v49, %v569_v50  ;;  %v1497_v43 = vld [vmem:[%s3373_s2 + $0x78] sm:$0xff] }
  0x30   : > { %2247 = vmatmul.mubr.msk.f32.gmra.mrb[4].mxu0 %vm303_vm0, %v2999_v39  ;;  %2475 = vmatprep.subr.bf16.mxu1 %v2474_v19 }
  0x31   : > { %2525 = vmatpush3.bf16.msra.mxu0 %v2522_v51  ;;  %2249 = vmatprep.mubr.msk.f32.mxu0 %vm303_vm0, %v2987_v35  ;;  %v1887_v51 = vld [vmem:[%s3372_s1 + $0x1b0] sm:$0xff] }
  0x32   : > { %2527 = vmatprep.subr.bf16.mxu0 %v2526_v2  ;;  %2163 = vmatmul.mubr.msk.f32.gmra.mrb[4].mxu1 %vm303_vm0, %v2889_v57  ;;  %v2542_v60 = vpack.c.bf16 %v1888_v53, %v1887_v51 }
  0x33   : > { %2477 = vmatpush3.bf16.msra.mxu1 %v2474_v19  ;;  %2165 = vmatprep.mubr.msk.f32.mxu1 %vm303_vm0, %v2918_v4  ;;  %v1903_v19 = vld [vmem:[%s3372_s1 + $0x1f0] sm:$0xff] }
  0x34   : > { %2250 = vmatmul.mubr.msk.f32.gmra.mrb[6].mxu0 %vm303_vm0, %v3073_v13  ;;  %2479 = vmatprep.subr.bf16.mxu1 %v2478_v28 }
  0x35   : > { %2529 = vmatpush3.bf16.msra.mxu0 %v2526_v2  ;;  %2268 = vmatprep.mubr.msk.f32.mxu0 %vm303_vm0, %v552_v16  ;;  %v1900_v2 = vld [vmem:[%s3372_s1 + $0x1d8] sm:$0xff] }
  0x36   : > { %2531 = vmatprep.subr.bf16.mxu0 %v2530_v17  ;;  %2166 = vmatmul.mubr.msk.f32.gmra.mrb[6].mxu1 %vm303_vm0, %v2929_v9  ;;  %v2550_v3 = vpack.c.bf16 %v1900_v2, %v1899_v1 }
  0x37   : > { %2481 = vmatpush3.bf16.msra.mxu1 %v2478_v28  ;;  %2184 = vmatprep.mubr.msk.f32.mxu1 %vm303_vm0, %v549_v38  ;;  %v1488_v28 = vld [vmem:[%s3373_s2 + $0x30] sm:$0xff]  ;;  %v2597_v38 = vpack.c.bf16 %v1495_v59, %v1494_v37 }
  0x38   : > { %2269 = vmatmul.mubr.msk.f32.vlgmr.msra.gmra.mrb[0].mxu0 %vm303_vm0, %v3095_v27 }
  0x39   : > { %2533 = vmatpush3.bf16.msra.mxu0 %v2530_v17  ;;  %2271 = vmatprep.mubr.msk.f32.mxu0 %vm303_vm0, %v3100_v32  ;;  %v1920_v17 = vld [vmem:[%s3372_s1 + $0x238] sm:$0xff] }
  0x3a   : > { %2535 = vmatprep.subr.bf16.mxu0 %v2534_v33  ;;  %2185 = vmatmul.mubr.msk.f32.vlgmr.msra.gmra.mrb[0].mxu1 %vm303_vm0, %v552_v16 }
  0x3b   : > { %2187 = vmatprep.mubr.msk.f32.mxu1 %vm303_vm0, %v3095_v27 }
  0x3c   : > { %2272 = vmatmul.mubr.msk.f32.gmra.mrb[2].mxu0 %vm303_vm0, %v3120_v56 }
  0x3d   : > { %2537 = vmatpush3.bf16.msra.mxu0 %v2534_v33  ;;  %2274 = vmatprep.mubr.msk.f32.mxu0 %vm303_vm0, %v3125_v47  ;;  %v1492_v33 = vld [vmem:[%s3373_s2 + $0x50] sm:$0xff] }
  0x3e   : > { %2539 = vmatprep.subr.bf16.mxu0 %v2538_v48  ;;  %2188 = vmatmul.mubr.msk.f32.gmra.mrb[2].mxu1 %vm303_vm0, %v3100_v32  ;;  %v3325_v36 = vpack.c.bf16 %v1493_v26, %v1492_v33 }
  0x3f   : > { %2190 = vmatprep.mubr.msk.f32.mxu1 %vm303_vm0, %v3120_v56 }
  0x40   : > { %2275 = vmatmul.mubr.msk.f32.gmra.mrb[4].mxu0 %vm303_vm0, %v3145_v11 }
  0x41   : > { %2541 = vmatpush3.bf16.msra.mxu0 %v2538_v48  ;;  %2277 = vmatprep.mubr.msk.f32.mxu0 %vm303_vm0, %v3149_v58 }
  0x42   : > { %2543 = vmatprep.subr.bf16.mxu0 %v2542_v60  ;;  %2191 = vmatmul.mubr.msk.f32.gmra.mrb[4].mxu1 %vm303_vm0, %v3125_v47 }
  0x43   : > { %2193 = vmatprep.mubr.msk.f32.mxu1 %vm303_vm0, %v3145_v11 }
  0x44   : > { %2278 = vmatmul.mubr.msk.f32.gmra.mrb[6].mxu0 %vm303_vm0, %v3166_v52 }
  0x45   : > { %2545 = vmatpush3.bf16.msra.mxu0 %v2542_v60  ;;  %2296 = vmatprep.mubr.msk.f32.mxu0 %vm303_vm0, %v2848_v40  ;;  %v2554_v40 = vpack.c.bf16 %v1902_v7, %v1901_v6 }
  0x46   : > { %2547 = vmatprep.subr.bf16.mxu0 %v2546_v0  ;;  %2194 = vmatmul.mubr.msk.f32.gmra.mrb[6].mxu1 %vm303_vm0, %v3149_v58 }
  0x48   : > { %2297 = vmatmul.mubr.msk.f32.vlgmr.msra.gmra.mrb[0].mxu0 %vm303_vm0, %v2854_v42  ;;  %v2558_v42 = vpack.c.bf16 %v1904_v31, %v1903_v19 }
  0x49   : > { %2549 = vmatpush3.bf16.msra.mxu0 %v2546_v0  ;;  %2299 = vmatprep.mubr.msk.f32.mxu0 %vm303_vm0, %v2882_v54  ;;  %v1913_v54 = vld [vmem:[%s3372_s1 + $0x200] sm:$0xff] }
  0x4a   : > { %2551 = vmatprep.subr.bf16.mxu0 %v2550_v3 }
  0x4c   : > { %2300 = vmatmul.mubr.msk.f32.gmra.mrb[2].mxu0 %vm303_vm0, %v2889_v57  ;;  %v2562_v57 = vpack.c.bf16 %v1914_v10, %v1913_v54 }
  0x4d   : > { %2553 = vmatpush3.bf16.msra.mxu0 %v2550_v3  ;;  %2302 = vmatprep.mubr.msk.f32.mxu0 %vm303_vm0, %v2918_v4  ;;  %v1915_v4 = vld [vmem:[%s3372_s1 + $0x210] sm:$0xff] }
  0x4e   : > { %2555 = vmatprep.subr.bf16.mxu0 %v2554_v40 }
  0x50   : > { %2303 = vmatmul.mubr.msk.f32.gmra.mrb[4].mxu0 %vm303_vm0, %v2929_v9  ;;  %v2566_v9 = vpack.c.bf16 %v1916_v12, %v1915_v4 }
  0x51   : > { %2557 = vmatpush3.bf16.msra.mxu0 %v2554_v40  ;;  %2305 = vmatprep.mubr.msk.f32.mxu0 %vm303_vm0, %v2960_v21  ;;  %v1917_v21 = vld [vmem:[%s3372_s1 + $0x220] sm:$0xff] }
  0x52   : > { %2559 = vmatprep.subr.bf16.mxu0 %v2558_v42  ;;  %v2570_v16 = vpack.c.bf16 %v1918_v14, %v1917_v21 }
  0x54   : > { %2306 = vmatmul.mubr.msk.f32.gmra.mrb[6].mxu0 %vm303_vm0, %v2968_v25 }
  0x55   : > { %2561 = vmatpush3.bf16.msra.mxu0 %v2558_v42  ;;  %2324 = vmatprep.mubr.msk.f32.mxu0 %vm303_vm0, %v2921_v5  ;;  %v1919_v5 = vld [vmem:[%s3372_s1 + $0x230] sm:$0xff] }
  0x56   : > { %2563 = vmatprep.subr.bf16.mxu0 %v2562_v57 }
  0x58   : > { %2325 = vmatmul.mubr.msk.f32.vlgmr.msra.gmra.mrb[0].mxu0 %vm303_vm0, %v2905_v63  ;;  %v2574_v63 = vpack.c.bf16 %v1920_v17, %v1919_v5 }
  0x59   : > { %2565 = vmatpush3.bf16.msra.mxu0 %v2562_v57  ;;  %2327 = vmatprep.mubr.msk.f32.mxu0 %vm303_vm0, %v2963_v22  ;;  %v1343_v22 = vrot.slane %v2982_v34, 2  ;;  %v2712_v34 = vmov 0.0|0.0  }
  0x5a   : > { %2567 = vmatprep.subr.bf16.mxu0 %v2566_v9  ;;  %2578 = vmatprep.subr.bf16.mxu1 %v2712_v34 }
  0x5c   : > { %2328 = vmatmul.mubr.msk.f32.gmra.mrb[2].mxu0 %vm303_vm0, %v2947_v15  ;;  %v1342_v15 = vrot.slane %v2968_v25, 2  ;;  %v1483_v25 = vld [vmem:[%s3373_s2 + $0x8] sm:$0xff] }
  0x5d   : > { %2569 = vmatpush3.bf16.msra.mxu0 %v2566_v9  ;;  %2330 = vmatprep.mubr.msk.f32.mxu0 %vm303_vm0, %v2999_v39  ;;  %v1482_v39 = vld [vmem:[%s3373_s2] sm:$0xff] }
  0x5e   : > { %2571 = vmatprep.subr.bf16.mxu0 %v2570_v16 }
  0x60   : > { %2331 = vmatmul.mubr.msk.f32.gmra.mrb[4].mxu0 %vm303_vm0, %v2987_v35  ;;  %v1344_v35 = vsel %vm546_vm2, %v1342_v15, %v1343_v22 }
  0x61   : > { %2573 = vmatpush3.bf16.msra.mxu0 %v2570_v16  ;;  %2333 = vmatprep.mubr.msk.f32.mxu0 %vm303_vm0, %v3073_v13  ;;  %v1484_v13 = vld [vmem:[%s3373_s2 + $0x10] sm:$0xff] }
  0x62   : > { %2575 = vmatprep.subr.bf16.mxu0 %v2574_v63  ;;  %v3285_v20 = vpack.c.bf16 %v1485_v18, %v1484_v13 }
  0x64   : > { %2334 = vmatmul.mubr.msk.f32.gmra.mrb[6].mxu0 %vm303_vm0, %v3004_v44  ;;  %v3274_v44 = vpack.c.bf16 %v1483_v25, %v1482_v39 }
  0x65   : > { %2577 = vmatpush3.bf16.msra.mxu0 %v2574_v63  ;;  %2352 = vmatprep.mubr.msk.f32.mxu0 %vm303_vm0, %v3095_v27  ;;  %v3305_v27 = vpack.c.bf16 %v1489_v41, %v1488_v28 }
  0x66   : > { %2580 = vmatpush3.bf16.msra.mxu1 %v3274_v44 }
  0x67   : > { %2581 = vmatprep.subr.bf16.mxu1 %v2712_v34 }
  0x68   : > { %2353 = vmatmul.mubr.msk.f32.vlgmr.msra.gmra.mrb[0].mxu0 %vm303_vm0, %v3100_v32  ;;  %v3315_v32 = vpack.c.bf16 %v1491_v30, %v1490_v29 }
  0x69   : > { %2355 = vmatprep.mubr.msk.f32.mxu0 %vm303_vm0, %v3120_v56  ;;  %v1496_v56 = vld [vmem:[%s3373_s2 + $0x70] sm:$0xff] }
  0x6a   : > { %2583 = vmatpush3.bf16.msra.mxu1 %v3285_v20  ;;  %v2600_v46 = vpack.c.bf16 %v1497_v43, %v1496_v56 }
  0x6b   : > { %2584 = vmatprep.subr.bf16.mxu1 %v2712_v34 }
  0x6c   : > { %2356 = vmatmul.mubr.msk.f32.gmra.mrb[2].mxu0 %vm303_vm0, %v3125_v47  ;;  %v2714_v47 = vmov 0.0  }
  0x6d   : > { %2358 = vmatprep.mubr.msk.f32.mxu0 %vm303_vm0, %v3145_v11  ;;  %2396 = vmatprep.mubr.msk.f32.mxu1 %vm2713_vm3, %v2714_v47 }
  0x6e   : > { %2586 = vmatpush3.bf16.msra.mxu1 %v3295_v45 }
  0x6f   : > { %2587 = vmatprep.subr.bf16.mxu1 %v2712_v34 }
  0x70   : > { %2359 = vmatmul.mubr.msk.f32.gmra.mrb[4].mxu0 %vm303_vm0, %v3149_v58 }
  0x71   : > { %2361 = vmatprep.mubr.msk.f32.mxu0 %vm303_vm0, %v3166_v52 }
  0x72   : > { %2589 = vmatpush3.bf16.msra.mxu1 %v3305_v27 }
  0x73   : > { %2590 = vmatprep.subr.bf16.mxu1 %v2712_v34 }
  0x74   : > { %2362 = vmatmul.mubr.msk.f32.gmra.mrb[6].mxu0 %vm303_vm0, %v1344_v35  ;;  %v1568_v35 = vlaneseq }
  0x76   : > { %2592 = vmatpush3.bf16.msra.mxu1 %v3315_v32  ;;  %v1569_v39 = vshrl.u32 %v1568_v35, 7 }
  0x77   : > { %2593 = vmatprep.subr.bf16.mxu1 %v2712_v34 }
  0x78   : > { %v1570_v25 = vsub.s32 0, %v1569_v39 }
  0x7a   : > { %2595 = vmatpush3.bf16.msra.mxu1 %v3325_v36 }
  0x7b   : > { %2596 = vmatprep.subr.bf16.mxu1 %v2712_v34 }
  0x7e   : > { %2598 = vmatpush3.bf16.msra.mxu1 %v2597_v38 }
  0x7f   : > { %2599 = vmatprep.subr.bf16.mxu1 %v2712_v34 }
  0x82   : > { %2601 = vmatpush3.bf16.msra.mxu1 %v2600_v46 }
  0x83   : > { %2602 = vmatprep.subr.bf16.mxu1 %v2712_v34 }
 0x10d   : > { %v2186_v48 = vpop.f32.mrb[0].mxu1 }
 0x10e   : > { %v662_v49 = vpop.f32.mrb[1].mxu1 }
 0x111   : > { %v2189_v50 = vpop.f32.mrb[2].mxu1 }
 0x112   : > { %v672_v51 = vpop.f32.mrb[3].mxu1 }
 0x115   : > { %v2192_v53 = vpop.f32.mrb[4].mxu1 }
 0x116   : > { %v682_v8 = vpop.f32.mrb[5].mxu1 }
 0x119   : > { %v2195_v11 = vpop.f32.mrb[6].mxu1 }
 0x11a   : > { %v692_v55 = vpop.f32.mrb[7].mxu1 }
 0x13b   : > { %v2354_v58 = vpop.f32.mrb[0].mxu0 }
 0x13c   : > { %v2626_v60 = vadd.f32 %v2354_v58, %v2186_v48  ;;  %v1422_v61 = vpop.f32.mrb[1].mxu0 }
 0x13d   : > { %v2627_v62 = vadd.f32 %v1422_v61, %v662_v49 }
 0x13f   : > { %v2357_v52 = vpop.f32.mrb[2].mxu0  ;;  %v1469_v2 = vadd.f32 %v2627_v62, %v2626_v60 }
 0x140   : > { %v2628_v0 = vadd.f32 %v2357_v52, %v2189_v50  ;;  %v1432_v1 = vpop.f32.mrb[3].mxu0 }
 0x141   : > { %v2629_v3 = vadd.f32 %v1432_v1, %v672_v51 }
 0x143   : > { %v1470_v6 = vadd.f32 %v2629_v3, %v1469_v2  ;;  %v2360_v7 = vpop.f32.mrb[4].mxu0 }
 0x144   : > { %v2630_v40 = vadd.f32 %v2360_v7, %v2192_v53  ;;  %v1442_v19 = vpop.f32.mrb[5].mxu0 }
 0x145   : > { %v2631_v31 = vadd.f32 %v1442_v19, %v682_v8  ;;  %v1471_v42 = vadd.f32 %v2628_v0, %v1470_v6 }
 0x147   : > { %v1472_v54 = vadd.f32 %v2631_v31, %v1471_v42  ;;  %v2363_v10 = vpop.f32.mrb[6].mxu0  ;;  %v1930_v42 = vld [vmem:[%s3375_s4] ss:$0 sm:$0xff] }
 0x148   : > { %v2632_v57 = vadd.f32 %v2363_v10, %v2195_v11  ;;  %v1452_v4 = vpop.f32.mrb[7].mxu0 }
 0x149   : > { %v2633_v12 = vadd.f32 %v1452_v4, %v692_v55  ;;  %v1473_v9 = vadd.f32 %v2630_v40, %v1472_v54 }
 0x14b   : > { %v1474_v21 = vadd.f32 %v2633_v12, %v1473_v9 }
 0x14d   : > { %v1475_v14 = vadd.f32 %v2632_v57, %v1474_v21 }
 0x14f   : > { %v1476_v16 = vrot.slane %v1475_v14, 4 }
 0x151   : > { %v1477_v5 = vadd.f32 %v1476_v16, %v1475_v14 }
 0x153   : > { %v1478_v17 = vrot.slane %v1477_v5, 2 }
 0x155   : > { %v1479_v63 = vadd.f32 %v1478_v17, %v1477_v5 }
 0x157   : > { %v1480_v15 = vrot.slane %v1479_v63, 1 }
 0x159   : > { %v1481_v22 = vadd.f32 %v1480_v15, %v1479_v63 }
 0x15b   : > { %2397 = vmatmul.mubr.f32.vlgmr.msra.gmra.mrb[8].mxu1 %v1481_v22 }
 0x15c   : > { %2604 = vmatpush3.bf16.msra.mxu1 %v3274_v44  ;;  %2431 = vmatprep.mubr.msk.f32.mxu1 %vm2713_vm3, %v2714_v47 }
 0x15d   : > { %2605 = vmatprep.subr.bf16.mxu1 %v2712_v34 }
 0x160   : > { %2607 = vmatpush3.bf16.msra.mxu1 %v3285_v20 }
 0x161   : > { %2608 = vmatprep.subr.bf16.mxu1 %v2712_v34 }
 0x164   : > { %2610 = vmatpush3.bf16.msra.mxu1 %v3295_v45 }
 0x165   : > { %2611 = vmatprep.subr.bf16.mxu1 %v2712_v34 }
 0x168   : > { %2613 = vmatpush3.bf16.msra.mxu1 %v3305_v27 }
 0x169   : > { %2614 = vmatprep.subr.bf16.mxu1 %v2712_v34 }
 0x16c   : > { %2616 = vmatpush3.bf16.msra.mxu1 %v3315_v32 }
 0x16d   : > { %2617 = vmatprep.subr.bf16.mxu1 %v2712_v34 }
 0x170   : > { %2619 = vmatpush3.bf16.msra.mxu1 %v3325_v36 }
 0x171   : > { %2620 = vmatprep.subr.bf16.mxu1 %v2712_v34 }
 0x174   : > { %2622 = vmatpush3.bf16.msra.mxu1 %v2597_v38 }
 0x175   : > { %2623 = vmatprep.subr.bf16.mxu1 %v2712_v34 }
 0x178   : > { %2625 = vmatpush3.bf16.msra.mxu1 %v2600_v46 }
 0x22e   : > { %v1564_v44 = vpop.f32.mrb[8].mxu1 }
 0x22f   : > { %v1571_v13 = vrot.slane %v1564_v44, %v1570_v25  ;;  %v2398_v18 = vpop.f32.mrb[9].mxu1 }
 0x231   : > { %v1572_v20 = vsub.f32 %v2627_v62, %v1571_v13  ;;  %v1573_v23 = vsub.f32 %v2626_v60, %v1571_v13  ;;  %v1574_v24 = vsub.f32 %v2629_v3, %v1571_v13  ;;  %v1575_v45 = vsub.f32 %v2628_v0, %v1571_v13  ;;  %v1929_v0 = vld [vmem:[%s3374_s3] ss:$0 sm:$0xff] }
 0x232   : > { %v1576_v27 = vsub.f32 %v2631_v31, %v1571_v13  ;;  %v1577_v32 = vsub.f32 %v2630_v40, %v1571_v13  ;;  %v1578_v34 = vsub.f32 %v2633_v12, %v1571_v13  ;;  %v1579_v59 = vsub.f32 %v2632_v57, %v1571_v13 }
 0x233   : > { %v1580_v28 = vmul.f32 %v1572_v20, %v1572_v20  ;;  %v1581_v41 = vmul.f32 %v1573_v23, %v1573_v23  ;;  %v1582_v29 = vmul.f32 %v1574_v24, %v1574_v24  ;;  %v1583_v33 = vmul.f32 %v1575_v45, %v1575_v45 }
 0x234   : > { %v1584_v36 = vmul.f32 %v1576_v27, %v1576_v27  ;;  %v1585_v38 = vmul.f32 %v1577_v32, %v1577_v32  ;;  %v1586_v43 = vmul.f32 %v1578_v34, %v1578_v34  ;;  %v1587_v47 = vmul.f32 %v1579_v59, %v1579_v59 }
 0x235   : > { %v1588_v30 = vadd.f32 %v1581_v41, %v1580_v28 }
 0x237   : > { %v1589_v26 = vadd.f32 %v1588_v30, %v1582_v29 }
 0x239   : > { %v1590_v37 = vadd.f32 %v1589_v26, %v1583_v33 }
 0x23b   : > { %v1591_v56 = vadd.f32 %v1590_v37, %v1584_v36 }
 0x23d   : > { %v1592_v46 = vadd.f32 %v1591_v56, %v1585_v38 }
 0x23f   : > { %v1593_v48 = vadd.f32 %v1592_v46, %v1586_v43 }
 0x241   : > { %v1594_v49 = vadd.f32 %v1593_v48, %v1587_v47 }
 0x243   : > { %v1595_v50 = vrot.slane %v1594_v49, 4 }
 0x245   : > { %v1596_v51 = vadd.f32 %v1595_v50, %v1594_v49 }
 0x247   : > { %v1597_v53 = vrot.slane %v1596_v51, 2 }
 0x249   : > { %v1598_v8 = vadd.f32 %v1597_v53, %v1596_v51 }
 0x24b   : > { %v1599_v11 = vrot.slane %v1598_v8, 1 }
 0x24d   : > { %v1600_v55 = vadd.f32 %v1599_v11, %v1598_v8 }
 0x24f   : > { %2432 = vmatmul.mubr.f32.vlgmr.msra.gmra.mrb[10].mxu1 %v1600_v55 }
 0x322   : > { %v1667_v58 = vpop.f32.mrb[10].mxu1 }
 0x323   : > { %v1668_v60 = vadd.f32 1e-05, %v1667_v58  ;;  %v2433_v61 = vpop.f32.mrb[11].mxu1 }
 0x325   : > { %2702 = vrsqrt.f32 %v1668_v60 }
 0x32f   : > { %v2703_v62 = vpop.eup %2702 }
 0x330   : > { %v1675_v52 = vrot.slane %v2703_v62, %v1570_v25 }
 0x332   : > { %v1676_v1 = vmul.f32 %v1675_v52, %v1572_v20  ;;  %v1677_v2 = vmul.f32 %v1675_v52, %v1573_v23  ;;  %v1678_v3 = vmul.f32 %v1675_v52, %v1574_v24  ;;  %v1679_v6 = vmul.f32 %v1675_v52, %v1575_v45 }
 0x333   : > { %v1680_v7 = vmul.f32 %v1675_v52, %v1576_v27  ;;  %v1681_v40 = vmul.f32 %v1675_v52, %v1577_v32  ;;  %v1682_v19 = vmul.f32 %v1675_v52, %v1578_v34  ;;  %v1683_v31 = vmul.f32 %v1675_v52, %v1579_v59 }
 0x334   : > { %v1691_v54 = vmul.f32 %v1929_v0, %v1676_v1  ;;  %v1692_v10 = vmul.f32 %v1929_v0, %v1677_v2  ;;  %v1693_v57 = vmul.f32 %v1929_v0, %v1678_v3  ;;  %v1694_v4 = vmul.f32 %v1929_v0, %v1679_v6 }
 0x335   : > { %v1695_v12 = vmul.f32 %v1929_v0, %v1680_v7  ;;  %v1696_v9 = vmul.f32 %v1929_v0, %v1681_v40  ;;  %v1697_v21 = vmul.f32 %v1929_v0, %v1682_v19  ;;  %v1698_v14 = vmul.f32 %v1929_v0, %v1683_v31 }
 0x336   : > { %v1706_v16 = vadd.f32 %v1930_v42, %v1691_v54  ;;  %v1707_v5 = vadd.f32 %v1930_v42, %v1692_v10  ;;  %v1708_v17 = vadd.f32 %v1930_v42, %v1693_v57  ;;  %v1709_v63 = vadd.f32 %v1930_v42, %v1694_v4 }
 0x337   : > { %v1710_v15 = vadd.f32 %v1930_v42, %v1695_v12  ;;  %v1711_v22 = vadd.f32 %v1930_v42, %v1696_v9  ;;  %v1712_v35 = vadd.f32 %v1930_v42, %v1697_v21  ;;  %v1713_v39 = vadd.f32 %v1930_v42, %v1698_v14 }
 0x338   : > { %v1714_v25 = vmax.f32 %v1706_v16, 0.0  ;;  %v1715_v44 = vmax.f32 %v1707_v5, 0.0  ;;  %v1716_v13 = vmax.f32 %v1708_v17, 0.0  ;;  %v1717_v18 = vmax.f32 %v1709_v63, 0.0 }
 0x339   : > { %v1718_v20 = vmax.f32 %v1710_v15, 0.0  ;;  %v1719_v23 = vmax.f32 %v1711_v22, 0.0  ;;  %v1720_v24 = vmax.f32 %v1712_v35, 0.0  ;;  %v1721_v45 = vmax.f32 %v1713_v39, 0.0 }
 0x33a   : > { %1722 = vst [vmem:[%s224_s24] sm:$0xff] %v1714_v25  ;;  %1723 = vst [vmem:[%s224_s24 + $0x8] sm:$0xff] %v1715_v44 }
 0x33b   : > { %1724 = vst [vmem:[%s224_s24 + $0x10] sm:$0xff] %v1716_v13  ;;  %1725 = vst [vmem:[%s224_s24 + $0x18] sm:$0xff] %v1717_v18 }
 0x33c   : > { %1726 = vst [vmem:[%s224_s24 + $0x20] sm:$0xff] %v1718_v20  ;;  %1727 = vst [vmem:[%s224_s24 + $0x28] sm:$0xff] %v1719_v23 }
 0x33d   : > { %1728 = vst [vmem:[%s224_s24 + $0x30] sm:$0xff] %v1720_v24  ;;  %1729 = vst [vmem:[%s224_s24 + $0x38] sm:$0xff] %v1721_v45 }
 0x33e PF: > { %s15_s18 = sadd.s32 1, %s2710_s18  }
 0x33f   : > { %p12_p4 = scmp.ge.s32.totalorder %s15_s18, 4  }
 0x341   :  { %14 = sbr.rel (!%p12_p4) target bundleno = 1 (0x1), region = 78 }

// kernel: protonet_forward.7
= control target key start
LH: loop header
LB: loop body
LE: loop exit
PB: predicated region body
PF: predicated region fallthrough
CT: control target
= control target key end

     0   :  { %s4555_s9 = smov 0   ;;  %s5814_s0 = inlined_call_operand.vmem [shape: f32[2,18,18,32], index: 0, kind: input, shape index: {}]   ;;  %s5815_s1 = inlined_call_operand.vmem [shape: f32[9,32,16], index: 1, kind: input, shape index: {}]   ;;  %s5816_s2 = inlined_call_operand.vmem [shape: f32[2,16,16,16], index: 2, kind: output, shape index: {}]  }
   0x1 LB: > { %s3032_s10 = sadd.s32 4294967295, %s4538_s9   ;;  %p3036_p0 = scmp.ge.s32.totalorder %s4538_s9, 1  ;;  %s4538_s9 = sphi %s4555_s9, %s12_s9  }
   0x2   : > { %p112_p1 = scmp.lt.s32.totalorder %s4538_s9, 3 }
   0x4   : > { %p113_p2 = pnand %p3036_p0, %p112_p1 }
   0x6   : > { %116 = sbr.rel (%p113_p2) target bundleno = 525 (0x20d), region = 28 }
   0xd   : > { %v3040_v0 = vld [vmem:[%s5815_s1 + $0x20] sm:$0xff]  ;;  %v3041_v1 = vld [vmem:[%s5815_s1 + $0x28] sm:$0xff]  ;;  %p134_p3 = scmp.lt.s32.totalorder %s3032_s10, 1  ;;  %v3042_v5 = vld [vmem:[%s5815_s1 + $0x30] sm:$0xff]  ;;  %vm250_vm0 = vcmask 1046528   ;;  %vm336_vm1 = vcmask 261120  }
   0xe   : > { %v3180_v2 = vld [vmem:[%s5815_s1 + $0x80] sm:$0xff]  ;;  %v4191_v3 = vpack.c.bf16 %v3041_v1, %v3040_v0  ;;  %v3181_v4 = vld [vmem:[%s5815_s1 + $0x88] sm:$0xff]  ;;  %v3043_v6 = vld [vmem:[%s5815_s1 + $0x38] sm:$0xff]  ;;  %vm915_vm2 = vcmask 1045504   ;;  %vm2944_vm3 = vcmask 130048  }
   0xf   : > { %v4581_v7 = vpack.c.bf16 %v3181_v4, %v3180_v2  ;;  %v4195_v8 = vpack.c.bf16 %v3043_v6, %v3042_v5  ;;  %v3182_v9 = vld [vmem:[%s5815_s1 + $0x90] sm:$0xff]  ;;  %v3183_v10 = vld [vmem:[%s5815_s1 + $0x98] sm:$0xff]  ;;  %s5996_s10 = smov (!%p134_p3, %s3032_s10), 1  ;;  %v198_v11 = vld [vmem:[%s5815_s1] sm:$0xff] }
  0x10   : > { %4192 = vmatprep.subr.bf16.mxu1 %v4191_v3  ;;  %v4594_v12 = vpack.c.bf16 %v3183_v10, %v3182_v9  ;;  %v199_v13 = vld [vmem:[%s5815_s1 + $0x8] sm:$0xff]  ;;  %v3216_v14 = vld [vmem:[%s5815_s1 + $0xa0] sm:$0xff]  ;;  %s4523_s7 = smul.u32 432, %s5996_s10  ;;  %v3218_v18 = vld [vmem:[%s5815_s1 + $0xb0] sm:$0xff] }
  0x11   : > { %v3217_v15 = vld [vmem:[%s5815_s1 + $0xa8] sm:$0xff]  ;;  %4224 = vmatprep.subr.bf16.mxu0 %v4581_v7  ;;  %4194 = vmatpush3.bf16.msra.mxu1 %v4191_v3  ;;  %v4199_v16 = vpack.c.bf16 %v199_v13, %v198_v11  ;;  %v3219_v19 = vld [vmem:[%s5815_s1 + $0xb8] sm:$0xff]  ;;  %v200_v23 = vld [vmem:[%s5815_s1 + $0x10] sm:$0xff] }
  0x12   : > { %5892 = vst [vmem:[#allocation2_spill] sm:$0xff] %v4594_v12  ;;  %4226 = vmatpush3.bf16.msra.mxu0 %v4581_v7  ;;  %4196 = vmatprep.subr.bf16.mxu1 %v4195_v8  ;;  %s4612_s12 = scalar_lea.vmem %s5814_s0, %s4523_s7  ;;  %v4231_v17 = vpack.c.bf16 %v3217_v15, %v3216_v14  ;;  %v201_v33 = vld [vmem:[%s5815_s1 + $0x18] sm:$0xff]  ;;  %v4235_v39 = vpack.c.bf16 %v3219_v19, %v3218_v18  ;;  %v3252_v40 = vld [vmem:[%s5815_s1 + $0xc0] sm:$0xff]  ;;  %v3253_v54 = vld [vmem:[%s5815_s1 + $0xc8] sm:$0xff] }
  0x13   : > { %4228 = vmatprep.subr.bf16.mxu0 %v4594_v12  ;;  %v4621_v20 = vld [vmem:[%s4612_s12] sm:$0xff]  ;;  %v4624_v21 = vld [vmem:[%s4612_s12 + $0x8] sm:$0xff]  ;;  %v4627_v22 = vld [vmem:[%s4612_s12 + $0x18] sm:$0xff]  ;;  %v4203_v53 = vpack.c.bf16 %v201_v33, %v200_v23  ;;  %v4718_v0 = vpack.c.bf16 %v3253_v54, %v3252_v40 }
  0x14   : > { %5893 = vst [vmem:[#allocation3_spill] sm:$0xff] %v4627_v22  ;;  %v251_v24 = vrot.slane %v4621_v20, 1  ;;  %v252_v25 = vrot.slane %v4624_v21, 1  ;;  %v4635_v26 = vld [vmem:[%s4612_s12 + $0x20] sm:$0xff]  ;;  %v256_v27 = vrot.slane %v4627_v22, 1  ;;  %v4648_v32 = vld [vmem:[%s4612_s12 + $0x30] sm:$0xff] }
  0x15   : > { %4198 = vmatpush3.bf16.msra.mxu1 %v4195_v8  ;;  %5894 = vst [vmem:[#allocation4_spill] sm:$0xff] %v4635_v26  ;;  %v4639_v28 = vld [vmem:[%s4612_s12 + $0x10] sm:$0x3]  ;;  %v257_v29 = vrot.slane %v4635_v26, 1  ;;  %v4645_v31 = vld [vmem:[%s4612_s12 + $0x28] sm:$0x3] }
  0x16   : > { %4230 = vmatpush3.bf16.msra.mxu0 %v4594_v12  ;;  %4200 = vmatprep.subr.bf16.mxu1 %v4199_v16  ;;  %v254_v30 = vrot.slane %v4639_v28, 1  ;;  %v253_v34 = vsel %vm250_vm0, %v251_v24, %v252_v25  ;;  %v259_v35 = vrot.slane %v4645_v31, 1  ;;  %v4656_v36 = vld [vmem:[%s4612_s12 + $0x38] sm:$0xff]  ;;  %v261_v37 = vrot.slane %v4648_v32, 1  ;;  %v4660_v38 = vld [vmem:[%s4612_s12 + $0x40] sm:$0x3] }
  0x17   : > { %4232 = vmatprep.subr.bf16.mxu0 %v4231_v17  ;;  %3695 = vmatprep.mubr.msk.f32.mxu1 %vm336_vm1, %v253_v34  ;;  %v258_v41 = vsel %vm250_vm0, %v256_v27, %v257_v29  ;;  %v262_v43 = vrot.slane %v4656_v36, 1  ;;  %v264_v44 = vrot.slane %v4660_v38, 1  ;;  %v4671_v45 = vld [vmem:[%s4612_s12 + $0x48] sm:$0xff]  ;;  %v4674_v46 = vld [vmem:[%s4612_s12 + $0x50] sm:$0xff]  ;;  %v4677_v47 = vld [vmem:[%s4612_s12 + $0x58] sm:$0x3] }
  0x18   : > { %v255_v42 = vsel %vm250_vm0, %v252_v25, %v254_v30  ;;  %3919 = vmatprep.mubr.msk.f32.mxu0 %vm336_vm1, %v258_v41  ;;  %v260_v48 = vsel %vm250_vm0, %v257_v29, %v259_v35  ;;  %v266_v49 = vrot.slane %v4671_v45, 1  ;;  %v267_v50 = vrot.slane %v4674_v46, 1  ;;  %v4685_v51 = vld [vmem:[%s4612_s12 + $0x60] sm:$0xff]  ;;  %v4688_v52 = vld [vmem:[%s4612_s12 + $0x68] sm:$0xff]  ;;  %v4716_v63 = vld [vmem:[%s4612_s12 + $0x70] sm:$0x3] }
  0x19   : > { %3696 = vmatmul.mubr.msk.f32.vlgmr.msra.gmra.mrb[0].mxu1 %vm336_vm1, %v255_v42  ;;  %3920 = vmatmul.mubr.msk.f32.vlgmr.msra.gmra.mrb[0].mxu0 %vm336_vm1, %v260_v48  ;;  %v4695_v55 = vsel %vm250_vm0, %v261_v37, %v262_v43  ;;  %v3108_v56 = vld [vmem:[%s5815_s1 + $0x40] sm:$0xff]  ;;  %v3109_v57 = vld [vmem:[%s5815_s1 + $0x48] sm:$0xff]  ;;  %v4705_v58 = vsel %vm250_vm0, %v262_v43, %v264_v44  ;;  %v269_v59 = vrot.slane %v4677_v47, 1  ;;  %v271_v61 = vrot.slane %v4685_v51, 1  ;;  %v4722_v1 = vld [vmem:[%s4612_s12 + $0x78] sm:$0xff] }
  0x1a   : > { %4202 = vmatpush3.bf16.msra.mxu1 %v4199_v16  ;;  %5895 = vst [vmem:[#allocation5_spill] sm:$0xff] %v4695_v55  ;;  %4234 = vmatpush3.bf16.msra.mxu0 %v4231_v17  ;;  %5896 = vst [vmem:[#allocation6_spill] sm:$0xff] %v4705_v58  ;;  %v4711_v60 = vsel %vm250_vm0, %v266_v49, %v267_v50  ;;  %v272_v62 = vrot.slane %v4688_v52, 1  ;;  %v4725_v2 = vld [vmem:[%s4612_s12 + $0x80] sm:$0xff]  ;;  %v4727_v3 = vpack.c.bf16 %v3109_v57, %v3108_v56  ;;  %v4745_v10 = vld [vmem:[%s4612_s12 + $0x88] sm:$0x3] }
  0x1b   : > { %3698 = vmatprep.mubr.msk.f32.mxu1 %vm336_vm1, %v258_v41  ;;  %3922 = vmatprep.mubr.msk.f32.mxu0 %vm336_vm1, %v4695_v55  ;;  %5897 = vst [vmem:[#allocation7_spill] sm:$0xff] %v4711_v60  ;;  %v4736_v4 = vsel %vm250_vm0, %v267_v50, %v269_v59  ;;  %v274_v5 = vrot.slane %v4716_v63, 1  ;;  %v276_v8 = vrot.slane %v4722_v1, 1  ;;  %v277_v9 = vrot.slane %v4725_v2, 1  ;;  %v4751_v11 = vld [vmem:[%s4612_s12 + $0x90] sm:$0xff]  ;;  %v4754_v13 = vld [vmem:[%s4612_s12 + $0x98] sm:$0xff] }
  0x1c   : > { %4236 = vmatprep.subr.bf16.mxu0 %v4235_v39  ;;  %4204 = vmatprep.subr.bf16.mxu1 %v4203_v53  ;;  %5898 = vst [vmem:[#allocation8_spill] sm:$0xff] %v4736_v4  ;;  %v4740_v6 = vsel %vm250_vm0, %v271_v61, %v272_v62  ;;  %v279_v15 = vrot.slane %v4745_v10, 1  ;;  %v281_v17 = vrot.slane %v4751_v11, 1  ;;  %v282_v18 = vrot.slane %v4754_v13, 1  ;;  %v4773_v19 = vld [vmem:[%s4612_s12 + $0xa0] sm:$0x3] }
  0x1d   : > { %3699 = vmatmul.mubr.msk.f32.gmra.mrb[2].mxu1 %vm336_vm1, %v260_v48  ;;  %3923 = vmatmul.mubr.msk.f32.gmra.mrb[2].mxu0 %vm336_vm1, %v4705_v58  ;;  %5899 = vst [vmem:[#allocation9_spill] sm:$0xff] %v4740_v6  ;;  %v4764_v14 = vsel %vm250_vm0, %v272_v62, %v274_v5  ;;  %v4768_v16 = vsel %vm250_vm0, %v276_v8, %v277_v9  ;;  %v4778_v23 = vld [vmem:[%s4612_s12 + $0xa8] sm:$0xff]  ;;  %v4781_v24 = vld [vmem:[%s4612_s12 + $0xb0] sm:$0xff]  ;;  %v284_v27 = vrot.slane %v4773_v19, 1  ;;  %v4799_v34 = vld [vmem:[%s4612_s12 + $0xb8] sm:$0x3] }
  0x1e   : > { %3701 = vmatprep.mubr.msk.f32.mxu1 %vm336_vm1, %v4695_v55  ;;  %3925 = vmatprep.mubr.msk.f32.mxu0 %vm336_vm1, %v4711_v60  ;;  %5900 = vst [vmem:[#allocation10_spill] sm:$0xff] %v4764_v14  ;;  %5901 = vst [vmem:[#allocation11_spill] sm:$0xff] %v4768_v16  ;;  %v4790_v25 = vsel %vm250_vm0, %v277_v9, %v279_v15  ;;  %v4794_v29 = vsel %vm250_vm0, %v281_v17, %v282_v18  ;;  %v286_v30 = vrot.slane %v4778_v23, 1  ;;  %v4804_v35 = vld [vmem:[%s4612_s12 + $0xc0] sm:$0xff]  ;;  %v4807_v37 = vld [vmem:[%s4612_s12 + $0xc8] sm:$0xff] }
  0x1f   : > { %4238 = vmatpush3.bf16.msra.mxu0 %v4235_v39  ;;  %4206 = vmatpush3.bf16.msra.mxu1 %v4203_v53  ;;  %5902 = vst [vmem:[#allocation12_spill] sm:$0xff] %v4790_v25  ;;  %5903 = vst [vmem:[#allocation13_spill] sm:$0xff] %v4794_v29  ;;  %v287_v33 = vrot.slane %v4781_v24, 1  ;;  %v4816_v39 = vsel %vm250_vm0, %v282_v18, %v284_v27  ;;  %v289_v40 = vrot.slane %v4799_v34, 1  ;;  %v291_v42 = vrot.slane %v4804_v35, 1  ;;  %v4845_v56 = vld [vmem:[%s4612_s12 + $0xd8] sm:$0xff] }
  0x20   : > { %4240 = vmatprep.subr.bf16.mxu0 %v4718_v0  ;;  %4208 = vmatprep.subr.bf16.mxu1 %v4727_v3  ;;  %5904 = vst [vmem:[#allocation14_spill] sm:$0xff] %v4816_v39  ;;  %v292_v43 = vrot.slane %v4807_v37, 1  ;;  %v4825_v44 = vld [vmem:[%s4612_s12 + $0xd0] sm:$0x3]  ;;  %v921_v53 = vrot.slane %v4627_v22, 2  ;;  %v922_v54 = vrot.slane %v4635_v26, 2 }
  0x21   : > { %3702 = vmatmul.mubr.msk.f32.gmra.mrb[4].mxu1 %vm336_vm1, %v4705_v58  ;;  %3926 = vmatmul.mubr.msk.f32.gmra.mrb[4].mxu0 %vm336_vm1, %v4736_v4  ;;  %v4820_v41 = vsel %vm250_vm0, %v286_v30, %v287_v33  ;;  %v4836_v48 = vsel %vm250_vm0, %v287_v33, %v289_v40  ;;  %v294_v49 = vrot.slane %v4825_v44, 1  ;;  %v4848_v57 = vld [vmem:[%s4612_s12 + $0xe0] sm:$0xff]  ;;  %v924_v59 = vrot.slane %v4645_v31, 2  ;;  %v4865_v8 = vld [vmem:[%s4612_s12 + $0xe8] sm:$0x3]  ;;  %v4873_v17 = vld [vmem:[%s4612_s12 + $0xf0] sm:$0xff] }
  0x22   : > { %3704 = vmatprep.mubr.msk.f32.mxu1 %vm336_vm1, %v4711_v60  ;;  %3928 = vmatprep.mubr.msk.f32.mxu0 %vm336_vm1, %v4740_v6  ;;  %5905 = vst [vmem:[#allocation15_spill] sm:$0xff] %v4820_v41  ;;  %5906 = vst [vmem:[#allocation16_spill] sm:$0xff] %v4836_v48  ;;  %v4840_v50 = vsel %vm250_vm0, %v291_v42, %v292_v43  ;;  %v296_v62 = vrot.slane %v4845_v56, 1  ;;  %v297_v5 = vrot.slane %v4848_v57, 1  ;;  %v926_v15 = vrot.slane %v4648_v32, 2  ;;  %v4876_v18 = vld [vmem:[%s4612_s12 + $0xf8] sm:$0xff] }
  0x23   : > { %5907 = vst [vmem:[#allocation17_spill] sm:$0xff] %v4840_v50  ;;  %v4860_v61 = vsel %vm250_vm0, %v292_v43, %v294_v49  ;;  %v4868_v9 = vsel %vm915_vm2, %v921_v53, %v922_v54  ;;  %v927_v31 = vrot.slane %v4656_v36, 2  ;;  %v3254_v27 = vld [vmem:[%s5815_s1 + $0xd0] sm:$0xff]  ;;  %v3255_v30 = vld [vmem:[%s5815_s1 + $0xd8] sm:$0xff]  ;;  %v299_v33 = vrot.slane %v4865_v8, 1 }
  0x24   : > { %5908 = vst [vmem:[#allocation18_spill] sm:$0xff] %v4860_v61  ;;  %v929_v40 = vrot.slane %v4660_v38, 2  ;;  %v4895_v42 = vsel %vm915_vm2, %v922_v54, %v924_v59  ;;  %v4898_v43 = vsel %vm250_vm0, %v296_v62, %v297_v5  ;;  %v301_v49 = vrot.slane %v4873_v17, 1  ;;  %v4903_v12 = vld [vmem:[%s4612_s12 + $0x100] sm:$0x3]  ;;  %v4914_v54 = vld [vmem:[%s4612_s12 + $0x110] sm:$0xff] }
  0x25   : > { %3705 = vmatmul.mubr.msk.f32.gmra.mrb[6].mxu1 %vm336_vm1, %v4736_v4  ;;  %3929 = vmatmul.mubr.msk.f32.gmra.mrb[6].mxu0 %vm336_vm1, %v4764_v14  ;;  %5909 = vst [vmem:[#allocation19_spill] sm:$0xff] %v4898_v43  ;;  %v302_v53 = vrot.slane %v4876_v18, 1  ;;  %v931_v38 = vrot.slane %v4671_v45, 2  ;;  %v4243_v59 = vpack.c.bf16 %v3255_v30, %v3254_v27  ;;  %v4923_v62 = vsel %vm250_vm0, %v297_v5, %v299_v33  ;;  %v3288_v27 = vld [vmem:[%s5815_s1 + $0xe0] sm:$0xff]  ;;  %v3289_v30 = vld [vmem:[%s5815_s1 + $0xe8] sm:$0xff] }
  0x26   : > { %3707 = vmatprep.mubr.msk.f32.mxu1 %vm336_vm1, %v4740_v6  ;;  %3931 = vmatprep.mubr.msk.f32.mxu0 %vm336_vm1, %v4768_v16  ;;  %5910 = vst [vmem:[#allocation20_spill] sm:$0xff] %v4923_v62  ;;  %v4982_v6 = vld [vmem:[%s4612_s12 + $0x130] sm:$0x3]  ;;  %v944_v4 = vrot.slane %v4745_v10, 2  ;;  %v5018_v58 = vld [vmem:[%s4612_s12 + $0x148] sm:$0x3] }
  0x27   : > { %v4939_v5 = vsel %vm250_vm0, %v301_v49, %v302_v53  ;;  %v4956_v49 = vld [vmem:[%s4612_s12 + $0x128] sm:$0xff]  ;;  %v949_v55 = vrot.slane %v4773_v19, 2  ;;  %v951_v19 = vrot.slane %v4778_v23, 2 }
  0x28   : > { %5912 = vst [vmem:[#allocation22_spill] sm:$0xff] %v4939_v5 }
  0x29   : > { %3708 = vmatmul.mubr.msk.f32.gmra.mrb[8].mxu1 %vm336_vm1, %v4764_v14  ;;  %3932 = vmatmul.mubr.msk.f32.gmra.mrb[8].mxu0 %vm336_vm1, %v4790_v25  ;;  %v939_v14 = vrot.slane %v4716_v63, 2  ;;  %v941_v63 = vrot.slane %v4722_v1, 2 }
  0x2a   : > { %3710 = vmatprep.mubr.msk.f32.mxu1 %vm336_vm1, %v4768_v16  ;;  %3934 = vmatprep.mubr.msk.f32.mxu0 %vm336_vm1, %v4794_v29 }
  0x2d   : > { %3711 = vmatmul.mubr.msk.f32.gmra.mrb[10].mxu1 %vm336_vm1, %v4790_v25  ;;  %3935 = vmatmul.mubr.msk.f32.gmra.mrb[10].mxu0 %vm336_vm1, %v4816_v39  ;;  %v4953_v25 = vld [vmem:[%s4612_s12 + $0x120] sm:$0xff] }
  0x2e   : > { %3713 = vmatprep.mubr.msk.f32.mxu1 %vm336_vm1, %v4794_v29  ;;  %3937 = vmatprep.mubr.msk.f32.mxu0 %vm336_vm1, %v4820_v41  ;;  %v936_v29 = vrot.slane %v4685_v51, 2 }
  0x31   : > { %3714 = vmatmul.mubr.msk.f32.gmra.mrb[12].mxu1 %vm336_vm1, %v4816_v39  ;;  %3938 = vmatmul.mubr.msk.f32.gmra.mrb[12].mxu0 %vm336_vm1, %v4836_v48  ;;  %v304_v39 = vrot.slane %v4903_v12, 1 }
  0x32   : > { %3716 = vmatprep.mubr.msk.f32.mxu1 %vm336_vm1, %v4820_v41  ;;  %3940 = vmatprep.mubr.msk.f32.mxu0 %vm336_vm1, %v4840_v50  ;;  %v4911_v41 = vld [vmem:[%s4612_s12 + $0x108] sm:$0xff] }
  0x33   : > { %v306_v33 = vrot.slane %v4911_v41, 1 }
  0x35   : > { %3717 = vmatmul.mubr.msk.f32.gmra.mrb[14].mxu1 %vm336_vm1, %v4836_v48  ;;  %3941 = vmatmul.mubr.msk.f32.gmra.mrb[14].mxu0 %vm336_vm1, %v4860_v61  ;;  %v932_v48 = vrot.slane %v4674_v46, 2 }
  0x36   : > { %3719 = vmatprep.mubr.msk.f32.mxu1 %vm336_vm1, %v4840_v50  ;;  %3975 = vmatprep.mubr.msk.f32.mxu0 %vm336_vm1, %v4868_v9  ;;  %v4906_v50 = vsel %vm915_vm2, %v926_v15, %v927_v31  ;;  %v4926_v15 = vsel %vm915_vm2, %v927_v31, %v929_v40  ;;  %v934_v31 = vrot.slane %v4677_v47, 2  ;;  %v307_v40 = vrot.slane %v4914_v54, 1 }
  0x37   : > { %5911 = vst [vmem:[#allocation21_spill] sm:$0xff] %v4926_v15  ;;  %v4960_v47 = vpack.c.bf16 %v3289_v30, %v3288_v27 }
  0x38   : > { %v4974_v27 = vsel %vm915_vm2, %v932_v48, %v934_v31  ;;  %v4977_v30 = vsel %vm250_vm0, %v306_v33, %v307_v40  ;;  %v4993_v31 = vld [vmem:[%s4612_s12 + $0x140] sm:$0xff]  ;;  %v314_v33 = vrot.slane %v4982_v6, 1 }
  0x39   : > { %3720 = vmatmul.mubr.msk.f32.gmra.mrb[16].mxu1 %vm336_vm1, %v4860_v61  ;;  %3976 = vmatmul.mubr.msk.f32.vlgmr.msra.gmra.mrb[0].mxu0 %vm336_vm1, %v4895_v42  ;;  %v4948_v61 = vsel %vm915_vm2, %v931_v38, %v932_v48  ;;  %v4967_v38 = vsel %vm250_vm0, %v302_v53, %v304_v39  ;;  %5915 = vst [vmem:[#allocation25_spill] sm:$0xff] %v4974_v27  ;;  %5916 = vst [vmem:[#allocation26_spill] sm:$0xff] %v4977_v30  ;;  %v942_v53 = vrot.slane %v4725_v2, 2  ;;  %v4990_v48 = vld [vmem:[%s4612_s12 + $0x138] sm:$0xff] }
  0x3a   : > { %3722 = vmatprep.mubr.msk.f32.mxu1 %vm336_vm1, %v4898_v43  ;;  %4242 = vmatpush3.bf16.msra.mxu0 %v4718_v0  ;;  %v4945_v43 = vld [vmem:[%s4612_s12 + $0x118] sm:$0x3]  ;;  %5913 = vst [vmem:[#allocation23_spill] sm:$0xff] %v4948_v61  ;;  %v937_v0 = vrot.slane %v4688_v52, 2  ;;  %5914 = vst [vmem:[#allocation24_spill] sm:$0xff] %v4967_v38  ;;  %v316_v60 = vrot.slane %v4990_v48, 1 }
  0x3b   : > { %3978 = vmatprep.mubr.msk.f32.mxu0 %vm336_vm1, %v4906_v50  ;;  %4244 = vmatprep.subr.bf16.mxu0 %v4243_v59  ;;  %v309_v16 = vrot.slane %v4945_v43, 1 }
  0x3c   : > { %v4985_v39 = vsel %vm915_vm2, %v936_v29, %v937_v0 }
  0x3d   : > { %3723 = vmatmul.mubr.msk.f32.gmra.mrb[18].mxu1 %vm336_vm1, %v4923_v62  ;;  %3979 = vmatmul.mubr.msk.f32.gmra.mrb[2].mxu0 %vm336_vm1, %v4926_v15  ;;  %v311_v62 = vrot.slane %v4953_v25, 1  ;;  %5917 = vst [vmem:[#allocation27_spill] sm:$0xff] %v4985_v39  ;;  %v5003_v29 = vsel %vm250_vm0, %v307_v40, %v309_v16  ;;  %v5021_v16 = vsel %vm915_vm2, %v941_v63, %v942_v53  ;;  %v947_v40 = vrot.slane %v4754_v13, 2  ;;  %v5088_v15 = vld [vmem:[%s4612_s12 + $0x178] sm:$0x3] }
  0x3e   : > { %3725 = vmatprep.mubr.msk.f32.mxu1 %vm336_vm1, %v4939_v5  ;;  %3981 = vmatprep.mubr.msk.f32.mxu0 %vm336_vm1, %v4948_v61  ;;  %v312_v5 = vrot.slane %v4956_v49, 1  ;;  %5918 = vst [vmem:[#allocation28_spill] sm:$0xff] %v5003_v29  ;;  %5921 = vst [vmem:[#allocation31_spill] sm:$0xff] %v5021_v16  ;;  %v319_v63 = vrot.slane %v5018_v58, 1 }
  0x3f   : > { %4246 = vmatpush3.bf16.msra.mxu0 %v4243_v59  ;;  %v5006_v59 = vsel %vm915_vm2, %v937_v0, %v939_v14  ;;  %v946_v14 = vrot.slane %v4751_v11, 2  ;;  %v5026_v0 = vld [vmem:[%s4612_s12 + $0x150] sm:$0xff] }
  0x40   : > { %4248 = vmatprep.subr.bf16.mxu0 %v4960_v47  ;;  %5919 = vst [vmem:[#allocation29_spill] sm:$0xff] %v5006_v59  ;;  %v5038_v10 = vsel %vm250_vm0, %v312_v5, %v314_v33  ;;  %v952_v33 = vrot.slane %v4781_v24, 2 }
  0x41   : > { %3726 = vmatmul.mubr.msk.f32.gmra.mrb[20].mxu1 %vm336_vm1, %v4967_v38  ;;  %3982 = vmatmul.mubr.msk.f32.gmra.mrb[4].mxu0 %vm336_vm1, %v4974_v27  ;;  %v5012_v38 = vsel %vm250_vm0, %v311_v62, %v312_v5  ;;  %v5029_v62 = vld [vmem:[%s4612_s12 + $0x158] sm:$0xff]  ;;  %5922 = vst [vmem:[#allocation32_spill] sm:$0xff] %v5038_v10  ;;  %v5053_v27 = vld [vmem:[%s4612_s12 + $0x160] sm:$0x3]  ;;  %v5056_v5 = vsel %vm915_vm2, %v946_v14, %v947_v40 }
  0x42   : > { %3728 = vmatprep.mubr.msk.f32.mxu1 %vm336_vm1, %v4977_v30  ;;  %3984 = vmatprep.mubr.msk.f32.mxu0 %vm336_vm1, %v4985_v39  ;;  %5920 = vst [vmem:[#allocation30_spill] sm:$0xff] %v5012_v38  ;;  %v317_v30 = vrot.slane %v4993_v31, 1  ;;  %v5045_v39 = vsel %vm915_vm2, %v942_v53, %v944_v4  ;;  %v5064_v4 = vld [vmem:[%s4612_s12 + $0x170] sm:$0xff]  ;;  %v5076_v53 = vsel %vm915_vm2, %v947_v40, %v949_v55  ;;  %v324_v14 = vrot.slane %v5053_v27, 1 }
  0x43   : > { %5923 = vst [vmem:[#allocation33_spill] sm:$0xff] %v5045_v39  ;;  %5926 = vst [vmem:[#allocation36_spill] sm:$0xff] %v5064_v4  ;;  %v956_v55 = vrot.slane %v4804_v35, 2  ;;  %v957_v40 = vrot.slane %v4807_v37, 2 }
  0x44   : > { %5928 = vst [vmem:[#allocation38_spill] sm:$0xff] %v5076_v53 }
  0x45   : > { %3729 = vmatmul.mubr.msk.f32.gmra.mrb[22].mxu1 %vm336_vm1, %v5003_v29  ;;  %3985 = vmatmul.mubr.msk.f32.gmra.mrb[6].mxu0 %vm336_vm1, %v5006_v59  ;;  %v5048_v29 = vsel %vm250_vm0, %v316_v60, %v317_v30  ;;  %v321_v59 = vrot.slane %v5026_v0, 1  ;;  %v5073_v60 = vsel %vm250_vm0, %v317_v30, %v319_v63  ;;  %v5091_v30 = vsel %vm915_vm2, %v951_v19, %v952_v33 }
  0x46   : > { %3731 = vmatprep.mubr.msk.f32.mxu1 %vm336_vm1, %v5012_v38  ;;  %3987 = vmatprep.mubr.msk.f32.mxu0 %vm336_vm1, %v5021_v16  ;;  %5924 = vst [vmem:[#allocation34_spill] sm:$0xff] %v5048_v29  ;;  %v322_v38 = vrot.slane %v5029_v62, 1  ;;  %v5061_v16 = vld [vmem:[%s4612_s12 + $0x168] sm:$0xff]  ;;  %5927 = vst [vmem:[#allocation37_spill] sm:$0xff] %v5073_v60 }
  0x47   : > { %5925 = vst [vmem:[#allocation35_spill] sm:$0xff] %v5061_v16 }
  0x48   : > { %v5082_v61 = vsel %vm250_vm0, %v321_v59, %v322_v38  ;;  %v329_v59 = vrot.slane %v5088_v15, 1 }
  0x49   : > { %3732 = vmatmul.mubr.msk.f32.gmra.mrb[24].mxu1 %vm336_vm1, %v5038_v10  ;;  %3988 = vmatmul.mubr.msk.f32.gmra.mrb[8].mxu0 %vm336_vm1, %v5045_v39  ;;  %5929 = vst [vmem:[#allocation39_spill] sm:$0xff] %v5082_v61  ;;  %v954_v10 = vrot.slane %v4799_v34, 2  ;;  %v326_v39 = vrot.slane %v5061_v16, 1  ;;  %v5102_v34 = vsel %vm250_vm0, %v322_v38, %v324_v14  ;;  %v962_v38 = vrot.slane %v4848_v57, 2 }
  0x4a   : > { %3734 = vmatprep.mubr.msk.f32.mxu1 %vm336_vm1, %v5048_v29  ;;  %3990 = vmatprep.mubr.msk.f32.mxu0 %vm336_vm1, %v5056_v5  ;;  %v327_v29 = vrot.slane %v5064_v4, 1  ;;  %5930 = vst [vmem:[#allocation40_spill] sm:$0xff] %v5102_v34  ;;  %v966_v14 = vrot.slane %v4873_v17, 2 }
  0x4b   : > { %v5108_v63 = vsel %vm915_vm2, %v952_v33, %v954_v10  ;;  %v964_v10 = vrot.slane %v4865_v8, 2  ;;  %v969_v8 = vrot.slane %v4903_v12, 2 }
  0x4c   : > { %5931 = vst [vmem:[#allocation41_spill] sm:$0xff] %v5108_v63  ;;  %v5111_v19 = vsel %vm250_vm0, %v326_v39, %v327_v29  ;;  %v5126_v39 = vsel %vm250_vm0, %v327_v29, %v329_v59  ;;  %v3110_v29 = vld [vmem:[%s5815_s1 + $0x50] sm:$0xff]  ;;  %v971_v59 = vrot.slane %v4911_v41, 2 }
  0x4d   : > { %3735 = vmatmul.mubr.msk.f32.gmra.mrb[26].mxu1 %vm336_vm1, %v5073_v60  ;;  %3991 = vmatmul.mubr.msk.f32.gmra.mrb[10].mxu0 %vm336_vm1, %v5076_v53  ;;  %5932 = vst [vmem:[#allocation42_spill] sm:$0xff] %v5111_v19  ;;  %v959_v60 = vrot.slane %v4825_v44, 2  ;;  %v5115_v53 = vsel %vm915_vm2, %v956_v55, %v957_v40  ;;  %5933 = vst [vmem:[#allocation43_spill] sm:$0xff] %v5126_v39  ;;  %v967_v55 = vrot.slane %v4876_v18, 2 }
  0x4e   : > { %3737 = vmatprep.mubr.msk.f32.mxu1 %vm336_vm1, %v5082_v61  ;;  %3993 = vmatprep.mubr.msk.f32.mxu0 %vm336_vm1, %v5091_v30  ;;  %v961_v61 = vrot.slane %v4845_v56, 2 }
  0x4f   : > { %v5131_v44 = vsel %vm915_vm2, %v957_v40, %v959_v60  ;;  %v3111_v60 = vld [vmem:[%s5815_s1 + $0x58] sm:$0xff]  ;;  %v5158_v40 = vsel %vm915_vm2, %v966_v14, %v967_v55  ;;  %v5178_v12 = vsel %vm915_vm2, %v967_v55, %v969_v8  ;;  %v979_v55 = vrot.slane %v4982_v6, 2 }
  0x50   : > { %v5135_v33 = vsel %vm915_vm2, %v961_v61, %v962_v38  ;;  %v5154_v61 = vsel %vm915_vm2, %v962_v38, %v964_v10  ;;  %v3145_v38 = vld [vmem:[%s5815_s1 + $0x68] sm:$0xff]  ;;  %v974_v10 = vrot.slane %v4945_v43, 2  ;;  %v981_v8 = vrot.slane %v4990_v48, 2 }
  0x51   : > { %3738 = vmatmul.mubr.msk.f32.gmra.mrb[28].mxu1 %vm336_vm1, %v5102_v34  ;;  %3994 = vmatmul.mubr.msk.f32.gmra.mrb[12].mxu0 %vm336_vm1, %v5108_v63  ;;  %v3144_v34 = vld [vmem:[%s5815_s1 + $0x60] sm:$0xff] }
  0x52   : > { %3740 = vmatprep.mubr.msk.f32.mxu1 %vm336_vm1, %v5111_v19  ;;  %3996 = vmatprep.mubr.msk.f32.mxu0 %vm336_vm1, %v5115_v53  ;;  %v4211_v19 = vpack.c.bf16 %v3111_v60, %v3110_v29  ;;  %v976_v29 = vrot.slane %v4953_v25, 2  ;;  %v5186_v60 = vpack.c.bf16 %v3145_v38, %v3144_v34  ;;  %v986_v38 = vrot.slane %v5026_v0, 2 }
  0x55   : > { %3741 = vmatmul.mubr.msk.f32.gmra.mrb[30].mxu1 %vm336_vm1, %v5126_v39  ;;  %3997 = vmatmul.mubr.msk.f32.gmra.mrb[14].mxu0 %vm336_vm1, %v5131_v44  ;;  %v972_v39 = vrot.slane %v4914_v54, 2 }
  0x56   : > { %3751 = vmatprep.mubr.msk.f32.mxu1 %vm336_vm1, %v4621_v20  ;;  %3999 = vmatprep.mubr.msk.f32.mxu0 %vm336_vm1, %v5135_v33 }
  0x57   : > { %v5182_v14 = vsel %vm915_vm2, %v971_v59, %v972_v39  ;;  %v5197_v43 = vsel %vm915_vm2, %v972_v39, %v974_v10  ;;  %v982_v59 = vrot.slane %v4993_v31, 2  ;;  %v987_v10 = vrot.slane %v5029_v62, 2 }
  0x59   : > { %3752 = vmatmul.mubr.msk.f32.vlgmr.msra.gmra.mrb[0].mxu1 %vm336_vm1, %v4624_v21  ;;  %4000 = vmatmul.mubr.msk.f32.gmra.mrb[16].mxu0 %vm336_vm1, %v5154_v61  ;;  %v5219_v39 = vsel %vm915_vm2, %v981_v8, %v982_v59  ;;  %v992_v8 = vrot.slane %v5064_v4, 2 }
  0x5a   : > { %4210 = vmatpush3.bf16.msra.mxu1 %v4727_v3  ;;  %3754 = vmatprep.mubr.msk.f32.mxu1 %vm336_vm1, %v4627_v22  ;;  %v977_v3 = vrot.slane %v4956_v49, 2  ;;  %5935 = vst [vmem:[#allocation45_spill] sm:$0xff] %v5219_v39  ;;  %v5246_v22 = vld [vmem:[%s4612_s12 + $0x188] sm:$0xff] }
  0x5b   : > { %4002 = vmatprep.mubr.msk.f32.mxu0 %vm336_vm1, %v5158_v40  ;;  %4212 = vmatprep.subr.bf16.mxu1 %v4211_v19 }
  0x5c   : > { %v5201_v34 = vsel %vm915_vm2, %v976_v29, %v977_v3  ;;  %v5215_v6 = vsel %vm915_vm2, %v977_v3, %v979_v55  ;;  %v989_v29 = vrot.slane %v5053_v27, 2  ;;  %v5236_v3 = vsel %vm915_vm2, %v986_v38, %v987_v10 }
  0x5d   : > { %3755 = vmatmul.mubr.msk.f32.gmra.mrb[2].mxu1 %vm336_vm1, %v4635_v26  ;;  %4003 = vmatmul.mubr.msk.f32.gmra.mrb[18].mxu0 %vm336_vm1, %v5178_v12  ;;  %5934 = vst [vmem:[#allocation44_spill] sm:$0xff] %v5215_v6  ;;  %5936 = vst [vmem:[#allocation46_spill] sm:$0xff] %v5236_v3  ;;  %v991_v55 = vrot.slane %v5061_v16, 2  ;;  %v5243_v26 = vld [vmem:[%s4612_s12 + $0x180] sm:$0xff] }
  0x5e   : > { %3757 = vmatprep.mubr.msk.f32.mxu1 %vm336_vm1, %v4648_v32  ;;  %4005 = vmatprep.mubr.msk.f32.mxu0 %vm336_vm1, %v5182_v14  ;;  %v5255_v27 = vsel %vm915_vm2, %v987_v10, %v989_v29  ;;  %v1862_v38 = vrot.slane %v5243_v26, 2 }
  0x5f   : > { %4214 = vmatpush3.bf16.msra.mxu1 %v4211_v19  ;;  %v984_v19 = vrot.slane %v5018_v58, 2  ;;  %5937 = vst [vmem:[#allocation47_spill] sm:$0xff] %v5255_v27 }
  0x60   : > { %4216 = vmatprep.subr.bf16.mxu1 %v5186_v60 }
  0x61   : > { %3758 = vmatmul.mubr.msk.f32.gmra.mrb[4].mxu1 %vm336_vm1, %v4656_v36  ;;  %4006 = vmatmul.mubr.msk.f32.gmra.mrb[20].mxu0 %vm336_vm1, %v5197_v43  ;;  %v5232_v58 = vsel %vm915_vm2, %v982_v59, %v984_v19  ;;  %v994_v59 = vrot.slane %v5088_v15, 2  ;;  %v5259_v19 = vsel %vm915_vm2, %v991_v55, %v992_v8 }
  0x62   : > { %3760 = vmatprep.mubr.msk.f32.mxu1 %vm336_vm1, %v4671_v45  ;;  %4008 = vmatprep.mubr.msk.f32.mxu0 %vm336_vm1, %v5201_v34  ;;  %5938 = vst [vmem:[#allocation48_spill] sm:$0xff] %v5259_v19 }
  0x63   : > { %v5275_v15 = vsel %vm915_vm2, %v992_v8, %v994_v59  ;;  %v3290_v8 = vld [vmem:[%s5815_s1 + $0xf0] sm:$0xff]  ;;  %v3291_v59 = vld [vmem:[%s5815_s1 + $0xf8] sm:$0xff] }
  0x64   : > { %5939 = vst [vmem:[#allocation49_spill] sm:$0xff] %v5275_v15 }
  0x65   : > { %3761 = vmatmul.mubr.msk.f32.gmra.mrb[6].mxu1 %vm336_vm1, %v4674_v46  ;;  %4009 = vmatmul.mubr.msk.f32.gmra.mrb[22].mxu0 %vm336_vm1, %v5215_v6  ;;  %v5264_v6 = vld [vmem:[%s4612_s12 + $0x190] sm:$0x3] }
  0x66   : > { %3763 = vmatprep.mubr.msk.f32.mxu1 %vm336_vm1, %v4685_v51  ;;  %4011 = vmatprep.mubr.msk.f32.mxu0 %vm336_vm1, %v5219_v39  ;;  %v1863_v39 = vrot.slane %v5246_v22, 2  ;;  %v1865_v10 = vrot.slane %v5264_v6, 2 }
  0x68   : > { %v5279_v29 = vsel %vm915_vm2, %v1862_v38, %v1863_v39  ;;  %v5290_v55 = vsel %vm915_vm2, %v1863_v39, %v1865_v10  ;;  %v4251_v39 = vpack.c.bf16 %v3291_v59, %v3290_v8  ;;  %v3324_v38 = vld [vmem:[%s5815_s1 + $0x100] sm:$0xff]  ;;  %v3325_v10 = vld [vmem:[%s5815_s1 + $0x108] sm:$0xff]  ;;  %v917_v59 = vrot.slane %v4624_v21, 2  ;;  %v3147_v21 = vld [vmem:[%s5815_s1 + $0x78] sm:$0xff] }
  0x69   : > { %3764 = vmatmul.mubr.msk.f32.gmra.mrb[8].mxu1 %vm336_vm1, %v4688_v52  ;;  %4012 = vmatmul.mubr.msk.f32.gmra.mrb[24].mxu0 %vm336_vm1, %v5232_v58  ;;  %5940 = vst [vmem:[#allocation50_spill] sm:$0xff] %v5279_v29  ;;  %5941 = vst [vmem:[#allocation51_spill] sm:$0xff] %v5290_v55  ;;  %v5321_v8 = vpack.c.bf16 %v3325_v10, %v3324_v38 }
  0x6a   : > { %3766 = vmatprep.mubr.msk.f32.mxu1 %vm336_vm1, %v4722_v1  ;;  %4014 = vmatprep.mubr.msk.f32.mxu0 %vm336_vm1, %v5236_v3 }
  0x6d   : > { %3767 = vmatmul.mubr.msk.f32.gmra.mrb[10].mxu1 %vm336_vm1, %v4725_v2  ;;  %4015 = vmatmul.mubr.msk.f32.gmra.mrb[26].mxu0 %vm336_vm1, %v5255_v27 }
  0x6e   : > { %3769 = vmatprep.mubr.msk.f32.mxu1 %vm336_vm1, %v4751_v11  ;;  %4017 = vmatprep.mubr.msk.f32.mxu0 %vm336_vm1, %v5259_v19 }
  0x71   : > { %3770 = vmatmul.mubr.msk.f32.gmra.mrb[12].mxu1 %vm336_vm1, %v4754_v13  ;;  %4018 = vmatmul.mubr.msk.f32.gmra.mrb[28].mxu0 %vm336_vm1, %v5275_v15 }
  0x72   : > { %3772 = vmatprep.mubr.msk.f32.mxu1 %vm336_vm1, %v4778_v23  ;;  %4020 = vmatprep.mubr.msk.f32.mxu0 %vm336_vm1, %v5279_v29  ;;  %v5950_v29 = vld [vmem:[#allocation5_spill] sm:$0xff] }
  0x75   : > { %3773 = vmatmul.mubr.msk.f32.gmra.mrb[14].mxu1 %vm336_vm1, %v4781_v24  ;;  %4021 = vmatmul.mubr.msk.f32.gmra.mrb[30].mxu0 %vm336_vm1, %v5290_v55  ;;  %v3327_v55 = vld [vmem:[%s5815_s1 + $0x118] sm:$0xff] }
  0x76   : > { %3775 = vmatprep.mubr.msk.f32.mxu1 %vm336_vm1, %v4804_v35  ;;  %4031 = vmatprep.mubr.msk.f32.mxu0 %vm336_vm1, %v4648_v32 }
  0x79   : > { %3776 = vmatmul.mubr.msk.f32.gmra.mrb[16].mxu1 %vm336_vm1, %v4807_v37  ;;  %4032 = vmatmul.mubr.msk.f32.vlgmr.msra.gmra.mrb[0].mxu0 %vm336_vm1, %v4656_v36 }
  0x7a   : > { %3778 = vmatprep.mubr.msk.f32.mxu1 %vm336_vm1, %v4845_v56  ;;  %4250 = vmatpush3.bf16.msra.mxu0 %v4960_v47  ;;  %v916_v47 = vrot.slane %v4621_v20, 2  ;;  %v3146_v20 = vld [vmem:[%s5815_s1 + $0x70] sm:$0xff] }
  0x7b   : > { %4034 = vmatprep.mubr.msk.f32.mxu0 %vm336_vm1, %v4671_v45  ;;  %4252 = vmatprep.subr.bf16.mxu0 %v4251_v39  ;;  %v4219_v10 = vpack.c.bf16 %v3147_v21, %v3146_v20  ;;  %v5440_v20 = vld [vmem:[%s4612_s12 + $0x198] sm:$0xff]  ;;  %v5949_v21 = vld [vmem:[#allocation38_spill] sm:$0xff] }
  0x7c   : > { %v918_v38 = vsel %vm915_vm2, %v916_v47, %v917_v59  ;;  %v5945_v47 = vld [vmem:[#allocation27_spill] sm:$0xff] }
  0x7d   : > { %3779 = vmatmul.mubr.msk.f32.gmra.mrb[18].mxu1 %vm336_vm1, %v4848_v57  ;;  %4035 = vmatmul.mubr.msk.f32.gmra.mrb[2].mxu0 %vm336_vm1, %v4674_v46 }
  0x7e   : > { %3781 = vmatprep.mubr.msk.f32.mxu1 %vm336_vm1, %v4873_v17  ;;  %4037 = vmatprep.mubr.msk.f32.mxu0 %vm336_vm1, %v4685_v51 }
  0x7f   : > { %4254 = vmatpush3.bf16.msra.mxu0 %v4251_v39  ;;  %v919_v39 = vrot.slane %v4639_v28, 2 }
  0x80   : > { %4256 = vmatprep.subr.bf16.mxu0 %v5321_v8 }
  0x81   : > { %3782 = vmatmul.mubr.msk.f32.gmra.mrb[20].mxu1 %vm336_vm1, %v4876_v18  ;;  %4038 = vmatmul.mubr.msk.f32.gmra.mrb[4].mxu0 %vm336_vm1, %v4688_v52  ;;  %v920_v28 = vsel %vm915_vm2, %v917_v59, %v919_v39  ;;  %v5946_v59 = vld [vmem:[#allocation29_spill] sm:$0xff]  ;;  %v5947_v39 = vld [vmem:[#allocation31_spill] sm:$0xff] }
  0x82   : > { %3784 = vmatprep.mubr.msk.f32.mxu1 %vm336_vm1, %v4911_v41  ;;  %4040 = vmatprep.mubr.msk.f32.mxu0 %vm336_vm1, %v4722_v1 }
  0x85   : > { %3785 = vmatmul.mubr.msk.f32.gmra.mrb[22].mxu1 %vm336_vm1, %v4914_v54  ;;  %4041 = vmatmul.mubr.msk.f32.gmra.mrb[6].mxu0 %vm336_vm1, %v4725_v2 }
  0x86   : > { %3787 = vmatprep.mubr.msk.f32.mxu1 %vm336_vm1, %v4953_v25  ;;  %4043 = vmatprep.mubr.msk.f32.mxu0 %vm336_vm1, %v4751_v11 }
  0x89   : > { %3788 = vmatmul.mubr.msk.f32.gmra.mrb[24].mxu1 %vm336_vm1, %v4956_v49  ;;  %4044 = vmatmul.mubr.msk.f32.gmra.mrb[8].mxu0 %vm336_vm1, %v4754_v13 }
  0x8a   : > { %3790 = vmatprep.mubr.msk.f32.mxu1 %vm336_vm1, %v4990_v48  ;;  %4046 = vmatprep.mubr.msk.f32.mxu0 %vm336_vm1, %v4778_v23 }
  0x8d   : > { %3791 = vmatmul.mubr.msk.f32.gmra.mrb[26].mxu1 %vm336_vm1, %v4993_v31  ;;  %4047 = vmatmul.mubr.msk.f32.gmra.mrb[10].mxu0 %vm336_vm1, %v4781_v24 }
  0x8e   : > { %3793 = vmatprep.mubr.msk.f32.mxu1 %vm336_vm1, %v5026_v0  ;;  %4049 = vmatprep.mubr.msk.f32.mxu0 %vm336_vm1, %v4804_v35 }
  0x91   : > { %3794 = vmatmul.mubr.msk.f32.gmra.mrb[28].mxu1 %vm336_vm1, %v5029_v62  ;;  %4050 = vmatmul.mubr.msk.f32.gmra.mrb[12].mxu0 %vm336_vm1, %v4807_v37 }
  0x92   : > { %3796 = vmatprep.mubr.msk.f32.mxu1 %vm336_vm1, %v5061_v16  ;;  %4052 = vmatprep.mubr.msk.f32.mxu0 %vm336_vm1, %v4845_v56 }
  0x95   : > { %3797 = vmatmul.mubr.msk.f32.gmra.mrb[30].mxu1 %vm336_vm1, %v5064_v4  ;;  %4053 = vmatmul.mubr.msk.f32.gmra.mrb[14].mxu0 %vm336_vm1, %v4848_v57 }
  0x96   : > { %3807 = vmatprep.mubr.msk.f32.mxu1 %vm336_vm1, %v918_v38  ;;  %4055 = vmatprep.mubr.msk.f32.mxu0 %vm336_vm1, %v4873_v17  ;;  %v5948_v38 = vld [vmem:[#allocation33_spill] sm:$0xff] }
  0x99   : > { %3808 = vmatmul.mubr.msk.f32.vlgmr.msra.gmra.mrb[0].mxu1 %vm336_vm1, %v920_v28  ;;  %4056 = vmatmul.mubr.msk.f32.gmra.mrb[16].mxu0 %vm336_vm1, %v4876_v18  ;;  %v5451_v28 = vld [vmem:[%s4612_s12 + $0x1a0] sm:$0xff] }
  0x9a   : > { %4218 = vmatpush3.bf16.msra.mxu1 %v5186_v60  ;;  %3810 = vmatprep.mubr.msk.f32.mxu1 %vm336_vm1, %v4868_v9  ;;  %v5942_v9 = vld [vmem:[#allocation21_spill] sm:$0xff] }
  0x9b   : > { %4058 = vmatprep.mubr.msk.f32.mxu0 %vm336_vm1, %v4911_v41  ;;  %4220 = vmatprep.subr.bf16.mxu1 %v4219_v10  ;;  %v5944_v60 = vld [vmem:[#allocation25_spill] sm:$0xff] }
  0x9d   : > { %3811 = vmatmul.mubr.msk.f32.gmra.mrb[2].mxu1 %vm336_vm1, %v4895_v42  ;;  %4059 = vmatmul.mubr.msk.f32.gmra.mrb[18].mxu0 %vm336_vm1, %v4914_v54  ;;  %v5943_v42 = vld [vmem:[#allocation23_spill] sm:$0xff] }
  0x9e   : > { %3813 = vmatprep.mubr.msk.f32.mxu1 %vm336_vm1, %v4906_v50  ;;  %4061 = vmatprep.mubr.msk.f32.mxu0 %vm336_vm1, %v4953_v25 }
  0x9f   : > { %4222 = vmatpush3.bf16.msra.mxu1 %v4219_v10  ;;  %v3326_v10 = vld [vmem:[%s5815_s1 + $0x110] sm:$0xff] }
  0xa0   : > { %4263 = vmatprep.subr.bf16.mxu1 %v4581_v7 }
  0xa1   : > { %3814 = vmatmul.mubr.msk.f32.gmra.mrb[4].mxu1 %vm336_vm1, %v5942_v9  ;;  %4062 = vmatmul.mubr.msk.f32.gmra.mrb[20].mxu0 %vm336_vm1, %v4956_v49 }
  0xa2   : > { %3816 = vmatprep.mubr.msk.f32.mxu1 %vm336_vm1, %v5943_v42  ;;  %4064 = vmatprep.mubr.msk.f32.mxu0 %vm336_vm1, %v4990_v48 }
  0xa5   : > { %3817 = vmatmul.mubr.msk.f32.gmra.mrb[6].mxu1 %vm336_vm1, %v5944_v60  ;;  %4065 = vmatmul.mubr.msk.f32.gmra.mrb[22].mxu0 %vm336_vm1, %v4993_v31 }
  0xa6   : > { %3819 = vmatprep.mubr.msk.f32.mxu1 %vm336_vm1, %v5945_v47  ;;  %4067 = vmatprep.mubr.msk.f32.mxu0 %vm336_vm1, %v5026_v0 }
  0xa9   : > { %3820 = vmatmul.mubr.msk.f32.gmra.mrb[8].mxu1 %vm336_vm1, %v5946_v59  ;;  %4068 = vmatmul.mubr.msk.f32.gmra.mrb[24].mxu0 %vm336_vm1, %v5029_v62 }
  0xaa   : > { %3822 = vmatprep.mubr.msk.f32.mxu1 %vm336_vm1, %v5947_v39  ;;  %4070 = vmatprep.mubr.msk.f32.mxu0 %vm336_vm1, %v5061_v16  ;;  %v5951_v16 = vld [vmem:[#allocation6_spill] sm:$0xff] }
  0xad   : > { %3823 = vmatmul.mubr.msk.f32.gmra.mrb[10].mxu1 %vm336_vm1, %v5948_v38  ;;  %4071 = vmatmul.mubr.msk.f32.gmra.mrb[26].mxu0 %vm336_vm1, %v5064_v4  ;;  %v4259_v4 = vpack.c.bf16 %v3327_v55, %v3326_v10  ;;  %v5954_v55 = vld [vmem:[#allocation9_spill] sm:$0xff]  ;;  %v5959_v10 = vld [vmem:[#allocation44_spill] sm:$0xff] }
  0xae   : > { %3825 = vmatprep.mubr.msk.f32.mxu1 %vm336_vm1, %v5056_v5  ;;  %4073 = vmatprep.mubr.msk.f32.mxu0 %vm336_vm1, %v5243_v26 }
  0xb1   : > { %3826 = vmatmul.mubr.msk.f32.gmra.mrb[12].mxu1 %vm336_vm1, %v5949_v21  ;;  %4074 = vmatmul.mubr.msk.f32.gmra.mrb[28].mxu0 %vm336_vm1, %v5246_v22 }
  0xb2   : > { %3828 = vmatprep.mubr.msk.f32.mxu1 %vm336_vm1, %v5091_v30  ;;  %4076 = vmatprep.mubr.msk.f32.mxu0 %vm336_vm1, %v5440_v20 }
  0xb5   : > { %3829 = vmatmul.mubr.msk.f32.gmra.mrb[14].mxu1 %vm336_vm1, %v5108_v63  ;;  %4077 = vmatmul.mubr.msk.f32.gmra.mrb[30].mxu0 %vm336_vm1, %v5451_v28  ;;  %v5952_v63 = vld [vmem:[#allocation7_spill] sm:$0xff] }
  0xb6   : > { %3831 = vmatprep.mubr.msk.f32.mxu1 %vm336_vm1, %v5115_v53  ;;  %4087 = vmatprep.mubr.msk.f32.mxu0 %vm336_vm1, %v5950_v29  ;;  %v5953_v29 = vld [vmem:[#allocation8_spill] sm:$0xff] }
  0xb9   : > { %3832 = vmatmul.mubr.msk.f32.gmra.mrb[16].mxu1 %vm336_vm1, %v5131_v44  ;;  %4088 = vmatmul.mubr.msk.f32.vlgmr.msra.gmra.mrb[0].mxu0 %vm336_vm1, %v5951_v16  ;;  %v5955_v16 = vld [vmem:[#allocation10_spill] sm:$0xff] }
  0xba   : > { %3834 = vmatprep.mubr.msk.f32.mxu1 %vm336_vm1, %v5135_v33  ;;  %4258 = vmatpush3.bf16.msra.mxu0 %v5321_v8  ;;  %v5957_v8 = vld [vmem:[#allocation12_spill] sm:$0xff] }
  0xbb   : > { %4090 = vmatprep.mubr.msk.f32.mxu0 %vm336_vm1, %v5952_v63  ;;  %4260 = vmatprep.subr.bf16.mxu0 %v4259_v4  ;;  %v5956_v63 = vld [vmem:[#allocation11_spill] sm:$0xff] }
  0xbd   : > { %3835 = vmatmul.mubr.msk.f32.gmra.mrb[18].mxu1 %vm336_vm1, %v5154_v61  ;;  %4091 = vmatmul.mubr.msk.f32.gmra.mrb[2].mxu0 %vm336_vm1, %v5953_v29  ;;  %v5960_v29 = vld [vmem:[#allocation14_spill] sm:$0xff] }
  0xbe   : > { %3837 = vmatprep.mubr.msk.f32.mxu1 %vm336_vm1, %v5158_v40  ;;  %4093 = vmatprep.mubr.msk.f32.mxu0 %vm336_vm1, %v5954_v55  ;;  %v5961_v55 = vld [vmem:[#allocation45_spill] sm:$0xff] }
  0xbf   : > { %4262 = vmatpush3.bf16.msra.mxu0 %v4259_v4  ;;  %v5958_v4 = vld [vmem:[#allocation13_spill] sm:$0xff] }
  0xc1   : > { %3838 = vmatmul.mubr.msk.f32.gmra.mrb[20].mxu1 %vm336_vm1, %v5178_v12  ;;  %4094 = vmatmul.mubr.msk.f32.gmra.mrb[4].mxu0 %vm336_vm1, %v5955_v16  ;;  %v5962_v16 = vld [vmem:[#allocation15_spill] sm:$0xff] }
  0xc2   : > { %3840 = vmatprep.mubr.msk.f32.mxu1 %vm336_vm1, %v5182_v14  ;;  %4096 = vmatprep.mubr.msk.f32.mxu0 %vm336_vm1, %v5956_v63  ;;  %v5963_v63 = vld [vmem:[#allocation16_spill] sm:$0xff] }
  0xc5   : > { %3841 = vmatmul.mubr.msk.f32.gmra.mrb[22].mxu1 %vm336_vm1, %v5197_v43  ;;  %4097 = vmatmul.mubr.msk.f32.gmra.mrb[6].mxu0 %vm336_vm1, %v5957_v8  ;;  %v5964_v8 = vld [vmem:[#allocation17_spill] sm:$0xff] }
  0xc6   : > { %3843 = vmatprep.mubr.msk.f32.mxu1 %vm336_vm1, %v5201_v34  ;;  %4099 = vmatprep.mubr.msk.f32.mxu0 %vm336_vm1, %v5958_v4  ;;  %v5965_v4 = vld [vmem:[#allocation18_spill] sm:$0xff] }
  0xc9   : > { %3844 = vmatmul.mubr.msk.f32.gmra.mrb[24].mxu1 %vm336_vm1, %v5959_v10  ;;  %4100 = vmatmul.mubr.msk.f32.gmra.mrb[8].mxu0 %vm336_vm1, %v5960_v29  ;;  %v5966_v29 = vld [vmem:[#allocation19_spill] sm:$0xff] }
  0xca   : > { %3846 = vmatprep.mubr.msk.f32.mxu1 %vm336_vm1, %v5961_v55  ;;  %4102 = vmatprep.mubr.msk.f32.mxu0 %vm336_vm1, %v5962_v16  ;;  %v5967_v16 = vld [vmem:[#allocation20_spill] sm:$0xff] }
  0xcd   : > { %3847 = vmatmul.mubr.msk.f32.gmra.mrb[26].mxu1 %vm336_vm1, %v5232_v58  ;;  %4103 = vmatmul.mubr.msk.f32.gmra.mrb[10].mxu0 %vm336_vm1, %v5963_v63  ;;  %v5968_v63 = vld [vmem:[#allocation3_spill] sm:$0xff] }
  0xce   : > { %3849 = vmatprep.mubr.msk.f32.mxu1 %vm336_vm1, %v5236_v3  ;;  %4105 = vmatprep.mubr.msk.f32.mxu0 %vm336_vm1, %v5964_v8  ;;  %v5969_v8 = vld [vmem:[#allocation22_spill] sm:$0xff] }
  0xd1   : > { %3850 = vmatmul.mubr.msk.f32.gmra.mrb[28].mxu1 %vm336_vm1, %v5255_v27  ;;  %4106 = vmatmul.mubr.msk.f32.gmra.mrb[12].mxu0 %vm336_vm1, %v5965_v4  ;;  %v5970_v27 = vld [vmem:[#allocation4_spill] sm:$0xff] }
  0xd2   : > { %3852 = vmatprep.mubr.msk.f32.mxu1 %vm336_vm1, %v5259_v19  ;;  %4108 = vmatprep.mubr.msk.f32.mxu0 %vm336_vm1, %v5966_v29  ;;  %v5971_v4 = vld [vmem:[#allocation24_spill] sm:$0xff]  ;;  %v5973_v19 = vld [vmem:[#allocation2_spill] sm:$0xff] }
  0xd5   : > { %3853 = vmatmul.mubr.msk.f32.gmra.mrb[30].mxu1 %vm336_vm1, %v5275_v15  ;;  %4109 = vmatmul.mubr.msk.f32.gmra.mrb[14].mxu0 %vm336_vm1, %v5967_v16  ;;  %v5972_v15 = vld [vmem:[#allocation26_spill] sm:$0xff] }
  0xd6   : > { %3863 = vmatprep.mubr.msk.f32.mxu1 %vm336_vm1, %v5968_v63  ;;  %4111 = vmatprep.mubr.msk.f32.mxu0 %vm336_vm1, %v5969_v8  ;;  %v5974_v63 = vld [vmem:[#allocation28_spill] sm:$0xff] }
  0xd9   : > { %3864 = vmatmul.mubr.msk.f32.vlgmr.msra.gmra.mrb[0].mxu1 %vm336_vm1, %v5970_v27  ;;  %4112 = vmatmul.mubr.msk.f32.gmra.mrb[16].mxu0 %vm336_vm1, %v5971_v4  ;;  %v1591_v27 = vrot.slane %v5243_v26, 1 }
  0xda   : > { %4265 = vmatpush3.bf16.msra.mxu1 %v4581_v7  ;;  %3866 = vmatprep.mubr.msk.f32.mxu1 %vm336_vm1, %v4648_v32  ;;  %v5975_v7 = vld [vmem:[#allocation30_spill] sm:$0xff]  ;;  %v5976_v32 = vld [vmem:[#allocation32_spill] sm:$0xff] }
  0xdb   : > { %4114 = vmatprep.mubr.msk.f32.mxu0 %vm336_vm1, %v5972_v15  ;;  %4264 = vmatprep.subr.bf16.mxu1 %v5973_v19 }
  0xdd   : > { %3867 = vmatmul.mubr.msk.f32.gmra.mrb[2].mxu1 %vm336_vm1, %v4656_v36  ;;  %4115 = vmatmul.mubr.msk.f32.gmra.mrb[18].mxu0 %vm336_vm1, %v5974_v63  ;;  %v5977_v36 = vld [vmem:[#allocation34_spill] sm:$0xff] }
  0xde   : > { %3869 = vmatprep.mubr.msk.f32.mxu1 %vm336_vm1, %v4671_v45  ;;  %4117 = vmatprep.mubr.msk.f32.mxu0 %vm336_vm1, %v5975_v7  ;;  %v5978_v45 = vld [vmem:[#allocation37_spill] sm:$0xff] }
  0xdf   : > { %4266 = vmatpush3.bf16.msra.mxu1 %v5973_v19  ;;  %v5980_v19 = vld [vmem:[#allocation40_spill] sm:$0xff] }
  0xe1   : > { %3870 = vmatmul.mubr.msk.f32.gmra.mrb[4].mxu1 %vm336_vm1, %v4674_v46  ;;  %4118 = vmatmul.mubr.msk.f32.gmra.mrb[20].mxu0 %vm336_vm1, %v5976_v32  ;;  %v5979_v46 = vld [vmem:[#allocation39_spill] sm:$0xff] }
  0xe2   : > { %3872 = vmatprep.mubr.msk.f32.mxu1 %vm336_vm1, %v4685_v51  ;;  %4120 = vmatprep.mubr.msk.f32.mxu0 %vm336_vm1, %v5977_v36  ;;  %v1592_v51 = vrot.slane %v5246_v22, 1  ;;  %v5584_v36 = vld [vmem:[%s4612_s12 + $0x1a8] sm:$0x3]  ;;  %s3362_s12 = sshll.u32 %s5996_s10, 8 }
  0xe3   : > { %s5745_s13 = scalar_lea.vmem %s5816_s2, %s3362_s12 }
  0xe4   : > { %v5581_v3 = vsel %vm250_vm0, %v1591_v27, %v1592_v51 }
  0xe5   : > { %3873 = vmatmul.mubr.msk.f32.gmra.mrb[6].mxu1 %vm336_vm1, %v4688_v52  ;;  %4121 = vmatmul.mubr.msk.f32.gmra.mrb[22].mxu0 %vm336_vm1, %v5978_v45  ;;  %v5981_v52 = vld [vmem:[#allocation42_spill] sm:$0xff]  ;;  %v2403_v45 = vrot.slane %v5451_v28, 1 }
  0xe6   : > { %3875 = vmatprep.mubr.msk.f32.mxu1 %vm336_vm1, %v4722_v1  ;;  %4123 = vmatprep.mubr.msk.f32.mxu0 %vm336_vm1, %v5979_v46  ;;  %v1594_v1 = vrot.slane %v5264_v6, 1  ;;  %v2402_v46 = vrot.slane %v5440_v20, 1  ;;  %v2405_v6 = vrot.slane %v5584_v36, 1 }
  0xe8   : > { %v2404_v27 = vsel %vm250_vm0, %v2402_v46, %v2403_v45 }
  0xe9   : > { %3876 = vmatmul.mubr.msk.f32.gmra.mrb[8].mxu1 %vm336_vm1, %v4725_v2  ;;  %4124 = vmatmul.mubr.msk.f32.gmra.mrb[24].mxu0 %vm336_vm1, %v5980_v19  ;;  %v5982_v2 = vld [vmem:[#allocation43_spill] sm:$0xff] }
  0xea   : > { %3878 = vmatprep.mubr.msk.f32.mxu1 %vm336_vm1, %v4751_v11  ;;  %4126 = vmatprep.mubr.msk.f32.mxu0 %vm336_vm1, %v5981_v52  ;;  %v5595_v11 = vsel %vm250_vm0, %v1592_v51, %v1594_v1 }
  0xed   : > { %3879 = vmatmul.mubr.msk.f32.gmra.mrb[10].mxu1 %vm336_vm1, %v4754_v13  ;;  %4127 = vmatmul.mubr.msk.f32.gmra.mrb[26].mxu0 %vm336_vm1, %v5982_v2  ;;  %v2406_v13 = vsel %vm250_vm0, %v2403_v45, %v2405_v6 }
  0xee   : > { %3881 = vmatprep.mubr.msk.f32.mxu1 %vm336_vm1, %v4778_v23  ;;  %4129 = vmatprep.mubr.msk.f32.mxu0 %vm336_vm1, %v5581_v3  ;;  %v5983_v23 = vld [vmem:[#allocation41_spill] sm:$0xff] }
  0xf1   : > { %3882 = vmatmul.mubr.msk.f32.gmra.mrb[12].mxu1 %vm336_vm1, %v4781_v24  ;;  %4130 = vmatmul.mubr.msk.f32.gmra.mrb[28].mxu0 %vm336_vm1, %v5595_v11  ;;  %v5984_v24 = vld [vmem:[#allocation35_spill] sm:$0xff] }
  0xf2   : > { %3884 = vmatprep.mubr.msk.f32.mxu1 %vm336_vm1, %v4804_v35  ;;  %4132 = vmatprep.mubr.msk.f32.mxu0 %vm336_vm1, %v2404_v27  ;;  %v5988_v35 = vld [vmem:[#allocation37_spill] sm:$0xff] }
  0xf5   : > { %3885 = vmatmul.mubr.msk.f32.gmra.mrb[14].mxu1 %vm336_vm1, %v4807_v37  ;;  %4133 = vmatmul.mubr.msk.f32.gmra.mrb[30].mxu0 %vm336_vm1, %v2406_v13  ;;  %v5989_v37 = vld [vmem:[#allocation47_spill] sm:$0xff] }
  0xf6   : > { %3887 = vmatprep.mubr.msk.f32.mxu1 %vm336_vm1, %v4845_v56  ;;  %4143 = vmatprep.mubr.msk.f32.mxu0 %vm336_vm1, %v4906_v50  ;;  %v5991_v50 = vld [vmem:[#allocation48_spill] sm:$0xff]  ;;  %v2673_v56 = vrot.slane %v5440_v20, 2 }
  0xf9   : > { %3888 = vmatmul.mubr.msk.f32.gmra.mrb[16].mxu1 %vm336_vm1, %v4848_v57  ;;  %4144 = vmatmul.mubr.msk.f32.vlgmr.msra.gmra.mrb[0].mxu0 %vm336_vm1, %v5942_v9  ;;  %v2674_v57 = vrot.slane %v5451_v28, 2 }
  0xfa   : > { %3890 = vmatprep.mubr.msk.f32.mxu1 %vm336_vm1, %v4873_v17  ;;  %4146 = vmatprep.mubr.msk.f32.mxu0 %vm336_vm1, %v5943_v42  ;;  %v5992_v17 = vld [vmem:[#allocation49_spill] sm:$0xff] }
  0xfd   : > { %3891 = vmatmul.mubr.msk.f32.gmra.mrb[18].mxu1 %vm336_vm1, %v4876_v18  ;;  %4147 = vmatmul.mubr.msk.f32.gmra.mrb[2].mxu0 %vm336_vm1, %v5944_v60  ;;  %v5993_v18 = vld [vmem:[#allocation50_spill] sm:$0xff] }
  0xfe   : > { %3893 = vmatprep.mubr.msk.f32.mxu1 %vm336_vm1, %v4911_v41  ;;  %4149 = vmatprep.mubr.msk.f32.mxu0 %vm336_vm1, %v5945_v47  ;;  %v5990_v41 = vld [vmem:[#allocation39_spill] sm:$0xff] }
 0x101   : > { %3894 = vmatmul.mubr.msk.f32.gmra.mrb[20].mxu1 %vm336_vm1, %v4914_v54  ;;  %4150 = vmatmul.mubr.msk.f32.gmra.mrb[4].mxu0 %vm336_vm1, %v5946_v59  ;;  %v2676_v54 = vrot.slane %v5584_v36, 2 }
 0x102   : > { %3896 = vmatprep.mubr.msk.f32.mxu1 %vm336_vm1, %v4953_v25  ;;  %4152 = vmatprep.mubr.msk.f32.mxu0 %vm336_vm1, %v5947_v39  ;;  %v5985_v25 = vld [vmem:[#allocation36_spill] sm:$0xff] }
 0x105   : > { %3897 = vmatmul.mubr.msk.f32.gmra.mrb[22].mxu1 %vm336_vm1, %v4956_v49  ;;  %4153 = vmatmul.mubr.msk.f32.gmra.mrb[6].mxu0 %vm336_vm1, %v5948_v38  ;;  %v2675_v49 = vsel %vm915_vm2, %v2673_v56, %v2674_v57 }
 0x106   : > { %3899 = vmatprep.mubr.msk.f32.mxu1 %vm336_vm1, %v4990_v48  ;;  %4155 = vmatprep.mubr.msk.f32.mxu0 %vm336_vm1, %v5056_v5  ;;  %v5994_v48 = vld [vmem:[#allocation51_spill] sm:$0xff] }
 0x109   : > { %3900 = vmatmul.mubr.msk.f32.gmra.mrb[24].mxu1 %vm336_vm1, %v4993_v31  ;;  %4156 = vmatmul.mubr.msk.f32.gmra.mrb[8].mxu0 %vm336_vm1, %v5949_v21  ;;  %v2677_v31 = vsel %vm915_vm2, %v2674_v57, %v2676_v54 }
 0x10a   : > { %3902 = vmatprep.mubr.msk.f32.mxu1 %vm336_vm1, %v5026_v0  ;;  %4158 = vmatprep.mubr.msk.f32.mxu0 %vm336_vm1, %v5091_v30 }
 0x10d   : > { %3903 = vmatmul.mubr.msk.f32.gmra.mrb[26].mxu1 %vm336_vm1, %v5029_v62  ;;  %4159 = vmatmul.mubr.msk.f32.gmra.mrb[10].mxu0 %vm336_vm1, %v5983_v23 }
 0x10e   : > { %3905 = vmatprep.mubr.msk.f32.mxu1 %vm336_vm1, %v5984_v24  ;;  %4161 = vmatprep.mubr.msk.f32.mxu0 %vm336_vm1, %v5115_v53 }
 0x111   : > { %3906 = vmatmul.mubr.msk.f32.gmra.mrb[28].mxu1 %vm336_vm1, %v5985_v25  ;;  %4162 = vmatmul.mubr.msk.f32.gmra.mrb[12].mxu0 %vm336_vm1, %v5131_v44 }
 0x112   : > { %3908 = vmatprep.mubr.msk.f32.mxu1 %vm336_vm1, %v5243_v26  ;;  %4164 = vmatprep.mubr.msk.f32.mxu0 %vm336_vm1, %v5135_v33  ;;  %v5987_v26 = vld [vmem:[#allocation46_spill] sm:$0xff] }
 0x115   : > { %3909 = vmatmul.mubr.msk.f32.gmra.mrb[30].mxu1 %vm336_vm1, %v5246_v22  ;;  %4165 = vmatmul.mubr.msk.f32.gmra.mrb[14].mxu0 %vm336_vm1, %v5154_v61  ;;  %v5986_v22 = vld [vmem:[#allocation34_spill] sm:$0xff] }
 0x116   : > { %3943 = vmatprep.mubr.msk.f32.mxu1 %vm336_vm1, %v5966_v29  ;;  %4167 = vmatprep.mubr.msk.f32.mxu0 %vm336_vm1, %v5158_v40 }
 0x119   : > { %3944 = vmatmul.mubr.msk.f32.vlgmr.msra.gmra.mrb[16].mxu1 %vm336_vm1, %v5967_v16  ;;  %4168 = vmatmul.mubr.msk.f32.gmra.mrb[16].mxu0 %vm336_vm1, %v5178_v12 }
 0x11a   : > { %3946 = vmatprep.mubr.msk.f32.mxu1 %vm336_vm1, %v5969_v8  ;;  %4170 = vmatprep.mubr.msk.f32.mxu0 %vm336_vm1, %v5182_v14 }
 0x11d   : > { %3947 = vmatmul.mubr.msk.f32.gmra.mrb[18].mxu1 %vm336_vm1, %v5971_v4  ;;  %4171 = vmatmul.mubr.msk.f32.gmra.mrb[18].mxu0 %vm336_vm1, %v5197_v43 }
 0x11e   : > { %3949 = vmatprep.mubr.msk.f32.mxu1 %vm336_vm1, %v5972_v15  ;;  %4173 = vmatprep.mubr.msk.f32.mxu0 %vm336_vm1, %v5201_v34 }
 0x121   : > { %3950 = vmatmul.mubr.msk.f32.gmra.mrb[20].mxu1 %vm336_vm1, %v5974_v63  ;;  %4174 = vmatmul.mubr.msk.f32.gmra.mrb[20].mxu0 %vm336_vm1, %v5959_v10 }
 0x122   : > { %3952 = vmatprep.mubr.msk.f32.mxu1 %vm336_vm1, %v5975_v7  ;;  %4176 = vmatprep.mubr.msk.f32.mxu0 %vm336_vm1, %v5961_v55 }
 0x125   : > { %3953 = vmatmul.mubr.msk.f32.gmra.mrb[22].mxu1 %vm336_vm1, %v5976_v32  ;;  %4177 = vmatmul.mubr.msk.f32.gmra.mrb[22].mxu0 %vm336_vm1, %v5232_v58 }
 0x126   : > { %3955 = vmatprep.mubr.msk.f32.mxu1 %vm336_vm1, %v5986_v22  ;;  %4179 = vmatprep.mubr.msk.f32.mxu0 %vm336_vm1, %v5987_v26 }
 0x129   : > { %3956 = vmatmul.mubr.msk.f32.gmra.mrb[24].mxu1 %vm336_vm1, %v5988_v35  ;;  %4180 = vmatmul.mubr.msk.f32.gmra.mrb[24].mxu0 %vm336_vm1, %v5989_v37 }
 0x12a   : > { %3958 = vmatprep.mubr.msk.f32.mxu1 %vm336_vm1, %v5990_v41  ;;  %4182 = vmatprep.mubr.msk.f32.mxu0 %vm336_vm1, %v5991_v50 }
 0x12d   : > { %3959 = vmatmul.mubr.msk.f32.gmra.mrb[26].mxu1 %vm336_vm1, %v5980_v19  ;;  %4183 = vmatmul.mubr.msk.f32.gmra.mrb[26].mxu0 %vm336_vm1, %v5992_v17 }
 0x12e   : > { %3961 = vmatprep.mubr.msk.f32.mxu1 %vm336_vm1, %v5981_v52  ;;  %4185 = vmatprep.mubr.msk.f32.mxu0 %vm336_vm1, %v5993_v18 }
 0x131   : > { %3962 = vmatmul.mubr.msk.f32.gmra.mrb[28].mxu1 %vm336_vm1, %v5982_v2  ;;  %4186 = vmatmul.mubr.msk.f32.gmra.mrb[28].mxu0 %vm336_vm1, %v5994_v48 }
 0x132   : > { %3964 = vmatprep.mubr.msk.f32.mxu1 %vm336_vm1, %v5581_v3  ;;  %4188 = vmatprep.mubr.msk.f32.mxu0 %vm336_vm1, %v2675_v49 }
 0x135   : > { %3965 = vmatmul.mubr.msk.f32.gmra.mrb[30].mxu1 %vm336_vm1, %v5595_v11  ;;  %4189 = vmatmul.mubr.msk.f32.gmra.mrb[30].mxu0 %vm336_vm1, %v2677_v31 }
 0x1ac   : > { %v3865_v0 = vpop.f32.mrb[0].mxu1 }
 0x1ad   : > { %v1399_v62 = vpop.f32.mrb[1].mxu1 }
 0x1b0   : > { %v3868_v5 = vpop.f32.mrb[2].mxu1 }
 0x1b1   : > { %v1409_v53 = vpop.f32.mrb[3].mxu1 }
 0x1b4   : > { %v3871_v30 = vpop.f32.mrb[4].mxu1 }
 0x1b5   : > { %v1419_v44 = vpop.f32.mrb[5].mxu1 }
 0x1b8   : > { %v3874_v33 = vpop.f32.mrb[6].mxu1 }
 0x1b9   : > { %v1429_v61 = vpop.f32.mrb[7].mxu1 }
 0x1bc   : > { %v3877_v40 = vpop.f32.mrb[8].mxu1 }
 0x1bd   : > { %v1439_v12 = vpop.f32.mrb[9].mxu1 }
 0x1c0   : > { %v3880_v14 = vpop.f32.mrb[10].mxu1 }
 0x1c1   : > { %v1449_v43 = vpop.f32.mrb[11].mxu1 }
 0x1c4   : > { %v3883_v34 = vpop.f32.mrb[12].mxu1 }
 0x1c5   : > { %v1459_v58 = vpop.f32.mrb[13].mxu1 }
 0x1c8   : > { %v3886_v3 = vpop.f32.mrb[14].mxu1 }
 0x1c9   : > { %v1469_v15 = vpop.f32.mrb[15].mxu1 }
 0x1cc   : > { %v4145_v9 = vpop.f32.mrb[0].mxu0 }
 0x1cd   : > { %v4267_v42 = vadd.f32 %v4145_v9, %v3865_v0  ;;  %v2753_v60 = vpop.f32.mrb[1].mxu0 }
 0x1ce   : > { %v4268_v47 = vadd.f32 %v2753_v60, %v1399_v62 }
 0x1cf   : > { %2946 = vst.msk [vmem:[%s5745_s13 + $0x8] sm:$0xff] %vm2944_vm3, %v4267_v42 }
 0x1d0   : > { %2945 = vst.msk [vmem:[%s5745_s13] sm:$0xff] %vm2944_vm3, %v4268_v47  ;;  %v4148_v59 = vpop.f32.mrb[2].mxu0 }
 0x1d1   : > { %v4269_v39 = vadd.f32 %v4148_v59, %v3868_v5  ;;  %v2763_v38 = vpop.f32.mrb[3].mxu0 }
 0x1d2   : > { %v4270_v20 = vadd.f32 %v2763_v38, %v1409_v53 }
 0x1d3   : > { %2948 = vst.msk [vmem:[%s5745_s13 + $0x18] sm:$0xff] %vm2944_vm3, %v4269_v39 }
 0x1d4   : > { %2947 = vst.msk [vmem:[%s5745_s13 + $0x10] sm:$0xff] %vm2944_vm3, %v4270_v20  ;;  %v4151_v21 = vpop.f32.mrb[4].mxu0 }
 0x1d5   : > { %v4271_v28 = vadd.f32 %v4151_v21, %v3871_v30  ;;  %v2773_v10 = vpop.f32.mrb[5].mxu0 }
 0x1d6   : > { %v4272_v55 = vadd.f32 %v2773_v10, %v1419_v44 }
 0x1d7   : > { %2950 = vst.msk [vmem:[%s5745_s13 + $0x28] sm:$0xff] %vm2944_vm3, %v4271_v28 }
 0x1d8   : > { %2949 = vst.msk [vmem:[%s5745_s13 + $0x20] sm:$0xff] %vm2944_vm3, %v4272_v55  ;;  %v4154_v29 = vpop.f32.mrb[6].mxu0 }
 0x1d9   : > { %v4273_v16 = vadd.f32 %v4154_v29, %v3874_v33  ;;  %v2783_v8 = vpop.f32.mrb[7].mxu0 }
 0x1da   : > { %v4274_v4 = vadd.f32 %v2783_v8, %v1429_v61 }
 0x1db   : > { %2952 = vst.msk [vmem:[%s5745_s13 + $0x38] sm:$0xff] %vm2944_vm3, %v4273_v16 }
 0x1dc   : > { %2951 = vst.msk [vmem:[%s5745_s13 + $0x30] sm:$0xff] %vm2944_vm3, %v4274_v4  ;;  %v4157_v63 = vpop.f32.mrb[8].mxu0 }
 0x1dd   : > { %v4275_v7 = vadd.f32 %v4157_v63, %v3877_v40  ;;  %v2793_v32 = vpop.f32.mrb[9].mxu0 }
 0x1de   : > { %v4276_v36 = vadd.f32 %v2793_v32, %v1439_v12 }
 0x1df   : > { %2954 = vst.msk [vmem:[%s5745_s13 + $0x48] sm:$0xff] %vm2944_vm3, %v4275_v7 }
 0x1e0   : > { %2953 = vst.msk [vmem:[%s5745_s13 + $0x40] sm:$0xff] %vm2944_vm3, %v4276_v36  ;;  %v4160_v45 = vpop.f32.mrb[10].mxu0 }
 0x1e1   : > { %v4277_v46 = vadd.f32 %v4160_v45, %v3880_v14  ;;  %v2803_v51 = vpop.f32.mrb[11].mxu0 }
 0x1e2   : > { %v4278_v19 = vadd.f32 %v2803_v51, %v1449_v43 }
 0x1e3   : > { %2956 = vst.msk [vmem:[%s5745_s13 + $0x58] sm:$0xff] %vm2944_vm3, %v4277_v46 }
 0x1e4   : > { %2955 = vst.msk [vmem:[%s5745_s13 + $0x50] sm:$0xff] %vm2944_vm3, %v4278_v19  ;;  %v4163_v52 = vpop.f32.mrb[12].mxu0 }
 0x1e5   : > { %v4279_v1 = vadd.f32 %v4163_v52, %v3883_v34  ;;  %v2813_v2 = vpop.f32.mrb[13].mxu0 }
 0x1e6   : > { %v4280_v11 = vadd.f32 %v2813_v2, %v1459_v58 }
 0x1e7   : > { %2958 = vst.msk [vmem:[%s5745_s13 + $0x68] sm:$0xff] %vm2944_vm3, %v4279_v1 }
 0x1e8   : > { %2957 = vst.msk [vmem:[%s5745_s13 + $0x60] sm:$0xff] %vm2944_vm3, %v4280_v11  ;;  %v4166_v6 = vpop.f32.mrb[14].mxu0 }
 0x1e9   : > { %v4281_v27 = vadd.f32 %v4166_v6, %v3886_v3  ;;  %v2823_v13 = vpop.f32.mrb[15].mxu0 }
 0x1ea   : > { %v4282_v23 = vadd.f32 %v2823_v13, %v1469_v15 }
 0x1eb   : > { %2960 = vst.msk [vmem:[%s5745_s13 + $0x78] sm:$0xff] %vm2944_vm3, %v4281_v27 }
 0x1ec   : > { %v3945_v24 = vpop.f32.mrb[16].mxu1  ;;  %2959 = vst.msk [vmem:[%s5745_s13 + $0x70] sm:$0xff] %vm2944_vm3, %v4282_v23  ;;  %v4169_v25 = vpop.f32.mrb[16].mxu0 }
 0x1ed   : > { %v1751_v22 = vpop.f32.mrb[17].mxu1  ;;  %v4283_v26 = vadd.f32 %v4169_v25, %v3945_v24  ;;  %v2833_v35 = vpop.f32.mrb[17].mxu0 }
 0x1ee   : > { %v4284_v37 = vadd.f32 %v2833_v35, %v1751_v22 }
 0x1ef   : > { %2962 = vst.msk [vmem:[%s5745_s13 + $0x88] sm:$0xff] %vm2944_vm3, %v4283_v26 }
 0x1f0   : > { %v3948_v41 = vpop.f32.mrb[18].mxu1  ;;  %2961 = vst.msk [vmem:[%s5745_s13 + $0x80] sm:$0xff] %vm2944_vm3, %v4284_v37  ;;  %v4172_v50 = vpop.f32.mrb[18].mxu0 }
 0x1f1   : > { %v1761_v56 = vpop.f32.mrb[19].mxu1  ;;  %v4285_v57 = vadd.f32 %v4172_v50, %v3948_v41  ;;  %v2843_v17 = vpop.f32.mrb[19].mxu0 }
 0x1f2   : > { %v4286_v18 = vadd.f32 %v2843_v17, %v1761_v56 }
 0x1f3   : > { %2964 = vst.msk [vmem:[%s5745_s13 + $0x98] sm:$0xff] %vm2944_vm3, %v4285_v57 }
 0x1f4   : > { %v3951_v54 = vpop.f32.mrb[20].mxu1  ;;  %2963 = vst.msk [vmem:[%s5745_s13 + $0x90] sm:$0xff] %vm2944_vm3, %v4286_v18  ;;  %v4175_v49 = vpop.f32.mrb[20].mxu0 }
 0x1f5   : > { %v1771_v48 = vpop.f32.mrb[21].mxu1  ;;  %v4287_v31 = vadd.f32 %v4175_v49, %v3951_v54  ;;  %v2853_v0 = vpop.f32.mrb[21].mxu0 }
 0x1f6   : > { %v4288_v62 = vadd.f32 %v2853_v0, %v1771_v48 }
 0x1f7   : > { %2966 = vst.msk [vmem:[%s5745_s13 + $0xa8] sm:$0xff] %vm2944_vm3, %v4287_v31 }
 0x1f8   : > { %v3954_v5 = vpop.f32.mrb[22].mxu1  ;;  %2965 = vst.msk [vmem:[%s5745_s13 + $0xa0] sm:$0xff] %vm2944_vm3, %v4288_v62  ;;  %v4178_v53 = vpop.f32.mrb[22].mxu0 }
 0x1f9   : > { %v1781_v30 = vpop.f32.mrb[23].mxu1  ;;  %v4289_v44 = vadd.f32 %v4178_v53, %v3954_v5  ;;  %v2863_v33 = vpop.f32.mrb[23].mxu0 }
 0x1fa   : > { %v4290_v61 = vadd.f32 %v2863_v33, %v1781_v30 }
 0x1fb   : > { %2968 = vst.msk [vmem:[%s5745_s13 + $0xb8] sm:$0xff] %vm2944_vm3, %v4289_v44 }
 0x1fc   : > { %v3957_v40 = vpop.f32.mrb[24].mxu1  ;;  %2967 = vst.msk [vmem:[%s5745_s13 + $0xb0] sm:$0xff] %vm2944_vm3, %v4290_v61  ;;  %v4181_v12 = vpop.f32.mrb[24].mxu0 }
 0x1fd   : > { %v1791_v14 = vpop.f32.mrb[25].mxu1  ;;  %v4291_v43 = vadd.f32 %v4181_v12, %v3957_v40  ;;  %v2873_v34 = vpop.f32.mrb[25].mxu0 }
 0x1fe   : > { %v4292_v58 = vadd.f32 %v2873_v34, %v1791_v14 }
 0x1ff   : > { %2970 = vst.msk [vmem:[%s5745_s13 + $0xc8] sm:$0xff] %vm2944_vm3, %v4291_v43 }
 0x200   : > { %v3960_v3 = vpop.f32.mrb[26].mxu1  ;;  %2969 = vst.msk [vmem:[%s5745_s13 + $0xc0] sm:$0xff] %vm2944_vm3, %v4292_v58  ;;  %v4184_v15 = vpop.f32.mrb[26].mxu0 }
 0x201   : > { %v1801_v9 = vpop.f32.mrb[27].mxu1  ;;  %v4293_v42 = vadd.f32 %v4184_v15, %v3960_v3  ;;  %v2883_v60 = vpop.f32.mrb[27].mxu0 }
 0x202   : > { %v4294_v47 = vadd.f32 %v2883_v60, %v1801_v9 }
 0x203   : > { %2972 = vst.msk [vmem:[%s5745_s13 + $0xd8] sm:$0xff] %vm2944_vm3, %v4293_v42 }
 0x204   : > { %v3963_v59 = vpop.f32.mrb[28].mxu1  ;;  %2971 = vst.msk [vmem:[%s5745_s13 + $0xd0] sm:$0xff] %vm2944_vm3, %v4294_v47  ;;  %v4187_v39 = vpop.f32.mrb[28].mxu0 }
 0x205   : > { %v1811_v38 = vpop.f32.mrb[29].mxu1  ;;  %v4295_v20 = vadd.f32 %v4187_v39, %v3963_v59  ;;  %v2893_v21 = vpop.f32.mrb[29].mxu0 }
 0x206   : > { %v4296_v28 = vadd.f32 %v2893_v21, %v1811_v38 }
 0x207   : > { %2974 = vst.msk [vmem:[%s5745_s13 + $0xe8] sm:$0xff] %vm2944_vm3, %v4295_v20 }
 0x208   : > { %v3966_v10 = vpop.f32.mrb[30].mxu1  ;;  %2973 = vst.msk [vmem:[%s5745_s13 + $0xe0] sm:$0xff] %vm2944_vm3, %v4296_v28  ;;  %v4190_v55 = vpop.f32.mrb[30].mxu0 }
 0x209   : > { %v1821_v29 = vpop.f32.mrb[31].mxu1  ;;  %v4297_v16 = vadd.f32 %v4190_v55, %v3966_v10  ;;  %v2903_v8 = vpop.f32.mrb[31].mxu0 }
 0x20a   : > { %v4298_v4 = vadd.f32 %v2903_v8, %v1821_v29 }
 0x20b   : > { %2976 = vst.msk [vmem:[%s5745_s13 + $0xf8] sm:$0xff] %vm2944_vm3, %v4297_v16 }
 0x20c   : > { %2975 = vst.msk [vmem:[%s5745_s13 + $0xf0] sm:$0xff] %vm2944_vm3, %v4298_v4 }
 0x20d PF: > { %s12_s9 = sadd.s32 1, %s4538_s9  }
 0x20e   : > { %p9_p4 = scmp.ge.s32.totalorder %s12_s9, 4  }
 0x210   :  { %11 = sbr.rel (!%p9_p4) target bundleno = 1 (0x1), region = 66 }

</bundles_post_ra>
